<compile_context>
chip_gen: v7x
topology: tpu7x:2x2x1
jax: 0.10.0
libtpu: 0.0.40
codegen_flags: <defaults>
</compile_context>

<pallas_src>
import functools
import math

import jax
import jax.numpy as jnp
from jax.experimental import pallas as pl
from jax.experimental.pallas import tpu as pltpu


def _cross_attn_kernel(q_ref, k_ref, v_ref, wq_ref, wk_ref, wv_ref, b_ref,
                       out_ref, acc_ref, *, n_heads, head_dim):
    bb, L_q, Dq = q_ref.shape
    _, L_kv, Dkv = k_ref.shape

    w_dtype = wq_ref.dtype                              # f32, or bf16 (default prep)
    # Fold (batch_block, seq) into rows: one large (rows, D_in) @ (D_in, D_out) matmul
    # per projection, f32 accumulation.  1/sqrt(head_dim) is pre-folded into wq/bq.
    x_q = q_ref[...].reshape(bb * L_q, Dq).astype(w_dtype)
    x_k = k_ref[...].reshape(bb * L_kv, Dkv).astype(w_dtype)
    x_v = v_ref[...].reshape(bb * L_kv, Dkv).astype(w_dtype)
    b = b_ref[...]                                      # (3, Dq) f32: [bq*scale, bk, bv]

    Q = jnp.dot(x_q, wq_ref[...], preferred_element_type=jnp.float32) + b[0:1, :]
    K = jnp.dot(x_k, wk_ref[...], preferred_element_type=jnp.float32) + b[1:2, :]
    V = jnp.dot(x_v, wv_ref[...], preferred_element_type=jnp.float32) + b[2:3, :]

    Q = Q.reshape(bb, L_q, Dq)
    K = K.reshape(bb, L_kv, Dq)
    V = V.reshape(bb, L_kv, Dq)

    # Per-head attention, batched over the whole batch block.  Each head's output goes
    # straight into the f32 VMEM scratch accumulator (bounds live ranges; no concat).
    # Heads stay a short static loop: fully merging (b, l, h, d) -> (b*h, l, d) needs a
    # second-minor transpose Mosaic doesn't reliably support (see header TODO).
    for h in range(n_heads):
        sl = slice(h * head_dim, (h + 1) * head_dim)
        qh = Q[:, :, sl].astype(jnp.bfloat16)           # bf16 MXU inputs, f32 accumulate
        kh = K[:, :, sl].astype(jnp.bfloat16)
        vh = V[:, :, sl].astype(jnp.bfloat16)

        s = jnp.einsum('bqd,bkd->bqk', qh, kh,
                       preferred_element_type=jnp.float32)          # (bb, L_q, L_kv)
        s = s - jnp.max(s, axis=-1, keepdims=True)                  # stable softmax, f32
        p = jnp.exp(s)
        # EUP approximate reciprocal instead of a VPU divide.
        p = p * pl.reciprocal(jnp.sum(p, axis=-1, keepdims=True), approx=True)
        acc_ref[:, :, sl] = jnp.einsum('bqk,bkd->bqd', p.astype(jnp.bfloat16), vh,
                                       preferred_element_type=jnp.float32)

    # Residual add in f32 (re-read q_ref here rather than keeping it live), one
    # full-block store.
    out_ref[...] = (q_ref[...].astype(jnp.float32) + acc_ref[...]).astype(out_ref.dtype)


def _estimate_vmem_bytes(block_b, L_q, L_kv, Dq, Dkv, weight_bytes):
    """Rough per-step VMEM working set (bytes) for one grid iteration."""
    f32 = 4
    # Pipeline-managed blocks (double buffered): q, k, v inputs + output.
    act_blocks = f32 * block_b * (L_q * Dq + 2 * L_kv * Dkv + L_q * Dq)
    # Constant blocks (single buffered via pl.Buffered(1)): Wq^T, Wk^T, Wv^T, biases.
    weights = weight_bytes * (Dq * Dq + 2 * Dkv * Dq) + f32 * 3 * Dq
    # Scratch accumulator + main in-kernel f32 temporaries (Q/K/V + one score tile).
    scratch = f32 * block_b * L_q * Dq
    temps = f32 * block_b * (L_q * Dq + 2 * L_kv * Dq + L_q * L_kv)
    return 2 * act_blocks + weights + scratch + temps


_VMEM_BLOCK_BUDGET = 40 << 20   # leaves headroom inside v7x's 64 MiB physical VMEM


def _pick_block_b(B, L_q, L_kv, Dq, Dkv, weight_bytes, budget=_VMEM_BLOCK_BUDGET):
    """Largest divisor of B whose per-step working set fits the VMEM budget.

    No forced multi-tile grid: v5e/v6e have one TensorCore, so extra grid steps are pure
    per-step pipeline overhead.  (On v7x pass block_b explicitly to keep >=2 tiles.)
    """
    best = 1
    for bb in range(1, B + 1):
        if B % bb:
            continue
        if _estimate_vmem_bytes(bb, L_q, L_kv, Dq, Dkv, weight_bytes) <= budget:
            best = bb
    return best


def prepare_cross_attention_params(params, *, n_heads, weight_dtype=jnp.bfloat16):
    """One-time host-side parameter prep (call once, outside the hot path).

    - transposes nn.Linear's (out, in) weights to (in, out) so the kernel never transposes,
    - folds 1/sqrt(head_dim) into Wq^T and bq,
    - packs the three biases into one (3, Dq) array,
    - optionally casts weights to bf16 (recommended on v6e/v7x; pass None for f32 parity).
    """
    Dq = params["wq"].shape[0]
    assert Dq % n_heads == 0, "query_dim must be divisible by n_heads"
    scale = 1.0 / math.sqrt(Dq // n_heads)
    wq_t = params["wq"].T * scale
    wk_t = params["wk"].T
    wv_t = params["wv"].T
    if weight_dtype is not None:
        wq_t, wk_t, wv_t = (w.astype(weight_dtype) for w in (wq_t, wk_t, wv_t))
    biases = jnp.stack([params["bq"] * scale, params["bk"], params["bv"]], axis=0)
    return {"wq_t": wq_t, "wk_t": wk_t, "wv_t": wv_t,
            "biases": biases.astype(jnp.float32)}


def cross_attention_layer(queries, keys, values, prepared, *, n_heads, block_b=None):
    """queries: (B, L_q, Dq), keys/values: (B, L_kv, Dkv). Returns (B, L_q, Dq).

    Matches CrossAttentionLayer.forward with mask=None.  `prepared` comes from
    prepare_cross_attention_params (weights already transposed / scaled / packed).
    """
    B, L_q, Dq = queries.shape
    Bk, L_kv, Dkv = keys.shape
    assert keys.shape == values.shape and Bk == B
    assert Dq % n_heads == 0, "query_dim must be divisible by n_heads"
    head_dim = Dq // n_heads

    wq_t, wk_t, wv_t = prepared["wq_t"], prepared["wk_t"], prepared["wv_t"]
    biases = prepared["biases"]
    assert wq_t.shape == (Dq, Dq) and wk_t.shape == (Dkv, Dq) and wv_t.shape == (Dkv, Dq)

    weight_bytes = jnp.dtype(wq_t.dtype).itemsize
    if block_b is None:
        block_b = _pick_block_b(B, L_q, L_kv, Dq, Dkv, weight_bytes)
    assert B % block_b == 0, "block_b must divide the batch size"
    num_blocks = B // block_b

    est = _estimate_vmem_bytes(block_b, L_q, L_kv, Dq, Dkv, weight_bytes)
    vmem_limit = int(min(64 << 20, max(32 << 20, est + (16 << 20))))

    kernel = functools.partial(_cross_attn_kernel, n_heads=n_heads, head_dim=head_dim)

    def call(const_pipeline_mode):
        extra = ({} if const_pipeline_mode is None
                 else {"pipeline_mode": const_pipeline_mode})
        grid_spec = pltpu.PrefetchScalarGridSpec(
            num_scalar_prefetch=0,
            grid=(num_blocks,),
            in_specs=[
                pl.BlockSpec((block_b, L_q, Dq), lambda b: (b, 0, 0)),    # queries
                pl.BlockSpec((block_b, L_kv, Dkv), lambda b: (b, 0, 0)),  # keys
                pl.BlockSpec((block_b, L_kv, Dkv), lambda b: (b, 0, 0)),  # values
                pl.BlockSpec((Dq, Dq), lambda b: (0, 0), **extra),        # Wq^T * scale
                pl.BlockSpec((Dkv, Dq), lambda b: (0, 0), **extra),       # Wk^T
                pl.BlockSpec((Dkv, Dq), lambda b: (0, 0), **extra),       # Wv^T
                pl.BlockSpec((3, Dq), lambda b: (0, 0), **extra),         # packed biases
            ],
            out_specs=pl.BlockSpec((block_b, L_q, Dq), lambda b: (b, 0, 0)),
            scratch_shapes=[pltpu.VMEM((block_b, L_q, Dq), jnp.float32)],
        )
        return pl.pallas_call(
            kernel,
            out_shape=jax.ShapeDtypeStruct((B, L_q, Dq), queries.dtype),
            grid_spec=grid_spec,
            compiler_params=pltpu.CompilerParams(
                dimension_semantics=("parallel",),
                vmem_limit_bytes=vmem_limit),
        )(queries, keys, values, wq_t, wk_t, wv_t, biases)

    try:
        # Constant-index weight/bias blocks single-buffered (reclaims ~3*D*D*bytes VMEM).
        return call(pl.Buffered(1))
    except Exception:
        # Installed Pallas rejects per-spec pipeline_mode: fall back to default buffering.
        return call(None)


def _reference(queries, keys, values, params, *, n_heads):
    """Plain-JAX f32 reference mirroring the PyTorch forward (mask=None)."""
    B, L_q, Dq = queries.shape
    _, L_kv, _ = keys.shape
    hd = Dq // n_heads
    Q = queries @ params["wq"].T + params["bq"]
    K = keys @ params["wk"].T + params["bk"]
    V = values @ params["wv"].T + params["bv"]
    Q = Q.reshape(B, L_q, n_heads, hd).transpose(0, 2, 1, 3)
    K = K.reshape(B, L_kv, n_heads, hd).transpose(0, 2, 1, 3)
    V = V.reshape(B, L_kv, n_heads, hd).transpose(0, 2, 1, 3)
    scores = jnp.einsum("bhqd,bhkd->bhqk", Q, K) / math.sqrt(hd)
    attn = jax.nn.softmax(scores, axis=-1)
    out = jnp.einsum("bhqk,bhkd->bhqd", attn, V)
    out = out.transpose(0, 2, 1, 3).reshape(B, L_q, Dq)
    return queries + out


if __name__ == "__main__":
    # Small shapes consistent with the module's forward; L_q / L_kv are multiples of 8
    # so the in-kernel (bb, L, D) <-> (bb*L, D) reshapes are layout no-ops.
    B, L_q, L_kv = 4, 8, 16
    query_dim, kv_dim, n_heads = 32, 32, 4

    key = jax.random.PRNGKey(0)
    ks = jax.random.split(key, 9)

    # Deterministic parameter init (PyTorch-style uniform bounds).
    def uinit(k, shape, fan_in):
        bound = 1.0 / math.sqrt(fan_in)
        return jax.random.uniform(k, shape, jnp.float32, -bound, bound)

    params = {
        "wq": uinit(ks[0], (query_dim, query_dim), query_dim),
        "bq": uinit(ks[1], (query_dim,), query_dim),
        "wk": uinit(ks[2], (query_dim, kv_dim), kv_dim),
        "bk": uinit(ks[3], (query_dim,), kv_dim),
        "wv": uinit(ks[4], (query_dim, kv_dim), kv_dim),
        "bv": uinit(ks[5], (query_dim,), kv_dim),
    }

    queries = jax.random.normal(ks[6], (B, L_q, query_dim), jnp.float32)
    keys = jax.random.normal(ks[7], (B, L_kv, kv_dim), jnp.float32)
    values = jax.random.normal(ks[8], (B, L_kv, kv_dim), jnp.float32)

    # One-time host-side prep (transpose, scale fold, bias pack, bf16 weight cast).
    prepared = prepare_cross_attention_params(params, n_heads=n_heads,
                                              weight_dtype=jnp.bfloat16)

    out = cross_attention_layer(queries, keys, values, prepared, n_heads=n_heads)
    out = jax.block_until_ready(out)

    ref = _reference(queries, keys, values, params, n_heads=n_heads)
    assert out.shape == (B, L_q, query_dim)
    # Tolerance is relaxed vs a pure-f32 kernel: bf16 weights + bf16 attention matmuls
    # (f32 accumulation) and the EUP approximate reciprocal in the softmax denominator.
    # Structural bugs would show up as O(1) errors.
    assert jnp.allclose(out, ref, atol=2e-2, rtol=2e-2), "mismatch vs reference"

    print("KERNEL_OK")
</pallas_src>

<mosaic_0001>
module attributes {stable_mosaic.version = 11 : i64} {
  func.func @_cross_attn_kernel(%arg0: i32, %arg1: memref<4x8x32xf32, #tpu.memory_space<vmem>>, %arg2: memref<4x16x32xf32, #tpu.memory_space<vmem>>, %arg3: memref<4x16x32xf32, #tpu.memory_space<vmem>>, %arg4: memref<32x32xbf16, #tpu.memory_space<vmem>>, %arg5: memref<32x32xbf16, #tpu.memory_space<vmem>>, %arg6: memref<32x32xbf16, #tpu.memory_space<vmem>>, %arg7: memref<3x32xf32, #tpu.memory_space<vmem>>, %arg8: memref<4x8x32xf32, #tpu.memory_space<vmem>>, %arg9: memref<4x8x32xf32, #tpu.memory_space<vmem>>) attributes {dimension_semantics = [#tpu.dimension_semantics<parallel>], iteration_bounds = array<i64: 1>, scalar_prefetch = 0 : i64, scratch_operands = 1 : i64, tpu.core_type = #tpu.core_type<tc>, window_params = [{transform_indices = @transform_0, window_bounds = array<i64: 4, 8, 32>}, {transform_indices = @transform_1, window_bounds = array<i64: 4, 16, 32>}, {transform_indices = @transform_2, window_bounds = array<i64: 4, 16, 32>}, {pipeline_mode = #tpu.pipeline_mode<synchronous>, transform_indices = @transform_3, window_bounds = array<i64: 32, 32>}, {pipeline_mode = #tpu.pipeline_mode<synchronous>, transform_indices = @transform_4, window_bounds = array<i64: 32, 32>}, {pipeline_mode = #tpu.pipeline_mode<synchronous>, transform_indices = @transform_5, window_bounds = array<i64: 32, 32>}, {pipeline_mode = #tpu.pipeline_mode<synchronous>, transform_indices = @transform_6, window_bounds = array<i64: 3, 32>}, {transform_indices = @transform_7, window_bounds = array<i64: 4, 8, 32>}]} {
    %c0 = arith.constant 0 : index
    %c0_0 = arith.constant 0 : index
    %c0_1 = arith.constant 0 : index
    %0 = vector.load %arg1[%c0, %c0_0, %c0_1] : memref<4x8x32xf32, #tpu.memory_space<vmem>>, vector<4x8x32xf32>
    %1 = vector.shape_cast %0 : vector<4x8x32xf32> to vector<32x32xf32>
    %2 = arith.truncf %1 : vector<32x32xf32> to vector<32x32xbf16>
    %c0_2 = arith.constant 0 : index
    %c0_3 = arith.constant 0 : index
    %c0_4 = arith.constant 0 : index
    %3 = vector.load %arg2[%c0_2, %c0_3, %c0_4] : memref<4x16x32xf32, #tpu.memory_space<vmem>>, vector<4x16x32xf32>
    %4 = vector.shape_cast %3 : vector<4x16x32xf32> to vector<64x32xf32>
    %5 = arith.truncf %4 : vector<64x32xf32> to vector<64x32xbf16>
    %c0_5 = arith.constant 0 : index
    %c0_6 = arith.constant 0 : index
    %c0_7 = arith.constant 0 : index
    %6 = vector.load %arg3[%c0_5, %c0_6, %c0_7] : memref<4x16x32xf32, #tpu.memory_space<vmem>>, vector<4x16x32xf32>
    %7 = vector.shape_cast %6 : vector<4x16x32xf32> to vector<64x32xf32>
    %8 = arith.truncf %7 : vector<64x32xf32> to vector<64x32xbf16>
    %c0_8 = arith.constant 0 : index
    %c0_9 = arith.constant 0 : index
    %9 = vector.load %arg7[%c0_8, %c0_9] : memref<3x32xf32, #tpu.memory_space<vmem>>, vector<3x32xf32>
    %c0_10 = arith.constant 0 : index
    %c0_11 = arith.constant 0 : index
    %10 = vector.load %arg4[%c0_10, %c0_11] : memref<32x32xbf16, #tpu.memory_space<vmem>>, vector<32x32xbf16>
    %cst = arith.constant dense<0.000000e+00> : vector<32x32xf32>
    %11 = tpu.matmul %2, %10, %cst {dimension_numbers = #tpu.dot_dimension_numbers<[1], [0], [0], [1], [0, 0, 1, 1], [], []>} : vector<32x32xbf16>, vector<32x32xbf16>, vector<32x32xf32> -> vector<32x32xf32>
    %12 = vector.extract_strided_slice %9 {offsets = [0, 0], sizes = [1, 32], strides = [1, 1]} : vector<3x32xf32> to vector<1x32xf32>
    %13 = vector.broadcast %12 : vector<1x32xf32> to vector<32x32xf32>
    %14 = arith.addf %11, %13 : vector<32x32xf32>
    %c0_12 = arith.constant 0 : index
    %c0_13 = arith.constant 0 : index
    %15 = vector.load %arg5[%c0_12, %c0_13] : memref<32x32xbf16, #tpu.memory_space<vmem>>, vector<32x32xbf16>
    %cst_14 = arith.constant dense<0.000000e+00> : vector<64x32xf32>
    %16 = tpu.matmul %5, %15, %cst_14 {dimension_numbers = #tpu.dot_dimension_numbers<[1], [0], [0], [1], [0, 0, 1, 1], [], []>} : vector<64x32xbf16>, vector<32x32xbf16>, vector<64x32xf32> -> vector<64x32xf32>
    %17 = vector.extract_strided_slice %9 {offsets = [1, 0], sizes = [1, 32], strides = [1, 1]} : vector<3x32xf32> to vector<1x32xf32>
    %18 = vector.broadcast %17 : vector<1x32xf32> to vector<64x32xf32>
    %19 = arith.addf %16, %18 : vector<64x32xf32>
    %c0_15 = arith.constant 0 : index
    %c0_16 = arith.constant 0 : index
    %20 = vector.load %arg6[%c0_15, %c0_16] : memref<32x32xbf16, #tpu.memory_space<vmem>>, vector<32x32xbf16>
    %cst_17 = arith.constant dense<0.000000e+00> : vector<64x32xf32>
    %21 = tpu.matmul %8, %20, %cst_17 {dimension_numbers = #tpu.dot_dimension_numbers<[1], [0], [0], [1], [0, 0, 1, 1], [], []>} : vector<64x32xbf16>, vector<32x32xbf16>, vector<64x32xf32> -> vector<64x32xf32>
    %22 = vector.extract_strided_slice %9 {offsets = [2, 0], sizes = [1, 32], strides = [1, 1]} : vector<3x32xf32> to vector<1x32xf32>
    %23 = vector.broadcast %22 : vector<1x32xf32> to vector<64x32xf32>
    %24 = arith.addf %21, %23 : vector<64x32xf32>
    %25 = vector.shape_cast %14 : vector<32x32xf32> to vector<4x8x32xf32>
    %26 = vector.shape_cast %19 : vector<64x32xf32> to vector<4x16x32xf32>
    %27 = vector.shape_cast %24 : vector<64x32xf32> to vector<4x16x32xf32>
    %28 = vector.extract_strided_slice %25 {offsets = [0, 0, 0], sizes = [4, 8, 8], strides = [1, 1, 1]} : vector<4x8x32xf32> to vector<4x8x8xf32>
    %29 = arith.truncf %28 : vector<4x8x8xf32> to vector<4x8x8xbf16>
    %30 = vector.extract_strided_slice %26 {offsets = [0, 0, 0], sizes = [4, 16, 8], strides = [1, 1, 1]} : vector<4x16x32xf32> to vector<4x16x8xf32>
    %31 = arith.truncf %30 : vector<4x16x8xf32> to vector<4x16x8xbf16>
    %32 = vector.extract_strided_slice %27 {offsets = [0, 0, 0], sizes = [4, 16, 8], strides = [1, 1, 1]} : vector<4x16x32xf32> to vector<4x16x8xf32>
    %33 = arith.truncf %32 : vector<4x16x8xf32> to vector<4x16x8xbf16>
    "tpu.trace_start"() <{level = 10 : i32, message = "bqd,bkd->bqk"}> : () -> ()
    %cst_18 = arith.constant dense<0.000000e+00> : vector<4x8x16xf32>
    %34 = tpu.matmul %29, %31, %cst_18 {dimension_numbers = #tpu.dot_dimension_numbers<[2], [2], [1], [1], [0, 0, 0, 1, 1, 1], [0], [0]>} : vector<4x8x8xbf16>, vector<4x16x8xbf16>, vector<4x8x16xf32> -> vector<4x8x16xf32>
    "tpu.trace_stop"() : () -> ()
    %cst_19 = arith.constant dense<0xFF800000> : vector<4x8xf32>
    %35 = vector.multi_reduction <maximumf>, %34, %cst_19 [2] : vector<4x8x16xf32> to vector<4x8xf32>
    %36 = vector.shape_cast %35 : vector<4x8xf32> to vector<4x8x1xf32>
    %37 = vector.broadcast %36 : vector<4x8x1xf32> to vector<4x8x16xf32>
    %38 = arith.subf %34, %37 : vector<4x8x16xf32>
    %39 = math.exp %38 : vector<4x8x16xf32>
    %cst_20 = arith.constant dense<0.000000e+00> : vector<4x8xf32>
    %40 = vector.multi_reduction <add>, %39, %cst_20 [2] : vector<4x8x16xf32> to vector<4x8xf32>
    %41 = vector.shape_cast %40 : vector<4x8xf32> to vector<4x8x1xf32>
    %42 = tpu.reciprocal %41 {approx = true} : vector<4x8x1xf32> -> vector<4x8x1xf32>
    %43 = vector.broadcast %42 : vector<4x8x1xf32> to vector<4x8x16xf32>
    %44 = arith.mulf %39, %43 : vector<4x8x16xf32>
    %45 = arith.truncf %44 : vector<4x8x16xf32> to vector<4x8x16xbf16>
    "tpu.trace_start"() <{level = 10 : i32, message = "bqk,bkd->bqd"}> : () -> ()
    %cst_21 = arith.constant dense<0.000000e+00> : vector<4x8x8xf32>
    %46 = tpu.matmul %45, %33, %cst_21 {dimension_numbers = #tpu.dot_dimension_numbers<[2], [1], [1], [2], [0, 0, 0, 1, 1, 2], [0], [0]>} : vector<4x8x16xbf16>, vector<4x16x8xbf16>, vector<4x8x8xf32> -> vector<4x8x8xf32>
    "tpu.trace_stop"() : () -> ()
    %c0_22 = arith.constant 0 : index
    %c0_23 = arith.constant 0 : index
    %c0_24 = arith.constant 0 : index
    %47 = vector.load %arg9[%c0_22, %c0_23, %c0_24] : memref<4x8x32xf32, #tpu.memory_space<vmem>>, vector<4x8x8xf32>
    tpu.vector_store %arg9[%c0_22, %c0_23, %c0_24], %46 {strides = array<i32>} : memref<4x8x32xf32, #tpu.memory_space<vmem>>, vector<4x8x8xf32>,
    %48 = vector.extract_strided_slice %25 {offsets = [0, 0, 8], sizes = [4, 8, 8], strides = [1, 1, 1]} : vector<4x8x32xf32> to vector<4x8x8xf32>
    %49 = arith.truncf %48 : vector<4x8x8xf32> to vector<4x8x8xbf16>
    %50 = vector.extract_strided_slice %26 {offsets = [0, 0, 8], sizes = [4, 16, 8], strides = [1, 1, 1]} : vector<4x16x32xf32> to vector<4x16x8xf32>
    %51 = arith.truncf %50 : vector<4x16x8xf32> to vector<4x16x8xbf16>
    %52 = vector.extract_strided_slice %27 {offsets = [0, 0, 8], sizes = [4, 16, 8], strides = [1, 1, 1]} : vector<4x16x32xf32> to vector<4x16x8xf32>
    %53 = arith.truncf %52 : vector<4x16x8xf32> to vector<4x16x8xbf16>
    "tpu.trace_start"() <{level = 10 : i32, message = "bqd,bkd->bqk"}> : () -> ()
    %cst_25 = arith.constant dense<0.000000e+00> : vector<4x8x16xf32>
    %54 = tpu.matmul %49, %51, %cst_25 {dimension_numbers = #tpu.dot_dimension_numbers<[2], [2], [1], [1], [0, 0, 0, 1, 1, 1], [0], [0]>} : vector<4x8x8xbf16>, vector<4x16x8xbf16>, vector<4x8x16xf32> -> vector<4x8x16xf32>
    "tpu.trace_stop"() : () -> ()
    %cst_26 = arith.constant dense<0xFF800000> : vector<4x8xf32>
    %55 = vector.multi_reduction <maximumf>, %54, %cst_26 [2] : vector<4x8x16xf32> to vector<4x8xf32>
    %56 = vector.shape_cast %55 : vector<4x8xf32> to vector<4x8x1xf32>
    %57 = vector.broadcast %56 : vector<4x8x1xf32> to vector<4x8x16xf32>
    %58 = arith.subf %54, %57 : vector<4x8x16xf32>
    %59 = math.exp %58 : vector<4x8x16xf32>
    %cst_27 = arith.constant dense<0.000000e+00> : vector<4x8xf32>
    %60 = vector.multi_reduction <add>, %59, %cst_27 [2] : vector<4x8x16xf32> to vector<4x8xf32>
    %61 = vector.shape_cast %60 : vector<4x8xf32> to vector<4x8x1xf32>
    %62 = tpu.reciprocal %61 {approx = true} : vector<4x8x1xf32> -> vector<4x8x1xf32>
    %63 = vector.broadcast %62 : vector<4x8x1xf32> to vector<4x8x16xf32>
    %64 = arith.mulf %59, %63 : vector<4x8x16xf32>
    %65 = arith.truncf %64 : vector<4x8x16xf32> to vector<4x8x16xbf16>
    "tpu.trace_start"() <{level = 10 : i32, message = "bqk,bkd->bqd"}> : () -> ()
    %cst_28 = arith.constant dense<0.000000e+00> : vector<4x8x8xf32>
    %66 = tpu.matmul %65, %53, %cst_28 {dimension_numbers = #tpu.dot_dimension_numbers<[2], [1], [1], [2], [0, 0, 0, 1, 1, 2], [0], [0]>} : vector<4x8x16xbf16>, vector<4x16x8xbf16>, vector<4x8x8xf32> -> vector<4x8x8xf32>
    "tpu.trace_stop"() : () -> ()
    %c0_29 = arith.constant 0 : index
    %c0_30 = arith.constant 0 : index
    %c8 = arith.constant 8 : index
    %67 = vector.load %arg9[%c0_29, %c0_30, %c8] : memref<4x8x32xf32, #tpu.memory_space<vmem>>, vector<4x8x8xf32>
    tpu.vector_store %arg9[%c0_29, %c0_30, %c8], %66 {strides = array<i32>} : memref<4x8x32xf32, #tpu.memory_space<vmem>>, vector<4x8x8xf32>,
    %68 = vector.extract_strided_slice %25 {offsets = [0, 0, 16], sizes = [4, 8, 8], strides = [1, 1, 1]} : vector<4x8x32xf32> to vector<4x8x8xf32>
    %69 = arith.truncf %68 : vector<4x8x8xf32> to vector<4x8x8xbf16>
    %70 = vector.extract_strided_slice %26 {offsets = [0, 0, 16], sizes = [4, 16, 8], strides = [1, 1, 1]} : vector<4x16x32xf32> to vector<4x16x8xf32>
    %71 = arith.truncf %70 : vector<4x16x8xf32> to vector<4x16x8xbf16>
    %72 = vector.extract_strided_slice %27 {offsets = [0, 0, 16], sizes = [4, 16, 8], strides = [1, 1, 1]} : vector<4x16x32xf32> to vector<4x16x8xf32>
    %73 = arith.truncf %72 : vector<4x16x8xf32> to vector<4x16x8xbf16>
    "tpu.trace_start"() <{level = 10 : i32, message = "bqd,bkd->bqk"}> : () -> ()
    %cst_31 = arith.constant dense<0.000000e+00> : vector<4x8x16xf32>
    %74 = tpu.matmul %69, %71, %cst_31 {dimension_numbers = #tpu.dot_dimension_numbers<[2], [2], [1], [1], [0, 0, 0, 1, 1, 1], [0], [0]>} : vector<4x8x8xbf16>, vector<4x16x8xbf16>, vector<4x8x16xf32> -> vector<4x8x16xf32>
    "tpu.trace_stop"() : () -> ()
    %cst_32 = arith.constant dense<0xFF800000> : vector<4x8xf32>
    %75 = vector.multi_reduction <maximumf>, %74, %cst_32 [2] : vector<4x8x16xf32> to vector<4x8xf32>
    %76 = vector.shape_cast %75 : vector<4x8xf32> to vector<4x8x1xf32>
    %77 = vector.broadcast %76 : vector<4x8x1xf32> to vector<4x8x16xf32>
    %78 = arith.subf %74, %77 : vector<4x8x16xf32>
    %79 = math.exp %78 : vector<4x8x16xf32>
    %cst_33 = arith.constant dense<0.000000e+00> : vector<4x8xf32>
    %80 = vector.multi_reduction <add>, %79, %cst_33 [2] : vector<4x8x16xf32> to vector<4x8xf32>
    %81 = vector.shape_cast %80 : vector<4x8xf32> to vector<4x8x1xf32>
    %82 = tpu.reciprocal %81 {approx = true} : vector<4x8x1xf32> -> vector<4x8x1xf32>
    %83 = vector.broadcast %82 : vector<4x8x1xf32> to vector<4x8x16xf32>
    %84 = arith.mulf %79, %83 : vector<4x8x16xf32>
    %85 = arith.truncf %84 : vector<4x8x16xf32> to vector<4x8x16xbf16>
    "tpu.trace_start"() <{level = 10 : i32, message = "bqk,bkd->bqd"}> : () -> ()
    %cst_34 = arith.constant dense<0.000000e+00> : vector<4x8x8xf32>
    %86 = tpu.matmul %85, %73, %cst_34 {dimension_numbers = #tpu.dot_dimension_numbers<[2], [1], [1], [2], [0, 0, 0, 1, 1, 2], [0], [0]>} : vector<4x8x16xbf16>, vector<4x16x8xbf16>, vector<4x8x8xf32> -> vector<4x8x8xf32>
    "tpu.trace_stop"() : () -> ()
    %c0_35 = arith.constant 0 : index
    %c0_36 = arith.constant 0 : index
    %c16 = arith.constant 16 : index
    %87 = vector.load %arg9[%c0_35, %c0_36, %c16] : memref<4x8x32xf32, #tpu.memory_space<vmem>>, vector<4x8x8xf32>
    tpu.vector_store %arg9[%c0_35, %c0_36, %c16], %86 {strides = array<i32>} : memref<4x8x32xf32, #tpu.memory_space<vmem>>, vector<4x8x8xf32>,
    %88 = vector.extract_strided_slice %25 {offsets = [0, 0, 24], sizes = [4, 8, 8], strides = [1, 1, 1]} : vector<4x8x32xf32> to vector<4x8x8xf32>
    %89 = arith.truncf %88 : vector<4x8x8xf32> to vector<4x8x8xbf16>
    %90 = vector.extract_strided_slice %26 {offsets = [0, 0, 24], sizes = [4, 16, 8], strides = [1, 1, 1]} : vector<4x16x32xf32> to vector<4x16x8xf32>
    %91 = arith.truncf %90 : vector<4x16x8xf32> to vector<4x16x8xbf16>
    %92 = vector.extract_strided_slice %27 {offsets = [0, 0, 24], sizes = [4, 16, 8], strides = [1, 1, 1]} : vector<4x16x32xf32> to vector<4x16x8xf32>
    %93 = arith.truncf %92 : vector<4x16x8xf32> to vector<4x16x8xbf16>
    "tpu.trace_start"() <{level = 10 : i32, message = "bqd,bkd->bqk"}> : () -> ()
    %cst_37 = arith.constant dense<0.000000e+00> : vector<4x8x16xf32>
    %94 = tpu.matmul %89, %91, %cst_37 {dimension_numbers = #tpu.dot_dimension_numbers<[2], [2], [1], [1], [0, 0, 0, 1, 1, 1], [0], [0]>} : vector<4x8x8xbf16>, vector<4x16x8xbf16>, vector<4x8x16xf32> -> vector<4x8x16xf32>
    "tpu.trace_stop"() : () -> ()
    %cst_38 = arith.constant dense<0xFF800000> : vector<4x8xf32>
    %95 = vector.multi_reduction <maximumf>, %94, %cst_38 [2] : vector<4x8x16xf32> to vector<4x8xf32>
    %96 = vector.shape_cast %95 : vector<4x8xf32> to vector<4x8x1xf32>
    %97 = vector.broadcast %96 : vector<4x8x1xf32> to vector<4x8x16xf32>
    %98 = arith.subf %94, %97 : vector<4x8x16xf32>
    %99 = math.exp %98 : vector<4x8x16xf32>
    %cst_39 = arith.constant dense<0.000000e+00> : vector<4x8xf32>
    %100 = vector.multi_reduction <add>, %99, %cst_39 [2] : vector<4x8x16xf32> to vector<4x8xf32>
    %101 = vector.shape_cast %100 : vector<4x8xf32> to vector<4x8x1xf32>
    %102 = tpu.reciprocal %101 {approx = true} : vector<4x8x1xf32> -> vector<4x8x1xf32>
    %103 = vector.broadcast %102 : vector<4x8x1xf32> to vector<4x8x16xf32>
    %104 = arith.mulf %99, %103 : vector<4x8x16xf32>
    %105 = arith.truncf %104 : vector<4x8x16xf32> to vector<4x8x16xbf16>
    "tpu.trace_start"() <{level = 10 : i32, message = "bqk,bkd->bqd"}> : () -> ()
    %cst_40 = arith.constant dense<0.000000e+00> : vector<4x8x8xf32>
    %106 = tpu.matmul %105, %93, %cst_40 {dimension_numbers = #tpu.dot_dimension_numbers<[2], [1], [1], [2], [0, 0, 0, 1, 1, 2], [0], [0]>} : vector<4x8x16xbf16>, vector<4x16x8xbf16>, vector<4x8x8xf32> -> vector<4x8x8xf32>
    "tpu.trace_stop"() : () -> ()
    %c0_41 = arith.constant 0 : index
    %c0_42 = arith.constant 0 : index
    %c24 = arith.constant 24 : index
    %107 = vector.load %arg9[%c0_41, %c0_42, %c24] : memref<4x8x32xf32, #tpu.memory_space<vmem>>, vector<4x8x8xf32>
    tpu.vector_store %arg9[%c0_41, %c0_42, %c24], %106 {strides = array<i32>} : memref<4x8x32xf32, #tpu.memory_space<vmem>>, vector<4x8x8xf32>,
    %c0_43 = arith.constant 0 : index
    %c0_44 = arith.constant 0 : index
    %c0_45 = arith.constant 0 : index
    %108 = vector.load %arg1[%c0_43, %c0_44, %c0_45] : memref<4x8x32xf32, #tpu.memory_space<vmem>>, vector<4x8x32xf32>
    %c0_46 = arith.constant 0 : index
    %c0_47 = arith.constant 0 : index
    %c0_48 = arith.constant 0 : index
    %109 = vector.load %arg9[%c0_46, %c0_47, %c0_48] : memref<4x8x32xf32, #tpu.memory_space<vmem>>, vector<4x8x32xf32>
    %110 = arith.addf %108, %109 : vector<4x8x32xf32>
    %c0_49 = arith.constant 0 : index
    %c0_50 = arith.constant 0 : index
    %c0_51 = arith.constant 0 : index
    %111 = vector.load %arg8[%c0_49, %c0_50, %c0_51] : memref<4x8x32xf32, #tpu.memory_space<vmem>>, vector<4x8x32xf32>
    tpu.vector_store %arg8[%c0_49, %c0_50, %c0_51], %110 {strides = array<i32>} : memref<4x8x32xf32, #tpu.memory_space<vmem>>, vector<4x8x32xf32>,
    return
  }
  func.func @transform_0(%arg0: i32) -> (i32, i32, i32) {
    %c0_i32 = arith.constant 0 : i32
    %c0_i32_0 = arith.constant 0 : i32
    %c0_i32_1 = arith.constant 0 : i32
    return %arg0, %c0_i32, %c0_i32_0 : i32, i32, i32
  }
  func.func @transform_1(%arg0: i32) -> (i32, i32, i32) {
    %c0_i32 = arith.constant 0 : i32
    %c0_i32_0 = arith.constant 0 : i32
    %c0_i32_1 = arith.constant 0 : i32
    return %arg0, %c0_i32, %c0_i32_0 : i32, i32, i32
  }
  func.func @transform_2(%arg0: i32) -> (i32, i32, i32) {
    %c0_i32 = arith.constant 0 : i32
    %c0_i32_0 = arith.constant 0 : i32
    %c0_i32_1 = arith.constant 0 : i32
    return %arg0, %c0_i32, %c0_i32_0 : i32, i32, i32
  }
  func.func @transform_3(%arg0: i32) -> (i32, i32) {
    %c0_i32 = arith.constant 0 : i32
    %c0_i32_0 = arith.constant 0 : i32
    %c0_i32_1 = arith.constant 0 : i32
    return %c0_i32, %c0_i32_0 : i32, i32
  }
  func.func @transform_4(%arg0: i32) -> (i32, i32) {
    %c0_i32 = arith.constant 0 : i32
    %c0_i32_0 = arith.constant 0 : i32
    %c0_i32_1 = arith.constant 0 : i32
    return %c0_i32, %c0_i32_0 : i32, i32
  }
  func.func @transform_5(%arg0: i32) -> (i32, i32) {
    %c0_i32 = arith.constant 0 : i32
    %c0_i32_0 = arith.constant 0 : i32
    %c0_i32_1 = arith.constant 0 : i32
    return %c0_i32, %c0_i32_0 : i32, i32
  }
  func.func @transform_6(%arg0: i32) -> (i32, i32) {
    %c0_i32 = arith.constant 0 : i32
    %c0_i32_0 = arith.constant 0 : i32
    %c0_i32_1 = arith.constant 0 : i32
    return %c0_i32, %c0_i32_0 : i32, i32
  }
  func.func @transform_7(%arg0: i32) -> (i32, i32, i32) {
    %c0_i32 = arith.constant 0 : i32
    %c0_i32_0 = arith.constant 0 : i32
    %c0_i32_1 = arith.constant 0 : i32
    return %arg0, %c0_i32, %c0_i32_0 : i32, i32, i32
  }
}

module attributes {stable_mosaic.version = 11 : i64} {
  func.func @_cross_attn_kernel(%arg0: i32, %arg1: memref<4x8x32xf32, #tpu.memory_space<vmem>>, %arg2: memref<4x16x32xf32, #tpu.memory_space<vmem>>, %arg3: memref<4x16x32xf32, #tpu.memory_space<vmem>>, %arg4: memref<32x32xbf16, #tpu.memory_space<vmem>>, %arg5: memref<32x32xbf16, #tpu.memory_space<vmem>>, %arg6: memref<32x32xbf16, #tpu.memory_space<vmem>>, %arg7: memref<3x32xf32, #tpu.memory_space<vmem>>, %arg8: memref<4x8x32xf32, #tpu.memory_space<vmem>>, %arg9: memref<4x8x32xf32, #tpu.memory_space<vmem>>) attributes {dimension_semantics = [#tpu.dimension_semantics<parallel>], iteration_bounds = array<i64: 1>, scalar_prefetch = 0 : i64, scratch_operands = 1 : i64, tpu.core_type = #tpu.core_type<tc>, window_params = [{transform_indices = @transform_0, window_bounds = array<i64: 4, 8, 32>}, {transform_indices = @transform_1, window_bounds = array<i64: 4, 16, 32>}, {transform_indices = @transform_2, window_bounds = array<i64: 4, 16, 32>}, {pipeline_mode = #tpu.pipeline_mode<synchronous>, transform_indices = @transform_3, window_bounds = array<i64: 32, 32>}, {pipeline_mode = #tpu.pipeline_mode<synchronous>, transform_indices = @transform_4, window_bounds = array<i64: 32, 32>}, {pipeline_mode = #tpu.pipeline_mode<synchronous>, transform_indices = @transform_5, window_bounds = array<i64: 32, 32>}, {pipeline_mode = #tpu.pipeline_mode<synchronous>, transform_indices = @transform_6, window_bounds = array<i64: 3, 32>}, {transform_indices = @transform_7, window_bounds = array<i64: 4, 8, 32>}]} {
    %c0 = arith.constant 0 : index
    %c0_0 = arith.constant 0 : index
    %c0_1 = arith.constant 0 : index
    %0 = vector.load %arg1[%c0, %c0_0, %c0_1] : memref<4x8x32xf32, #tpu.memory_space<vmem>>, vector<4x8x32xf32>
    %1 = vector.shape_cast %0 : vector<4x8x32xf32> to vector<32x32xf32>
    %2 = arith.truncf %1 : vector<32x32xf32> to vector<32x32xbf16>
    %c0_2 = arith.constant 0 : index
    %c0_3 = arith.constant 0 : index
    %c0_4 = arith.constant 0 : index
    %3 = vector.load %arg2[%c0_2, %c0_3, %c0_4] : memref<4x16x32xf32, #tpu.memory_space<vmem>>, vector<4x16x32xf32>
    %4 = vector.shape_cast %3 : vector<4x16x32xf32> to vector<64x32xf32>
    %5 = arith.truncf %4 : vector<64x32xf32> to vector<64x32xbf16>
    %c0_5 = arith.constant 0 : index
    %c0_6 = arith.constant 0 : index
    %c0_7 = arith.constant 0 : index
    %6 = vector.load %arg3[%c0_5, %c0_6, %c0_7] : memref<4x16x32xf32, #tpu.memory_space<vmem>>, vector<4x16x32xf32>
    %7 = vector.shape_cast %6 : vector<4x16x32xf32> to vector<64x32xf32>
    %8 = arith.truncf %7 : vector<64x32xf32> to vector<64x32xbf16>
    %c0_8 = arith.constant 0 : index
    %c0_9 = arith.constant 0 : index
    %9 = vector.load %arg7[%c0_8, %c0_9] : memref<3x32xf32, #tpu.memory_space<vmem>>, vector<3x32xf32>
    %c0_10 = arith.constant 0 : index
    %c0_11 = arith.constant 0 : index
    %10 = vector.load %arg4[%c0_10, %c0_11] : memref<32x32xbf16, #tpu.memory_space<vmem>>, vector<32x32xbf16>
    %cst = arith.constant dense<0.000000e+00> : vector<32x32xf32>
    %11 = tpu.matmul %2, %10, %cst {dimension_numbers = #tpu.dot_dimension_numbers<[1], [0], [0], [1], [0, 0, 1, 1], [], []>} : vector<32x32xbf16>, vector<32x32xbf16>, vector<32x32xf32> -> vector<32x32xf32>
    %12 = vector.extract_strided_slice %9 {offsets = [0, 0], sizes = [1, 32], strides = [1, 1]} : vector<3x32xf32> to vector<1x32xf32>
    %13 = vector.broadcast %12 : vector<1x32xf32> to vector<32x32xf32>
    %14 = arith.addf %11, %13 : vector<32x32xf32>
    %c0_12 = arith.constant 0 : index
    %c0_13 = arith.constant 0 : index
    %15 = vector.load %arg5[%c0_12, %c0_13] : memref<32x32xbf16, #tpu.memory_space<vmem>>, vector<32x32xbf16>
    %cst_14 = arith.constant dense<0.000000e+00> : vector<64x32xf32>
    %16 = tpu.matmul %5, %15, %cst_14 {dimension_numbers = #tpu.dot_dimension_numbers<[1], [0], [0], [1], [0, 0, 1, 1], [], []>} : vector<64x32xbf16>, vector<32x32xbf16>, vector<64x32xf32> -> vector<64x32xf32>
    %17 = vector.extract_strided_slice %9 {offsets = [1, 0], sizes = [1, 32], strides = [1, 1]} : vector<3x32xf32> to vector<1x32xf32>
    %18 = vector.broadcast %17 : vector<1x32xf32> to vector<64x32xf32>
    %19 = arith.addf %16, %18 : vector<64x32xf32>
    %c0_15 = arith.constant 0 : index
    %c0_16 = arith.constant 0 : index
    %20 = vector.load %arg6[%c0_15, %c0_16] : memref<32x32xbf16, #tpu.memory_space<vmem>>, vector<32x32xbf16>
    %cst_17 = arith.constant dense<0.000000e+00> : vector<64x32xf32>
    %21 = tpu.matmul %8, %20, %cst_17 {dimension_numbers = #tpu.dot_dimension_numbers<[1], [0], [0], [1], [0, 0, 1, 1], [], []>} : vector<64x32xbf16>, vector<32x32xbf16>, vector<64x32xf32> -> vector<64x32xf32>
    %22 = vector.extract_strided_slice %9 {offsets = [2, 0], sizes = [1, 32], strides = [1, 1]} : vector<3x32xf32> to vector<1x32xf32>
    %23 = vector.broadcast %22 : vector<1x32xf32> to vector<64x32xf32>
    %24 = arith.addf %21, %23 : vector<64x32xf32>
    %25 = vector.shape_cast %14 : vector<32x32xf32> to vector<4x8x32xf32>
    %26 = vector.shape_cast %19 : vector<64x32xf32> to vector<4x16x32xf32>
    %27 = vector.shape_cast %24 : vector<64x32xf32> to vector<4x16x32xf32>
    %28 = vector.extract_strided_slice %25 {offsets = [0, 0, 0], sizes = [4, 8, 8], strides = [1, 1, 1]} : vector<4x8x32xf32> to vector<4x8x8xf32>
    %29 = arith.truncf %28 : vector<4x8x8xf32> to vector<4x8x8xbf16>
    %30 = vector.extract_strided_slice %26 {offsets = [0, 0, 0], sizes = [4, 16, 8], strides = [1, 1, 1]} : vector<4x16x32xf32> to vector<4x16x8xf32>
    %31 = arith.truncf %30 : vector<4x16x8xf32> to vector<4x16x8xbf16>
    %32 = vector.extract_strided_slice %27 {offsets = [0, 0, 0], sizes = [4, 16, 8], strides = [1, 1, 1]} : vector<4x16x32xf32> to vector<4x16x8xf32>
    %33 = arith.truncf %32 : vector<4x16x8xf32> to vector<4x16x8xbf16>
    "tpu.trace_start"() <{level = 10 : i32, message = "bqd,bkd->bqk"}> : () -> ()
    %cst_18 = arith.constant dense<0.000000e+00> : vector<4x8x16xf32>
    %34 = tpu.matmul %29, %31, %cst_18 {dimension_numbers = #tpu.dot_dimension_numbers<[2], [2], [1], [1], [0, 0, 0, 1, 1, 1], [0], [0]>} : vector<4x8x8xbf16>, vector<4x16x8xbf16>, vector<4x8x16xf32> -> vector<4x8x16xf32>
    "tpu.trace_stop"() : () -> ()
    %cst_19 = arith.constant dense<0xFF800000> : vector<4x8xf32>
    %35 = vector.multi_reduction <maximumf>, %34, %cst_19 [2] : vector<4x8x16xf32> to vector<4x8xf32>
    %36 = vector.shape_cast %35 : vector<4x8xf32> to vector<4x8x1xf32>
    %37 = vector.broadcast %36 : vector<4x8x1xf32> to vector<4x8x16xf32>
    %38 = arith.subf %34, %37 : vector<4x8x16xf32>
    %39 = math.exp %38 : vector<4x8x16xf32>
    %cst_20 = arith.constant dense<0.000000e+00> : vector<4x8xf32>
    %40 = vector.multi_reduction <add>, %39, %cst_20 [2] : vector<4x8x16xf32> to vector<4x8xf32>
    %41 = vector.shape_cast %40 : vector<4x8xf32> to vector<4x8x1xf32>
    %42 = tpu.reciprocal %41 {approx = true} : vector<4x8x1xf32> -> vector<4x8x1xf32>
    %43 = vector.broadcast %42 : vector<4x8x1xf32> to vector<4x8x16xf32>
    %44 = arith.mulf %39, %43 : vector<4x8x16xf32>
    %45 = arith.truncf %44 : vector<4x8x16xf32> to vector<4x8x16xbf16>
    "tpu.trace_start"() <{level = 10 : i32, message = "bqk,bkd->bqd"}> : () -> ()
    %cst_21 = arith.constant dense<0.000000e+00> : vector<4x8x8xf32>
    %46 = tpu.matmul %45, %33, %cst_21 {dimension_numbers = #tpu.dot_dimension_numbers<[2], [1], [1], [2], [0, 0, 0, 1, 1, 2], [0], [0]>} : vector<4x8x16xbf16>, vector<4x16x8xbf16>, vector<4x8x8xf32> -> vector<4x8x8xf32>
    "tpu.trace_stop"() : () -> ()
    %c0_22 = arith.constant 0 : index
    %c0_23 = arith.constant 0 : index
    %c0_24 = arith.constant 0 : index
    %47 = vector.load %arg9[%c0_22, %c0_23, %c0_24] : memref<4x8x32xf32, #tpu.memory_space<vmem>>, vector<4x8x8xf32>
    tpu.vector_store %arg9[%c0_22, %c0_23, %c0_24], %46 {strides = array<i32>} : memref<4x8x32xf32, #tpu.memory_space<vmem>>, vector<4x8x8xf32>,
    %48 = vector.extract_strided_slice %25 {offsets = [0, 0, 8], sizes = [4, 8, 8], strides = [1, 1, 1]} : vector<4x8x32xf32> to vector<4x8x8xf32>
    %49 = arith.truncf %48 : vector<4x8x8xf32> to vector<4x8x8xbf16>
    %50 = vector.extract_strided_slice %26 {offsets = [0, 0, 8], sizes = [4, 16, 8], strides = [1, 1, 1]} : vector<4x16x32xf32> to vector<4x16x8xf32>
    %51 = arith.truncf %50 : vector<4x16x8xf32> to vector<4x16x8xbf16>
    %52 = vector.extract_strided_slice %27 {offsets = [0, 0, 8], sizes = [4, 16, 8], strides = [1, 1, 1]} : vector<4x16x32xf32> to vector<4x16x8xf32>
    %53 = arith.truncf %52 : vector<4x16x8xf32> to vector<4x16x8xbf16>
    "tpu.trace_start"() <{level = 10 : i32, message = "bqd,bkd->bqk"}> : () -> ()
    %cst_25 = arith.constant dense<0.000000e+00> : vector<4x8x16xf32>
    %54 = tpu.matmul %49, %51, %cst_25 {dimension_numbers = #tpu.dot_dimension_numbers<[2], [2], [1], [1], [0, 0, 0, 1, 1, 1], [0], [0]>} : vector<4x8x8xbf16>, vector<4x16x8xbf16>, vector<4x8x16xf32> -> vector<4x8x16xf32>
    "tpu.trace_stop"() : () -> ()
    %cst_26 = arith.constant dense<0xFF800000> : vector<4x8xf32>
    %55 = vector.multi_reduction <maximumf>, %54, %cst_26 [2] : vector<4x8x16xf32> to vector<4x8xf32>
    %56 = vector.shape_cast %55 : vector<4x8xf32> to vector<4x8x1xf32>
    %57 = vector.broadcast %56 : vector<4x8x1xf32> to vector<4x8x16xf32>
    %58 = arith.subf %54, %57 : vector<4x8x16xf32>
    %59 = math.exp %58 : vector<4x8x16xf32>
    %cst_27 = arith.constant dense<0.000000e+00> : vector<4x8xf32>
    %60 = vector.multi_reduction <add>, %59, %cst_27 [2] : vector<4x8x16xf32> to vector<4x8xf32>
    %61 = vector.shape_cast %60 : vector<4x8xf32> to vector<4x8x1xf32>
    %62 = tpu.reciprocal %61 {approx = true} : vector<4x8x1xf32> -> vector<4x8x1xf32>
    %63 = vector.broadcast %62 : vector<4x8x1xf32> to vector<4x8x16xf32>
    %64 = arith.mulf %59, %63 : vector<4x8x16xf32>
    %65 = arith.truncf %64 : vector<4x8x16xf32> to vector<4x8x16xbf16>
    "tpu.trace_start"() <{level = 10 : i32, message = "bqk,bkd->bqd"}> : () -> ()
    %cst_28 = arith.constant dense<0.000000e+00> : vector<4x8x8xf32>
    %66 = tpu.matmul %65, %53, %cst_28 {dimension_numbers = #tpu.dot_dimension_numbers<[2], [1], [1], [2], [0, 0, 0, 1, 1, 2], [0], [0]>} : vector<4x8x16xbf16>, vector<4x16x8xbf16>, vector<4x8x8xf32> -> vector<4x8x8xf32>
    "tpu.trace_stop"() : () -> ()
    %c0_29 = arith.constant 0 : index
    %c0_30 = arith.constant 0 : index
    %c8 = arith.constant 8 : index
    %67 = vector.load %arg9[%c0_29, %c0_30, %c8] : memref<4x8x32xf32, #tpu.memory_space<vmem>>, vector<4x8x8xf32>
    tpu.vector_store %arg9[%c0_29, %c0_30, %c8], %66 {strides = array<i32>} : memref<4x8x32xf32, #tpu.memory_space<vmem>>, vector<4x8x8xf32>,
    %68 = vector.extract_strided_slice %25 {offsets = [0, 0, 16], sizes = [4, 8, 8], strides = [1, 1, 1]} : vector<4x8x32xf32> to vector<4x8x8xf32>
    %69 = arith.truncf %68 : vector<4x8x8xf32> to vector<4x8x8xbf16>
    %70 = vector.extract_strided_slice %26 {offsets = [0, 0, 16], sizes = [4, 16, 8], strides = [1, 1, 1]} : vector<4x16x32xf32> to vector<4x16x8xf32>
    %71 = arith.truncf %70 : vector<4x16x8xf32> to vector<4x16x8xbf16>
    %72 = vector.extract_strided_slice %27 {offsets = [0, 0, 16], sizes = [4, 16, 8], strides = [1, 1, 1]} : vector<4x16x32xf32> to vector<4x16x8xf32>
    %73 = arith.truncf %72 : vector<4x16x8xf32> to vector<4x16x8xbf16>
    "tpu.trace_start"() <{level = 10 : i32, message = "bqd,bkd->bqk"}> : () -> ()
    %cst_31 = arith.constant dense<0.000000e+00> : vector<4x8x16xf32>
    %74 = tpu.matmul %69, %71, %cst_31 {dimension_numbers = #tpu.dot_dimension_numbers<[2], [2], [1], [1], [0, 0, 0, 1, 1, 1], [0], [0]>} : vector<4x8x8xbf16>, vector<4x16x8xbf16>, vector<4x8x16xf32> -> vector<4x8x16xf32>
    "tpu.trace_stop"() : () -> ()
    %cst_32 = arith.constant dense<0xFF800000> : vector<4x8xf32>
    %75 = vector.multi_reduction <maximumf>, %74, %cst_32 [2] : vector<4x8x16xf32> to vector<4x8xf32>
    %76 = vector.shape_cast %75 : vector<4x8xf32> to vector<4x8x1xf32>
    %77 = vector.broadcast %76 : vector<4x8x1xf32> to vector<4x8x16xf32>
    %78 = arith.subf %74, %77 : vector<4x8x16xf32>
    %79 = math.exp %78 : vector<4x8x16xf32>
    %cst_33 = arith.constant dense<0.000000e+00> : vector<4x8xf32>
    %80 = vector.multi_reduction <add>, %79, %cst_33 [2] : vector<4x8x16xf32> to vector<4x8xf32>
    %81 = vector.shape_cast %80 : vector<4x8xf32> to vector<4x8x1xf32>
    %82 = tpu.reciprocal %81 {approx = true} : vector<4x8x1xf32> -> vector<4x8x1xf32>
    %83 = vector.broadcast %82 : vector<4x8x1xf32> to vector<4x8x16xf32>
    %84 = arith.mulf %79, %83 : vector<4x8x16xf32>
    %85 = arith.truncf %84 : vector<4x8x16xf32> to vector<4x8x16xbf16>
    "tpu.trace_start"() <{level = 10 : i32, message = "bqk,bkd->bqd"}> : () -> ()
    %cst_34 = arith.constant dense<0.000000e+00> : vector<4x8x8xf32>
    %86 = tpu.matmul %85, %73, %cst_34 {dimension_numbers = #tpu.dot_dimension_numbers<[2], [1], [1], [2], [0, 0, 0, 1, 1, 2], [0], [0]>} : vector<4x8x16xbf16>, vector<4x16x8xbf16>, vector<4x8x8xf32> -> vector<4x8x8xf32>
    "tpu.trace_stop"() : () -> ()
    %c0_35 = arith.constant 0 : index
    %c0_36 = arith.constant 0 : index
    %c16 = arith.constant 16 : index
    %87 = vector.load %arg9[%c0_35, %c0_36, %c16] : memref<4x8x32xf32, #tpu.memory_space<vmem>>, vector<4x8x8xf32>
    tpu.vector_store %arg9[%c0_35, %c0_36, %c16], %86 {strides = array<i32>} : memref<4x8x32xf32, #tpu.memory_space<vmem>>, vector<4x8x8xf32>,
    %88 = vector.extract_strided_slice %25 {offsets = [0, 0, 24], sizes = [4, 8, 8], strides = [1, 1, 1]} : vector<4x8x32xf32> to vector<4x8x8xf32>
    %89 = arith.truncf %88 : vector<4x8x8xf32> to vector<4x8x8xbf16>
    %90 = vector.extract_strided_slice %26 {offsets = [0, 0, 24], sizes = [4, 16, 8], strides = [1, 1, 1]} : vector<4x16x32xf32> to vector<4x16x8xf32>
    %91 = arith.truncf %90 : vector<4x16x8xf32> to vector<4x16x8xbf16>
    %92 = vector.extract_strided_slice %27 {offsets = [0, 0, 24], sizes = [4, 16, 8], strides = [1, 1, 1]} : vector<4x16x32xf32> to vector<4x16x8xf32>
    %93 = arith.truncf %92 : vector<4x16x8xf32> to vector<4x16x8xbf16>
    "tpu.trace_start"() <{level = 10 : i32, message = "bqd,bkd->bqk"}> : () -> ()
    %cst_37 = arith.constant dense<0.000000e+00> : vector<4x8x16xf32>
    %94 = tpu.matmul %89, %91, %cst_37 {dimension_numbers = #tpu.dot_dimension_numbers<[2], [2], [1], [1], [0, 0, 0, 1, 1, 1], [0], [0]>} : vector<4x8x8xbf16>, vector<4x16x8xbf16>, vector<4x8x16xf32> -> vector<4x8x16xf32>
    "tpu.trace_stop"() : () -> ()
    %cst_38 = arith.constant dense<0xFF800000> : vector<4x8xf32>
    %95 = vector.multi_reduction <maximumf>, %94, %cst_38 [2] : vector<4x8x16xf32> to vector<4x8xf32>
    %96 = vector.shape_cast %95 : vector<4x8xf32> to vector<4x8x1xf32>
    %97 = vector.broadcast %96 : vector<4x8x1xf32> to vector<4x8x16xf32>
    %98 = arith.subf %94, %97 : vector<4x8x16xf32>
    %99 = math.exp %98 : vector<4x8x16xf32>
    %cst_39 = arith.constant dense<0.000000e+00> : vector<4x8xf32>
    %100 = vector.multi_reduction <add>, %99, %cst_39 [2] : vector<4x8x16xf32> to vector<4x8xf32>
    %101 = vector.shape_cast %100 : vector<4x8xf32> to vector<4x8x1xf32>
    %102 = tpu.reciprocal %101 {approx = true} : vector<4x8x1xf32> -> vector<4x8x1xf32>
    %103 = vector.broadcast %102 : vector<4x8x1xf32> to vector<4x8x16xf32>
    %104 = arith.mulf %99, %103 : vector<4x8x16xf32>
    %105 = arith.truncf %104 : vector<4x8x16xf32> to vector<4x8x16xbf16>
    "tpu.trace_start"() <{level = 10 : i32, message = "bqk,bkd->bqd"}> : () -> ()
    %cst_40 = arith.constant dense<0.000000e+00> : vector<4x8x8xf32>
    %106 = tpu.matmul %105, %93, %cst_40 {dimension_numbers = #tpu.dot_dimension_numbers<[2], [1], [1], [2], [0, 0, 0, 1, 1, 2], [0], [0]>} : vector<4x8x16xbf16>, vector<4x16x8xbf16>, vector<4x8x8xf32> -> vector<4x8x8xf32>
    "tpu.trace_stop"() : () -> ()
    %c0_41 = arith.constant 0 : index
    %c0_42 = arith.constant 0 : index
    %c24 = arith.constant 24 : index
    %107 = vector.load %arg9[%c0_41, %c0_42, %c24] : memref<4x8x32xf32, #tpu.memory_space<vmem>>, vector<4x8x8xf32>
    tpu.vector_store %arg9[%c0_41, %c0_42, %c24], %106 {strides = array<i32>} : memref<4x8x32xf32, #tpu.memory_space<vmem>>, vector<4x8x8xf32>,
    %c0_43 = arith.constant 0 : index
    %c0_44 = arith.constant 0 : index
    %c0_45 = arith.constant 0 : index
    %108 = vector.load %arg1[%c0_43, %c0_44, %c0_45] : memref<4x8x32xf32, #tpu.memory_space<vmem>>, vector<4x8x32xf32>
    %c0_46 = arith.constant 0 : index
    %c0_47 = arith.constant 0 : index
    %c0_48 = arith.constant 0 : index
    %109 = vector.load %arg9[%c0_46, %c0_47, %c0_48] : memref<4x8x32xf32, #tpu.memory_space<vmem>>, vector<4x8x32xf32>
    %110 = arith.addf %108, %109 : vector<4x8x32xf32>
    %c0_49 = arith.constant 0 : index
    %c0_50 = arith.constant 0 : index
    %c0_51 = arith.constant 0 : index
    %111 = vector.load %arg8[%c0_49, %c0_50, %c0_51] : memref<4x8x32xf32, #tpu.memory_space<vmem>>, vector<4x8x32xf32>
    tpu.vector_store %arg8[%c0_49, %c0_50, %c0_51], %110 {strides = array<i32>} : memref<4x8x32xf32, #tpu.memory_space<vmem>>, vector<4x8x32xf32>,
    return
  }
  func.func @transform_0(%arg0: i32) -> (i32, i32, i32) {
    %c0_i32 = arith.constant 0 : i32
    %c0_i32_0 = arith.constant 0 : i32
    %c0_i32_1 = arith.constant 0 : i32
    return %arg0, %c0_i32, %c0_i32_0 : i32, i32, i32
  }
  func.func @transform_1(%arg0: i32) -> (i32, i32, i32) {
    %c0_i32 = arith.constant 0 : i32
    %c0_i32_0 = arith.constant 0 : i32
    %c0_i32_1 = arith.constant 0 : i32
    return %arg0, %c0_i32, %c0_i32_0 : i32, i32, i32
  }
  func.func @transform_2(%arg0: i32) -> (i32, i32, i32) {
    %c0_i32 = arith.constant 0 : i32
    %c0_i32_0 = arith.constant 0 : i32
    %c0_i32_1 = arith.constant 0 : i32
    return %arg0, %c0_i32, %c0_i32_0 : i32, i32, i32
  }
  func.func @transform_3(%arg0: i32) -> (i32, i32) {
    %c0_i32 = arith.constant 0 : i32
    %c0_i32_0 = arith.constant 0 : i32
    %c0_i32_1 = arith.constant 0 : i32
    return %c0_i32, %c0_i32_0 : i32, i32
  }
  func.func @transform_4(%arg0: i32) -> (i32, i32) {
    %c0_i32 = arith.constant 0 : i32
    %c0_i32_0 = arith.constant 0 : i32
    %c0_i32_1 = arith.constant 0 : i32
    return %c0_i32, %c0_i32_0 : i32, i32
  }
  func.func @transform_5(%arg0: i32) -> (i32, i32) {
    %c0_i32 = arith.constant 0 : i32
    %c0_i32_0 = arith.constant 0 : i32
    %c0_i32_1 = arith.constant 0 : i32
    return %c0_i32, %c0_i32_0 : i32, i32
  }
  func.func @transform_6(%arg0: i32) -> (i32, i32) {
    %c0_i32 = arith.constant 0 : i32
    %c0_i32_0 = arith.constant 0 : i32
    %c0_i32_1 = arith.constant 0 : i32
    return %c0_i32, %c0_i32_0 : i32, i32
  }
  func.func @transform_7(%arg0: i32) -> (i32, i32, i32) {
    %c0_i32 = arith.constant 0 : i32
    %c0_i32_0 = arith.constant 0 : i32
    %c0_i32_1 = arith.constant 0 : i32
    return %arg0, %c0_i32, %c0_i32_0 : i32, i32, i32
  }
}

</mosaic_0001>

<bundles_post_ra>
// kernel: tpu_custom_call.1
= control target key start
LH: loop header
LB: loop body
LE: loop exit
PB: predicated region body
PF: predicated region fallthrough
CT: control target
= control target key end

     0   :  { %12 = vsyncpa [#allocation4], 0  ;;  %s3309_s0 = inlined_call_operand.hbm [shape: f32[4,8,32], index: 0, kind: input, shape index: {}]   ;;  %s3310_s1 = inlined_call_operand.hbm [shape: f32[4,16,32], index: 1, kind: input, shape index: {}]   ;;  %s3311_s2 = inlined_call_operand.hbm [shape: f32[4,16,32], index: 2, kind: input, shape index: {}]   ;;  %s3312_s3 = inlined_call_operand.hbm [shape: bf16[32,32], index: 3, kind: input, shape index: {}]   ;;  %s3313_s4 = inlined_call_operand.hbm [shape: bf16[32,32], index: 4, kind: input, shape index: {}]   ;;  %s3314_s5 = inlined_call_operand.vmem [shape: bf16[32,32], index: 5, kind: input, shape index: {}]   ;;  %s3315_s6 = inlined_call_operand.vmem [shape: f32[3,32], index: 6, kind: input, shape index: {}]   ;;  %s3316_s7 = inlined_call_operand.hbm [shape: f32[4,8,32], index: 7, kind: output, shape index: {}]  }
   0x1   :  { %13 = vsyncpa [#allocation7], 0 }
   0x2   :  { %14 = vsyncpa [#allocation10], 0 }
   0x3   :  { %15 = vsyncpa [#allocation5], 0  ;;  %s2804_s24 = smov [#allocation6]   ;;  %s2805_s26 = smov [#allocation9]  }
   0x4   :  { %s33_s25 = sshll.u32 %s2804_s24, 4  ;;  %s57_s27 = sshll.u32 %s2805_s26, 4  ;;  %s34_s25 = int_to_ptr.vmem [resolvable:$true] %s33_s25  ;;  %s2861_s27 = int_to_ptr.vmem [resolvable:$true] %s57_s27 }
   0x5   :  { %s2664_s30 = scalar_lea.hbm %s3310_s1, 1024 }
   0x6   :  { %p2665_p0 = scmp.ne.s32.totalorder %s3310_s1, %s2664_s30  ;;  %p2668_p1 = scmp.lt.u32.totalorder %s2664_s30, %s3310_s1 }
   0x8   :  { %p2670_p2 = pnand %p2668_p1, %p2665_p0 }
   0xa   :  { %2673 = shalt.err (!%p2670_p2)
}
   0xb   :  { %s2674_s12 = scalar_lea.vmem %s34_s25, 1024  ;;  %p2679_p4 = scmp.lt.s32.totalorder %s34_s25, %s34_s25 }
   0xc   :  { %p2675_p3 = scmp.ne.s32.totalorder %s34_s25, %s2674_s12  ;;  %p2680_p5 = scmp.lt.s32.totalorder %s2674_s12, %s2674_s12 }
   0xe   :  { %p2681_p6 = por %p2680_p5, %p2679_p4 }
  0x10   :  { %p2682_p7 = pnand %p2681_p6, %p2675_p3 }
  0x12   :  { %2685 = shalt.err (!%p2682_p7)
}
  0x13   :  { %s2806_s13 = smov 128   ;;  %s2807_s14 = smov 8  }
  0x14   :  { %39 = dma.hbm_to_vmem [thread:$0]  %s3310_s1, 1024, %s34_s25, [#allocation7], %s2806_s13, %s2806_s13, %s2807_s14  }
  0x15   :  { %s2686_s19 = scalar_lea.hbm %s3312_s3, 256 }
  0x16   :  { %p2687_p8 = scmp.ne.s32.totalorder %s3312_s3, %s2686_s19  ;;  %p2690_p9 = scmp.lt.u32.totalorder %s2686_s19, %s3312_s3 }
  0x18   :  { %p2692_p10 = pnand %p2690_p9, %p2687_p8 }
  0x1a   :  { %2695 = shalt.err (!%p2692_p10)
}
  0x1b   :  { %s2696_s24 = scalar_lea.vmem %s2861_s27, 256  ;;  %p2701_p12 = scmp.lt.s32.totalorder %s2861_s27, %s2861_s27 }
  0x1c   :  { %p2697_p11 = scmp.ne.s32.totalorder %s2861_s27, %s2696_s24  ;;  %p2702_p13 = scmp.lt.s32.totalorder %s2696_s24, %s2696_s24 }
  0x1e   :  { %p2703_p0 = por %p2702_p13, %p2701_p12 }
  0x20   :  { %p2704_p1 = pnand %p2703_p0, %p2697_p11 }
  0x22   :  { %2707 = shalt.err (!%p2704_p1)
}
  0x23   :  { %s2808_s1 = smov 64   ;;  %s2809_s25 = smov 4  }
  0x24   :  { %63 = dma.hbm_to_vmem [thread:$0]  %s3312_s3, 256, %s2861_s27, [#allocation10], %s2808_s1, %s2808_s1, %s2809_s25  }
  0x25   :  { %s2810_s29 = smov [#allocation3]   ;;  %s2811_s8 = smov [#allocation8]  }
  0x26   :  { %s21_s30 = sshll.u32 %s2810_s29, 4  ;;  %s45_s9 = sshll.u32 %s2811_s8, 4  ;;  %s22_s30 = int_to_ptr.vmem [resolvable:$true] %s21_s30  ;;  %s2898_s9 = int_to_ptr.vmem [resolvable:$true] %s45_s9 }
  0x27   :  { %s2708_s12 = scalar_lea.hbm %s3309_s0, 512 }
  0x28   :  { %p2709_p2 = scmp.ne.s32.totalorder %s3309_s0, %s2708_s12  ;;  %p2712_p3 = scmp.lt.u32.totalorder %s2708_s12, %s3309_s0 }
  0x2a   :  { %p2714_p4 = pnand %p2712_p3, %p2709_p2 }
  0x2c   :  { %2717 = shalt.err (!%p2714_p4)
}
  0x2d   :  { %s2718_s3 = scalar_lea.vmem %s22_s30, 512  ;;  %p2723_p6 = scmp.lt.s32.totalorder %s22_s30, %s22_s30 }
  0x2e   :  { %p2719_p5 = scmp.ne.s32.totalorder %s22_s30, %s2718_s3  ;;  %p2724_p7 = scmp.lt.s32.totalorder %s2718_s3, %s2718_s3 }
  0x30   :  { %p2725_p8 = por %p2724_p7, %p2723_p6 }
  0x32   :  { %p2726_p9 = pnand %p2725_p8, %p2719_p5 }
  0x34   :  { %2729 = shalt.err (!%p2726_p9)
}
  0x35   :  { %27 = dma.hbm_to_vmem [thread:$0]  %s3309_s0, 512, %s22_s30, [#allocation4], %s2806_s13, %s2806_s13, %s2807_s14  }
  0x36   :  { %s2730_s22 = scalar_lea.hbm %s3311_s2, 1024 }
  0x37   :  { %p2731_p10 = scmp.ne.s32.totalorder %s3311_s2, %s2730_s22  ;;  %p2734_p11 = scmp.lt.u32.totalorder %s2730_s22, %s3311_s2 }
  0x39   :  { %p2736_p12 = pnand %p2734_p11, %p2731_p10 }
  0x3b   :  { %2739 = shalt.err (!%p2736_p12)
}
  0x3c   :  { %s2740_s29 = scalar_lea.vmem %s2898_s9, 1024  ;;  %p2745_p0 = scmp.lt.s32.totalorder %s2898_s9, %s2898_s9 }
  0x3d   :  { %p2741_p13 = scmp.ne.s32.totalorder %s2898_s9, %s2740_s29  ;;  %p2746_p1 = scmp.lt.s32.totalorder %s2740_s29, %s2740_s29 }
  0x3f   :  { %p2747_p2 = por %p2746_p1, %p2745_p0 }
  0x41   :  { %p2748_p3 = pnand %p2747_p2, %p2741_p13 }
  0x43   :  { %2751 = shalt.err (!%p2748_p3)
}
  0x44   :  { %51 = dma.hbm_to_vmem [thread:$0]  %s3311_s2, 1024, %s2898_s9, [#allocation7], %s2806_s13, %s2806_s13, %s2807_s14  }
  0x45   :  { %s2812_s8 = smov [#allocation11]   ;;  %s2752_s15 = scalar_lea.hbm %s3313_s4, 256 }
  0x46   :  { %s69_s10 = sshll.u32 %s2812_s8, 4  ;;  %p2753_p4 = scmp.ne.s32.totalorder %s3313_s4, %s2752_s15  ;;  %s70_s10 = int_to_ptr.vmem [resolvable:$true] %s69_s10 }
  0x47   :  { %p2756_p5 = scmp.lt.u32.totalorder %s2752_s15, %s3313_s4 }
  0x49   :  { %p2758_p6 = pnand %p2756_p5, %p2753_p4 }
  0x4b   :  { %2761 = shalt.err (!%p2758_p6)
}
  0x4c   :  { %s2762_s27 = scalar_lea.vmem %s70_s10, 256  ;;  %p2767_p8 = scmp.lt.s32.totalorder %s70_s10, %s70_s10 }
  0x4d   :  { %p2763_p7 = scmp.ne.s32.totalorder %s70_s10, %s2762_s27  ;;  %p2768_p9 = scmp.lt.s32.totalorder %s2762_s27, %s2762_s27 }
  0x4f   :  { %p2769_p10 = por %p2768_p9, %p2767_p8 }
  0x51   :  { %p2770_p11 = pnand %p2769_p10, %p2763_p7 }
  0x53   :  { %2773 = shalt.err (!%p2770_p11)
}
  0x54   :  { %75 = dma.hbm_to_vmem [thread:$0]  %s3313_s4, 256, %s70_s10, [#allocation10], %s2808_s1, %s2808_s1, %s2809_s25  }
  0x55   :  { %2796 = dma.done.wait [#allocation4], 512  }
  0x56   :  { %2797 = vsyncadd [#allocation4], 4294966784 }
  0x57   :  { %2798 = dma.done.wait [#allocation7], 2048  }
  0x58   :  { %2799 = vsyncadd [#allocation7], 4294965248 }
  0x59   :  { %2800 = dma.done.wait [#allocation10], 512  }
  0x5a   :  { %2801 = vsyncadd [#allocation10], 4294966784  ;;  %v2594_v0 = vld [vmem:[#allocation11] sm:$0xff]   ;;  %v2595_v1 = vld [vmem:[#allocation11 + $0x8] sm:$0xff]   ;;  %vm147_vm0 = vcmask 261120   ;;  %v2813_v36 = vmov 0.0   ;;  %v131_v37 = vlaneseq }
  0x5b   :  { %2361 = vmatprep.subr.bf16.mxu1 %v2594_v0  ;;  %v2596_v2 = vld [vmem:[#allocation9] sm:$0xff]   ;;  %v103_v4 = vld [vmem:[#allocation6 + $0x8] sm:$0xff]  ;;  %v104_v5 = vld [vmem:[#allocation6 + $0x10] sm:$0xff]  ;;  %vm2814_vm1 = vmmov 0   ;;  %vm409_vm2 = vcmask 64512   ;;  %vm594_vm3 = vcmask 130048  }
  0x5c   :  { %2362 = vmatpush3.bf16.msra.mxu1 %v2594_v0  ;;  %v102_v3 = vld [vmem:[#allocation6] sm:$0xff]  ;;  %2353 = vmatprep.subr.bf16.mxu0 %v2596_v2  ;;  %v105_v7 = vld [vmem:[#allocation6 + $0x18] sm:$0xff]  ;;  %v2597_v8 = vld [vmem:[#allocation9 + $0x8] sm:$0xff]   ;;  %v132_v38 = vshrl.u32 %v131_v37, 7  ;;  %s2816_s21 = smov 112   ;;  %s2817_s22 = smov 104  }
  0x5d   :  { %2363 = vmatprep.subr.bf16.mxu1 %v2595_v1  ;;  %v110_v6 = vpack.c.bf16 %v103_v4, %v102_v3  ;;  %2354 = vmatpush3.bf16.msra.mxu0 %v2596_v2  ;;  %v96_v9 = vld [vmem:[#allocation3] sm:$0xff]  ;;  %v97_v10 = vld [vmem:[#allocation3 + $0x8] sm:$0xff]  ;;  %v111_v11 = vpack.c.bf16 %v105_v7, %v104_v5  ;;  %v98_v13 = vld [vmem:[#allocation3 + $0x10] sm:$0xff]  ;;  %s2818_s23 = smov 16   ;;  %vm1279_vm4 = vcmask 130112   ;;  %vm1732_vm5 = vcmask 195712  }
  0x5e   :  { %v100_v12 = vpack.c.bf16 %v97_v10, %v96_v9  ;;  %v99_v14 = vld [vmem:[#allocation3 + $0x18] sm:$0xff]  ;;  %v106_v15 = vld [vmem:[#allocation6 + $0x20] sm:$0xff]  ;;  %2355 = vmatprep.subr.bf16.mxu0 %v2597_v8  ;;  %v107_v16 = vld [vmem:[#allocation6 + $0x28] sm:$0xff]  ;;  %v209_v39 = vsub.s32 1, %v132_v38  ;;  %v133_v42 = vsub.s32 0, %v132_v38  ;;  %v306_v52 = vsub.s32 2, %v132_v38 }
  0x5f   :  { %2365 = vmatprep.mubr.msk.bf16.mxu1 %vm147_vm0, %v110_v6  ;;  %v101_v17 = vpack.c.bf16 %v99_v14, %v98_v13  ;;  %v112_v18 = vpack.c.bf16 %v107_v16, %v106_v15  ;;  %v2598_v19 = vld [vmem:[%s3314_s5] sm:$0xff]   ;;  %v2599_v20 = vld [vmem:[%s3314_s5 + $0x8] sm:$0xff]   ;;  %v108_v23 = vld [vmem:[#allocation6 + $0x30] sm:$0xff]  ;;  %s2819_s24 = smov 24   ;;  %vm2185_vm6 = vcmask 261312   ;;  %s2820_s26 = smov [#allocation12]  }
  0x60   :  { %2364 = vmatpush3.bf16.msra.mxu1 %v2595_v1  ;;  %2357 = vmatprep.mubr.msk.bf16.mxu0 %vm147_vm0, %v100_v12  ;;  %v114_v21 = vld [vmem:[#allocation8] sm:$0xff]  ;;  %v115_v22 = vld [vmem:[#allocation8 + $0x8] sm:$0xff]  ;;  %v109_v24 = vld [vmem:[#allocation6 + $0x38] sm:$0xff]  ;;  %s2211_s28 = sshll.u32 %s2820_s26, 4  ;;  %s2212_s28 = int_to_ptr.vmem [resolvable:$true] %s2211_s28 }
  0x61   :  { %2356 = vmatpush3.bf16.msra.mxu0 %v2597_v8  ;;  %v122_v25 = vpack.c.bf16 %v115_v22, %v114_v21  ;;  %v116_v26 = vld [vmem:[#allocation8 + $0x10] sm:$0xff]  ;;  %v117_v27 = vld [vmem:[#allocation8 + $0x18] sm:$0xff]  ;;  %v113_v28 = vpack.c.bf16 %v109_v24, %v108_v23  ;;  %v118_v30 = vld [vmem:[#allocation8 + $0x20] sm:$0xff]  ;;  %2385 = vmatprep.subr.bf16.mxu1 %v2813_v36  ;;  %s2774_s29 = scalar_lea.vmem %s2212_s28, 512  ;;  %p2779_p13 = scmp.lt.s32.totalorder %s2212_s28, %s2212_s28 }
  0x62   :  { %2373 = vmatprep.subr.bf16.mxu0 %v2598_v19  ;;  %v123_v29 = vpack.c.bf16 %v117_v27, %v116_v26  ;;  %v119_v31 = vld [vmem:[#allocation8 + $0x28] sm:$0xff]  ;;  %v120_v33 = vld [vmem:[#allocation8 + $0x30] sm:$0xff]  ;;  %v121_v34 = vld [vmem:[#allocation8 + $0x38] sm:$0xff]  ;;  %p2775_p12 = scmp.ne.s32.totalorder %s2212_s28, %s2774_s29  ;;  %p2780_p0 = scmp.lt.s32.totalorder %s2774_s29, %s2774_s29 }
  0x63   :  { %2366 = vmatmul.mubr.msk.bf16.vlgmr.msra.gmra.mrb[0].mxu1 %vm147_vm0, %v111_v11  ;;  %v124_v32 = vpack.c.bf16 %v119_v31, %v118_v30  ;;  %v125_v35 = vpack.c.bf16 %v121_v34, %v120_v33  ;;  %v126_v40 = vld [vmem:[%s3315_s6] sm:$0x7]  ;;  %s2815_s6 = smov 120  }
  0x64   :  { %2369 = vmatprep.mubr.msk.bf16.mxu1 %vm147_vm0, %v112_v18  ;;  %2358 = vmatmul.mubr.msk.bf16.vlgmr.msra.gmra.mrb[0].mxu0 %vm147_vm0, %v101_v17  ;;  %v210_v41 = vrot.slane %v126_v40, %v209_v39  ;;  %v134_v50 = vrot.slane %v126_v40, %v133_v42  ;;  %v307_v61 = vrot.slane %v126_v40, %v306_v52  ;;  %p2781_p1 = por %p2780_p0, %p2779_p13 }
  0x65   :  { %2374 = vmatpush3.bf16.msra.mxu0 %v2598_v19  ;;  %2377 = vmatprep.mubr.msk.bf16.mxu0 %vm147_vm0, %v122_v25 }
  0x66   :  { %2375 = vmatprep.subr.bf16.mxu0 %v2599_v20  ;;  %p2782_p2 = pnand %p2781_p1, %p2775_p12 }
  0x69   :  { %2376 = vmatpush3.bf16.msra.mxu0 %v2599_v20 }
  0x6a   :  { %2391 = vmatprep.subr.bf16.mxu0 %v2813_v36 }
  0x6b   :  { %2370 = vmatmul.mubr.msk.bf16.gmra.mrb[4].mxu1 %vm147_vm0, %v113_v28 }
  0x6c   :  { %2378 = vmatmul.mubr.msk.bf16.vlgmr.msra.gmra.mrb[4].mxu0 %vm147_vm0, %v123_v29  ;;  %2387 = vmatprep.mubr.msk.bf16.mxu1 %vm2814_vm1, %v2813_v36 }
  0x6d   :  { %2381 = vmatprep.mubr.msk.bf16.mxu0 %vm147_vm0, %v124_v32 }
  0x74   :  { %2382 = vmatmul.mubr.msk.bf16.gmra.mrb[8].mxu0 %vm147_vm0, %v125_v35 }
  0x75   :  { %2393 = vmatprep.mubr.msk.bf16.mxu0 %vm2814_vm1, %v2813_v36 }
 0x136   :  { %v2367_v43 = vpop.f32.mrb[0].mxu1 }
 0x137   :  { %v269_v44 = vpop.f32.mrb[1].mxu1  ;;  %v2359_v46 = vpop.f32.mrb[0].mxu0  ;;  %v278_v47 = vadd.f32 %v2367_v43, %v210_v41 }
 0x138   :  { %v2368_v45 = vpop.f32.mrb[2].mxu1  ;;  %v188_v51 = vpop.f32.mrb[1].mxu0  ;;  %v270_v53 = vadd.f32 %v269_v44, %v210_v41  ;;  %v197_v25 = vadd.f32 %v2359_v46, %v134_v50 }
 0x139   :  { %v281_v48 = vadd.f32 %v2368_v45, %v210_v41  ;;  %v272_v49 = vpop.f32.mrb[3].mxu1  ;;  %v2360_v55 = vpop.f32.mrb[2].mxu0  ;;  %v189_v62 = vadd.f32 %v188_v51, %v134_v50 }
 0x13a   :  { %v273_v54 = vadd.f32 %v272_v49, %v210_v41  ;;  %v191_v57 = vpop.f32.mrb[3].mxu0  ;;  %v200_v24 = vadd.f32 %v2360_v55, %v134_v50  ;;  %v3013_v27 = vpack.c.bf16 %v197_v25, %v197_v25 }
 0x13b   :  { %v2975_v56 = vpack.c.bf16 %v281_v48, %v278_v47  ;;  %v192_v60 = vadd.f32 %v191_v57, %v134_v50  ;;  %v2987_v10 = vpack.c.bf16 %v189_v62, %v189_v62 }
 0x13c   :  { %v2977_v58 = vpack.c.bf16 %v273_v54, %v270_v53  ;;  %v3011_v26 = vpack.c.bf16 %v200_v24, %v200_v24 }
 0x13d   :  { %v460_v59 = vsel %vm409_vm2, %v2975_v56, 0  ;;  %v2985_v5 = vpack.c.bf16 %v192_v60, %v192_v60 }
 0x13e   :  { %v2371_v63 = vpop.f32.mrb[4].mxu1  ;;  %2392 = vmatpush3.bf16.xpose.msra.mxu0 %v460_v59  ;;  %v414_v0 = vsel %vm409_vm2, %v2977_v58, 0 }
 0x13f   :  { %v285_v1 = vpop.f32.mrb[5].mxu1  ;;  %2386 = vmatpush3.bf16.xpose.msra.mxu1 %v414_v0  ;;  %2403 = vmatprep.subr.bf16.mxu0 %v2813_v36  ;;  %v2379_v3 = vpop.f32.mrb[4].mxu0  ;;  %v294_v4 = vadd.f32 %v2371_v63, %v210_v41 }
 0x140   :  { %v2372_v2 = vpop.f32.mrb[6].mxu1  ;;  %2397 = vmatprep.subr.bf16.mxu1 %v2813_v36  ;;  %v375_v8 = vadd.f32 %v2379_v3, %v307_v61  ;;  %v366_v9 = vpop.f32.mrb[5].mxu0  ;;  %v286_v11 = vadd.f32 %v285_v1, %v210_v41 }
 0x141   :  { %v297_v6 = vadd.f32 %v2372_v2, %v210_v41  ;;  %v288_v7 = vpop.f32.mrb[7].mxu1  ;;  %v367_v13 = vadd.f32 %v366_v9, %v307_v61  ;;  %v2380_v14 = vpop.f32.mrb[6].mxu0 }
 0x142   :  { %v289_v12 = vadd.f32 %v288_v7, %v210_v41  ;;  %v378_v16 = vadd.f32 %v2380_v14, %v307_v61  ;;  %v369_v17 = vpop.f32.mrb[7].mxu0 }
 0x143   :  { %v2989_v15 = vpack.c.bf16 %v297_v6, %v294_v4  ;;  %v370_v19 = vadd.f32 %v369_v17, %v307_v61 }
 0x144   :  { %v2991_v18 = vpack.c.bf16 %v289_v12, %v286_v11  ;;  %v2997_v21 = vpack.c.bf16 %v378_v16, %v375_v8 }
 0x145   :  { %2394 = vmatmul.mubr.msk.bf16.vlgmr.msra.gmra.mrb[12].mxu0 %vm409_vm2, %v2985_v5  ;;  %v552_v20 = vsel %vm409_vm2, %v2989_v15, 0  ;;  %v3003_v23 = vpack.c.bf16 %v370_v19, %v367_v13 }
 0x146   :  { %2388 = vmatmul.mubr.msk.bf16.vlgmr.msra.gmra.mrb[8].mxu1 %vm409_vm2, %v2987_v10  ;;  %2404 = vmatpush3.bf16.xpose.msra.mxu0 %v552_v20  ;;  %v506_v22 = vsel %vm409_vm2, %v2991_v18, 0 }
 0x147   :  { %2398 = vmatpush3.bf16.xpose.msra.mxu1 %v506_v22  ;;  %2405 = vmatprep.mubr.msk.bf16.mxu0 %vm2814_vm1, %v2813_v36  ;;  %v2383_v28 = vpop.f32.mrb[8].mxu0 }
 0x148   :  { %2399 = vmatprep.mubr.msk.bf16.mxu1 %vm2814_vm1, %v2813_v36  ;;  %2409 = vmatprep.subr.bf16.mxu1 %v2813_v36  ;;  %v391_v29 = vadd.f32 %v2383_v28, %v307_v61  ;;  %v382_v30 = vpop.f32.mrb[9].mxu0 }
 0x149   :  { %2415 = vmatprep.subr.bf16.mxu0 %v2813_v36  ;;  %v383_v31 = vadd.f32 %v382_v30, %v307_v61  ;;  %v2384_v32 = vpop.f32.mrb[10].mxu0 }
 0x14a   :  { %v394_v33 = vadd.f32 %v2384_v32, %v307_v61  ;;  %v385_v34 = vpop.f32.mrb[11].mxu0 }
 0x14b   :  { %v386_v35 = vadd.f32 %v385_v34, %v307_v61 }
 0x14c   :  { %v3027_v37 = vpack.c.bf16 %v394_v33, %v391_v29 }
 0x14d   :  { %2406 = vmatmul.mubr.msk.bf16.vlgmr.msra.gmra.mrb[16].mxu0 %vm409_vm2, %v3011_v26  ;;  %v3029_v38 = vpack.c.bf16 %v386_v35, %v383_v31 }
 0x14e   :  { %2400 = vmatmul.mubr.msk.bf16.vlgmr.msra.gmra.mrb[12].mxu1 %vm409_vm2, %v3013_v27  ;;  %2416 = vmatpush3.bf16.msra.mxu0 %v2997_v21 }
 0x14f   :  { %2410 = vmatpush3.bf16.msra.mxu1 %v3003_v23  ;;  %2411 = vmatprep.mubr.msk.bf16.mxu1 %vm2814_vm1, %v2813_v36 }
 0x150   :  { %2421 = vmatprep.subr.bf16.mxu1 %v2813_v36  ;;  %2417 = vmatprep.mubr.msk.bf16.mxu0 %vm2814_vm1, %v2813_v36 }
 0x151   :  { %2427 = vmatprep.subr.bf16.mxu0 %v2813_v36 }
 0x218   :  { %v496_v39 = vpop.f32.mrb[12].mxu0 }
 0x219   :  { %v450_v40 = vpop.f32.mrb[8].mxu1  ;;  %v2395_v41 = vpop.f32.mrb[13].mxu0  ;;  %v598_v48 = vsel %vm594_vm3, %v496_v39, -inf }
 0x21a   :  { %v2389_v42 = vpop.f32.mrb[9].mxu1  ;;  %v499_v43 = vpop.f32.mrb[14].mxu0  ;;  %v595_v44 = vsel %vm594_vm3, %v450_v40, -inf }
 0x21b   :  { %596 = vmax.xlane.f32.xlu0 %v595_v44  ;;  %v453_v45 = vpop.f32.mrb[10].mxu1  ;;  %v2396_v46 = vpop.f32.mrb[15].mxu0 }
 0x21c   :  { %v2390_v47 = vpop.f32.mrb[11].mxu1 }
 0x21f   :  { %599 = vmax.xlane.f32.xlu0 %v598_v48 }
 0x220   :  { %v588_v49 = vpop.f32.mrb[16].mxu0 }
 0x221   :  { %v542_v50 = vpop.f32.mrb[12].mxu1  ;;  %v2407_v51 = vpop.f32.mrb[17].mxu0  ;;  %v604_v60 = vsel %vm594_vm3, %v588_v49, -inf }
 0x222   :  { %v2401_v52 = vpop.f32.mrb[13].mxu1  ;;  %v591_v53 = vpop.f32.mrb[18].mxu0  ;;  %v601_v54 = vsel %vm594_vm3, %v542_v50, -inf }
 0x223   :  { %v2408_v55 = vpop.f32.mrb[19].mxu0  ;;  %602 = vmax.xlane.f32.xlu1 %v601_v54  ;;  %v545_v57 = vpop.f32.mrb[14].mxu1 }
 0x224   :  { %v2402_v59 = vpop.f32.mrb[15].mxu1 }
 0x227   :  { %605 = vmax.xlane.f32.xlu1 %v604_v60 }
 0x2a8   :  { %v597_v61 = vpop.xlane.xlu0 %596 }
 0x2a9   :  { %v607_v62 = vsub.f32 %v450_v40, %v597_v61 }
 0x2ab   :  { %v611_v63 = vmul.f32 1.442695, %v607_v62 }
 0x2ac   :  { %v600_v0 = vpop.xlane.xlu0 %599 }
 0x2ad   :  { %2600 = vpow2.f32 %v611_v63  ;;  %v608_v1 = vsub.f32 %v496_v39, %v600_v0 }
 0x2af   :  { %v613_v2 = vmul.f32 1.442695, %v608_v1 }
 0x2b0   :  { %v603_v3 = vpop.xlane.xlu1 %602 }
 0x2b1   :  { %2602 = vpow2.f32 %v613_v2  ;;  %v609_v4 = vsub.f32 %v542_v50, %v603_v3 }
 0x2b3   :  { %v615_v6 = vmul.f32 1.442695, %v609_v4 }
 0x2b4   :  { %v606_v7 = vpop.xlane.xlu1 %605 }
 0x2b5   :  { %2604 = vpow2.f32 %v615_v6  ;;  %v610_v8 = vsub.f32 %v588_v49, %v606_v7 }
 0x2b7   :  { %v2601_v9 = vpop.eup %2600  ;;  %v617_v11 = vmul.f32 1.442695, %v610_v8 }
 0x2b8   :  { %v619_v12 = vsel %vm594_vm3, %v2601_v9, 0.0 }
 0x2b9   :  { %2606 = vpow2.f32 %v617_v11  ;;  %620 = vadd.xlane.f32.xlu0 %v619_v12 }
 0x2bb   :  { %v2603_v13 = vpop.eup %2602 }
 0x2bc   :  { %v622_v14 = vsel %vm594_vm3, %v2603_v13, 0.0 }
 0x2bd   :  { %623 = vadd.xlane.f32.xlu1 %v622_v14 }
 0x2bf   :  { %v2605_v16 = vpop.eup %2604 }
 0x2c0   :  { %v625_v17 = vsel %vm594_vm3, %v2605_v16, 0.0 }
 0x2c1   :  { %626 = vadd.xlane.f32.xlu0 %v625_v17 }
 0x2c3   :  { %v2607_v19 = vpop.eup %2606 }
 0x2c4   :  { %v628_v20 = vsel %vm594_vm3, %v2607_v19, 0.0 }
 0x2c5   :  { %629 = vadd.xlane.f32.xlu1 %v628_v20 }
 0x2d6   :  { %875 = vrot.lane.b32.xlu1 %v2975_v56, %s2815_s6 }
 0x2d7   :  { %823 = vrot.lane.b32.xlu0 %v2977_v58, %s2815_s6 }
 0x2da   :  { %820 = vrot.lane.b32.xlu1 %v2987_v10, %s2815_s6 }
 0x2db   :  { %927 = vrot.lane.b32.xlu0 %v2991_v18, %s2815_s6 }
 0x2de   :  { %872 = vrot.lane.b32.xlu1 %v2985_v5, %s2815_s6 }
 0x2df   :  { %924 = vrot.lane.b32.xlu0 %v3013_v27, %s2815_s6 }
 0x2e2   :  { %979 = vrot.lane.b32.xlu1 %v2989_v15, %s2815_s6 }
 0x2e6   :  { %976 = vrot.lane.b32.xlu1 %v3011_v26, %s2815_s6 }
 0x346   :  { %v621_v22 = vpop.xlane.xlu0 %620 }
 0x347   :  { %2608 = vrcp.f32 %v621_v22 }
 0x34a   :  { %v624_v24 = vpop.xlane.xlu1 %623 }
 0x34b   :  { %2610 = vrcp.f32 %v624_v24 }
 0x34e   :  { %v627_v25 = vpop.xlane.xlu0 %626 }
 0x34f   :  { %2612 = vrcp.f32 %v627_v25 }
 0x351   :  { %v2609_v28 = vpop.eup %2608 }
 0x352   :  { %v635_v29 = vmul.f32 %v2609_v28, %v2601_v9  ;;  %v630_v30 = vpop.xlane.xlu1 %629  ;;  %v824_v41 = vpop.permute.xlu0 %823 }
 0x353   :  { %2614 = vrcp.f32 %v630_v30  ;;  %v829_v46 = vsel %vm409_vm2, %v824_v41, 0 }
 0x354   :  { %v639_v31 = vpack.c.bf16 %v635_v29, %v635_v29 }
 0x355   :  { %v2611_v32 = vpop.eup %2610 }
 0x356   :  { %v636_v33 = vmul.f32 %v2611_v32, %v2603_v13  ;;  %2412 = vmatmul.mubr.msk.bf16.vlgmr.msra.gmra.mrb[16].mxu1 %vm594_vm3, %v639_v31  ;;  %v876_v34 = vpop.permute.xlu1 %875  ;;  %v928_v50 = vpop.permute.xlu0 %927 }
 0x357   :  { %2422 = vmatpush3.bf16.msra.mxu1 %v3029_v38  ;;  %2423 = vmatprep.mubr.msk.bf16.mxu1 %vm2814_vm1, %v2813_v36  ;;  %v881_v49 = vsel %vm409_vm2, %v876_v34, 0  ;;  %v933_v51 = vsel %vm409_vm2, %v928_v50, 0 }
 0x358   :  { %v640_v35 = vpack.c.bf16 %v636_v33, %v636_v33  ;;  %2433 = vmatprep.subr.bf16.mxu1 %v2813_v36 }
 0x359   :  { %v2613_v39 = vpop.eup %2612 }
 0x35a   :  { %v637_v40 = vmul.f32 %v2613_v39, %v2605_v16  ;;  %2418 = vmatmul.mubr.msk.bf16.vlgmr.msra.gmra.mrb[20].mxu0 %vm594_vm3, %v640_v35  ;;  %v821_v42 = vpop.permute.xlu1 %820  ;;  %v925_v54 = vpop.permute.xlu0 %924 }
 0x35b   :  { %2428 = vmatpush3.bf16.msra.mxu0 %v3027_v37  ;;  %2429 = vmatprep.mubr.msk.bf16.mxu0 %vm2814_vm1, %v2813_v36 }
 0x35c   :  { %v641_v43 = vpack.c.bf16 %v637_v40, %v637_v40  ;;  %2439 = vmatprep.subr.bf16.mxu0 %v2813_v36 }
 0x35d   :  { %v2615_v44 = vpop.eup %2614 }
 0x35e   :  { %v638_v45 = vmul.f32 %v2615_v44, %v2607_v19  ;;  %2424 = vmatmul.mubr.msk.bf16.vlgmr.msra.gmra.mrb[20].mxu1 %vm594_vm3, %v641_v43  ;;  %v873_v48 = vpop.permute.xlu1 %872 }
 0x35f   :  { %2435 = vmatprep.mubr.msk.bf16.mxu1 %vm2814_vm1, %v2813_v36 }
 0x360   :  { %2434 = vmatpush3.bf16.xpose.msra.mxu1 %v829_v46  ;;  %v642_v47 = vpack.c.bf16 %v638_v45, %v638_v45 }
 0x361   :  { %2445 = vmatprep.subr.bf16.mxu1 %v2813_v36 }
 0x362   :  { %2430 = vmatmul.mubr.msk.bf16.vlgmr.msra.gmra.mrb[24].mxu0 %vm594_vm3, %v642_v47  ;;  %v980_v52 = vpop.permute.xlu1 %979 }
 0x363   :  { %2441 = vmatprep.mubr.msk.bf16.mxu0 %vm2814_vm1, %v2813_v36  ;;  %v985_v53 = vsel %vm409_vm2, %v980_v52, 0 }
 0x364   :  { %2440 = vmatpush3.bf16.xpose.msra.mxu0 %v881_v49 }
 0x365   :  { %2451 = vmatprep.subr.bf16.mxu0 %v2813_v36 }
 0x366   :  { %v977_v55 = vpop.permute.xlu1 %976 }
 0x367   :  { %2436 = vmatmul.mubr.msk.bf16.vlgmr.msra.gmra.mrb[24].mxu1 %vm409_vm2, %v821_v42 }
 0x368   :  { %2446 = vmatpush3.bf16.xpose.msra.mxu1 %v933_v51  ;;  %2447 = vmatprep.mubr.msk.bf16.mxu1 %vm2814_vm1, %v2813_v36 }
 0x369   :  { %2457 = vmatprep.subr.bf16.mxu1 %v2813_v36 }
 0x36b   :  { %2442 = vmatmul.mubr.msk.bf16.vlgmr.msra.gmra.mrb[28].mxu0 %vm409_vm2, %v873_v48 }
 0x36c   :  { %2452 = vmatpush3.bf16.xpose.msra.mxu0 %v985_v53  ;;  %2453 = vmatprep.mubr.msk.bf16.mxu0 %vm2814_vm1, %v2813_v36 }
 0x36d   :  { %2463 = vmatprep.subr.bf16.mxu0 %v2813_v36 }
 0x36f   :  { %2448 = vmatmul.mubr.msk.bf16.vlgmr.msra.gmra.mrb[28].mxu1 %vm409_vm2, %v925_v54 }
 0x370   :  { %2459 = vmatprep.mubr.msk.bf16.mxu1 %vm2814_vm1, %v2813_v36 }
 0x373   :  { %2454 = vmatmul.mubr.msk.bf16.vlgmr.msra.gmra.mrb[32].mxu0 %vm409_vm2, %v977_v55 }
 0x374   :  { %2465 = vmatprep.mubr.msk.bf16.mxu0 %vm2814_vm1, %v2813_v36 }
 0x429   :  { %v680_v57 = vpop.f32.mrb[16].mxu1 }
 0x42a   :  { %815 = vst.msk [vmem:[#allocation2] sm:$0xff] %vm409_vm2, %v680_v57  ;;  %v2413_v59 = vpop.f32.mrb[17].mxu1 }
 0x42b   :  { %v683_v60 = vpop.f32.mrb[18].mxu1 }
 0x42c   :  { %v2414_v61 = vpop.f32.mrb[19].mxu1 }
 0x42d   :  { %v723_v62 = vpop.f32.mrb[20].mxu0 }
 0x42e   :  { %816 = vst.msk [vmem:[#allocation2 + $0x8] sm:$0xff] %vm409_vm2, %v723_v62  ;;  %v2419_v63 = vpop.f32.mrb[21].mxu0 }
 0x42f   :  { %v726_v0 = vpop.f32.mrb[22].mxu0 }
 0x430   :  { %v2420_v1 = vpop.f32.mrb[23].mxu0 }
 0x431   :  { %v766_v2 = vpop.f32.mrb[20].mxu1 }
 0x432   :  { %817 = vst.msk [vmem:[#allocation2 + $0x10] sm:$0xff] %vm409_vm2, %v766_v2  ;;  %v2425_v3 = vpop.f32.mrb[21].mxu1 }
 0x433   :  { %v769_v4 = vpop.f32.mrb[22].mxu1 }
 0x434   :  { %v2426_v6 = vpop.f32.mrb[23].mxu1 }
 0x435   :  { %v809_v7 = vpop.f32.mrb[24].mxu0 }
 0x436   :  { %818 = vst.msk [vmem:[#allocation2 + $0x18] sm:$0xff] %vm409_vm2, %v809_v7  ;;  %v2431_v8 = vpop.f32.mrb[25].mxu0 }
 0x437   :  { %v812_v9 = vpop.f32.mrb[26].mxu0 }
 0x438   :  { %v2432_v11 = vpop.f32.mrb[27].mxu0 }
 0x43a   :  { %v865_v12 = vpop.f32.mrb[24].mxu1 }
 0x43b   :  { %v2437_v13 = vpop.f32.mrb[25].mxu1  ;;  %v1027_v14 = vsel %vm594_vm3, %v865_v12, -inf }
 0x43c   :  { %1028 = vmax.xlane.f32.xlu0 %v1027_v14  ;;  %v868_v16 = vpop.f32.mrb[26].mxu1 }
 0x43d   :  { %v2438_v17 = vpop.f32.mrb[27].mxu1 }
 0x43e   :  { %v917_v19 = vpop.f32.mrb[28].mxu0 }
 0x43f   :  { %v2443_v20 = vpop.f32.mrb[29].mxu0  ;;  %v1030_v22 = vsel %vm594_vm3, %v917_v19, -inf }
 0x440   :  { %1031 = vmax.xlane.f32.xlu1 %v1030_v22  ;;  %v920_v24 = vpop.f32.mrb[30].mxu0 }
 0x441   :  { %v2444_v25 = vpop.f32.mrb[31].mxu0 }
 0x442   :  { %v969_v28 = vpop.f32.mrb[28].mxu1 }
 0x443   :  { %v2449_v29 = vpop.f32.mrb[29].mxu1  ;;  %v1033_v30 = vsel %vm594_vm3, %v969_v28, -inf }
 0x444   :  { %1034 = vmax.xlane.f32.xlu0 %v1033_v30  ;;  %v972_v31 = vpop.f32.mrb[30].mxu1 }
 0x445   :  { %v2450_v32 = vpop.f32.mrb[31].mxu1 }
 0x446   :  { %v1021_v33 = vpop.f32.mrb[32].mxu0 }
 0x447   :  { %v2455_v34 = vpop.f32.mrb[33].mxu0  ;;  %v1036_v35 = vsel %vm594_vm3, %v1021_v33, -inf }
 0x448   :  { %v1024_v39 = vpop.f32.mrb[34].mxu0  ;;  %1037 = vmax.xlane.f32.xlu0 %v1036_v35 }
 0x449   :  { %v2456_v40 = vpop.f32.mrb[35].mxu0 }
 0x4c9   :  { %v1029_v41 = vpop.xlane.xlu0 %1028 }
 0x4ca   :  { %v1039_v42 = vsub.f32 %v865_v12, %v1029_v41 }
 0x4cc   :  { %v1043_v43 = vmul.f32 1.442695, %v1039_v42 }
 0x4cd   :  { %v1032_v44 = vpop.xlane.xlu1 %1031 }
 0x4ce   :  { %2616 = vpow2.f32 %v1043_v43  ;;  %v1040_v45 = vsub.f32 %v917_v19, %v1032_v44 }
 0x4d0   :  { %v1045_v46 = vmul.f32 1.442695, %v1040_v45 }
 0x4d1   :  { %v1035_v51 = vpop.xlane.xlu0 %1034 }
 0x4d2   :  { %2618 = vpow2.f32 %v1045_v46  ;;  %v1041_v52 = vsub.f32 %v969_v28, %v1035_v51 }
 0x4d4   :  { %v1047_v53 = vmul.f32 1.442695, %v1041_v52 }
 0x4d5   :  { %v1038_v54 = vpop.xlane.xlu0 %1037 }
 0x4d6   :  { %2620 = vpow2.f32 %v1047_v53  ;;  %v1042_v55 = vsub.f32 %v1021_v33, %v1038_v54 }
 0x4d8   :  { %v2617_v47 = vpop.eup %2616  ;;  %v1049_v57 = vmul.f32 1.442695, %v1042_v55 }
 0x4d9   :  { %v1051_v48 = vsel %vm594_vm3, %v2617_v47, 0.0 }
 0x4da   :  { %1052 = vadd.xlane.f32.xlu0 %v1051_v48  ;;  %2622 = vpow2.f32 %v1049_v57 }
 0x4dc   :  { %v2619_v49 = vpop.eup %2618 }
 0x4dd   :  { %v1054_v50 = vsel %vm594_vm3, %v2619_v49, 0.0 }
 0x4de   :  { %1055 = vadd.xlane.f32.xlu1 %v1054_v50 }
 0x4e0   :  { %v2621_v59 = vpop.eup %2620 }
 0x4e1   :  { %v1057_v60 = vsel %vm594_vm3, %v2621_v59, 0.0 }
 0x4e4   :  { %v2623_v61 = vpop.eup %2622 }
 0x4e5   :  { %v1060_v62 = vsel %vm594_vm3, %v2623_v61, 0.0 }
 0x4ef   :  { %1123 = vrot.lane.b32.xlu1 %v2997_v21, %s2815_s6 }
 0x4f0   :  { %1076 = vrot.lane.b32.xlu0 %v3003_v23, %s2815_s6 }
 0x4f3   :  { %1170 = vrot.lane.b32.xlu1 %v3029_v38, %s2815_s6 }
 0x4f7   :  { %1217 = vrot.lane.b32.xlu1 %v3027_v37, %s2815_s6 }
 0x50f   :  { %1058 = vadd.xlane.f32.xlu0 %v1057_v60 }
 0x51b   :  { %1061 = vadd.xlane.f32.xlu1 %v1060_v62 }
 0x525   :  { %1286 = vrot.lane.b32.xlu0 %v2977_v58, %s2816_s21 }
 0x529   :  { %1284 = vrot.lane.b32.xlu0 %v2987_v10, %s2816_s21 }
 0x52c   :  { %1336 = vrot.lane.b32.xlu1 %v2975_v56, %s2816_s21 }
 0x52d   :  { %1386 = vrot.lane.b32.xlu0 %v2991_v18, %s2816_s21 }
 0x530   :  { %1334 = vrot.lane.b32.xlu1 %v2985_v5, %s2816_s21 }
 0x531   :  { %1384 = vrot.lane.b32.xlu0 %v3013_v27, %s2816_s21 }
 0x534   :  { %1436 = vrot.lane.b32.xlu1 %v2989_v15, %s2816_s21 }
 0x538   :  { %1434 = vrot.lane.b32.xlu1 %v3011_v26, %s2816_s21 }
 0x567   :  { %v1053_v63 = vpop.xlane.xlu0 %1052 }
 0x568   :  { %2624 = vrcp.f32 %v1053_v63 }
 0x56b   :  { %v1056_v0 = vpop.xlane.xlu1 %1055  ;;  %v1077_v1 = vpop.permute.xlu0 %1076 }
 0x56c   :  { %2626 = vrcp.f32 %v1056_v0  ;;  %2458 = vmatpush3.bf16.msra.mxu1 %v1077_v1 }
 0x56d   :  { %2469 = vmatprep.subr.bf16.mxu1 %v2813_v36 }
 0x56f   :  { %v1124_v2 = vpop.permute.xlu1 %1123 }
 0x570   :  { %2464 = vmatpush3.bf16.msra.mxu0 %v1124_v2 }
 0x571   :  { %2475 = vmatprep.subr.bf16.mxu0 %v2813_v36 }
 0x572   :  { %v2625_v3 = vpop.eup %2624 }
 0x573   :  { %v1067_v4 = vmul.f32 %v2625_v3, %v2617_v47  ;;  %v1171_v6 = vpop.permute.xlu1 %1170 }
 0x575   :  { %v1071_v7 = vpack.c.bf16 %v1067_v4, %v1067_v4 }
 0x576   :  { %v2627_v8 = vpop.eup %2626 }
 0x577   :  { %v1068_v9 = vmul.f32 %v2627_v8, %v2619_v49  ;;  %2460 = vmatmul.mubr.msk.bf16.vlgmr.msra.gmra.mrb[32].mxu1 %vm594_vm3, %v1071_v7  ;;  %v1218_v12 = vpop.permute.xlu1 %1217 }
 0x578   :  { %2470 = vmatpush3.bf16.msra.mxu1 %v1171_v6  ;;  %2471 = vmatprep.mubr.msk.bf16.mxu1 %vm2814_vm1, %v2813_v36 }
 0x579   :  { %v1072_v11 = vpack.c.bf16 %v1068_v9, %v1068_v9  ;;  %2481 = vmatprep.subr.bf16.mxu1 %v2813_v36 }
 0x57b   :  { %2466 = vmatmul.mubr.msk.bf16.vlgmr.msra.gmra.mrb[36].mxu0 %vm594_vm3, %v1072_v11 }
 0x57c   :  { %2476 = vmatpush3.bf16.msra.mxu0 %v1218_v12  ;;  %2477 = vmatprep.mubr.msk.bf16.mxu0 %vm2814_vm1, %v2813_v36 }
 0x57d   :  { %2487 = vmatprep.subr.bf16.mxu0 %v2813_v36 }
 0x59c   :  { %v1059_v13 = vpop.xlane.xlu0 %1058 }
 0x59d   :  { %2628 = vrcp.f32 %v1059_v13 }
 0x5a0   :  { %v1287_v14 = vpop.permute.xlu0 %1286 }
 0x5a1   :  { %v1292_v24 = vsel %vm409_vm2, %v1287_v14, 0 }
 0x5a4   :  { %v1285_v22 = vpop.permute.xlu0 %1284 }
 0x5a7   :  { %v2629_v16 = vpop.eup %2628 }
 0x5a8   :  { %v1069_v17 = vmul.f32 %v2629_v16, %v2621_v59  ;;  %v1062_v19 = vpop.xlane.xlu1 %1061  ;;  %v1387_v25 = vpop.permute.xlu0 %1386 }
 0x5a9   :  { %2630 = vrcp.f32 %v1062_v19  ;;  %v1392_v31 = vsel %vm409_vm2, %v1387_v25, 0 }
 0x5aa   :  { %v1073_v20 = vpack.c.bf16 %v1069_v17, %v1069_v17 }
 0x5ac   :  { %2472 = vmatmul.mubr.msk.bf16.vlgmr.msra.gmra.mrb[36].mxu1 %vm594_vm3, %v1073_v20  ;;  %v1337_v28 = vpop.permute.xlu1 %1336  ;;  %v1385_v35 = vpop.permute.xlu0 %1384 }
 0x5ad   :  { %2482 = vmatpush3.bf16.xpose.msra.mxu1 %v1292_v24  ;;  %2483 = vmatprep.mubr.msk.bf16.mxu1 %vm2814_vm1, %v2813_v36  ;;  %v1342_v34 = vsel %vm409_vm2, %v1337_v28, 0 }
 0x5ae   :  { %2493 = vmatprep.subr.bf16.mxu1 %v2813_v36 }
 0x5b0   :  { %v1335_v33 = vpop.permute.xlu1 %1334 }
 0x5b3   :  { %v2631_v29 = vpop.eup %2630 }
 0x5b4   :  { %v1070_v30 = vmul.f32 %v2631_v29, %v2623_v61  ;;  %2484 = vmatmul.mubr.msk.bf16.vlgmr.msra.gmra.mrb[40].mxu1 %vm409_vm2, %v1285_v22  ;;  %v1437_v39 = vpop.permute.xlu1 %1436 }
 0x5b5   :  { %2494 = vmatpush3.bf16.xpose.msra.mxu1 %v1392_v31  ;;  %2495 = vmatprep.mubr.msk.bf16.mxu1 %vm2814_vm1, %v2813_v36  ;;  %v1442_v40 = vsel %vm409_vm2, %v1437_v39, 0 }
 0x5b6   :  { %v1074_v32 = vpack.c.bf16 %v1070_v30, %v1070_v30  ;;  %2505 = vmatprep.subr.bf16.mxu1 %v2813_v36 }
 0x5b8   :  { %2478 = vmatmul.mubr.msk.bf16.vlgmr.msra.gmra.mrb[40].mxu0 %vm594_vm3, %v1074_v32  ;;  %v1435_v41 = vpop.permute.xlu1 %1434 }
 0x5b9   :  { %2488 = vmatpush3.bf16.xpose.msra.mxu0 %v1342_v34  ;;  %2489 = vmatprep.mubr.msk.bf16.mxu0 %vm2814_vm1, %v2813_v36 }
 0x5ba   :  { %2499 = vmatprep.subr.bf16.mxu0 %v2813_v36 }
 0x5bc   :  { %2496 = vmatmul.mubr.msk.bf16.vlgmr.msra.gmra.mrb[44].mxu1 %vm409_vm2, %v1385_v35 }
 0x5bd   :  { %2507 = vmatprep.mubr.msk.bf16.mxu1 %vm2814_vm1, %v2813_v36 }
 0x5c0   :  { %2490 = vmatmul.mubr.msk.bf16.vlgmr.msra.gmra.mrb[44].mxu0 %vm409_vm2, %v1335_v33 }
 0x5c1   :  { %2500 = vmatpush3.bf16.xpose.msra.mxu0 %v1442_v40  ;;  %2501 = vmatprep.mubr.msk.bf16.mxu0 %vm2814_vm1, %v2813_v36 }
 0x5c2   :  { %2511 = vmatprep.subr.bf16.mxu0 %v2813_v36 }
 0x5c8   :  { %2502 = vmatmul.mubr.msk.bf16.vlgmr.msra.gmra.mrb[48].mxu0 %vm409_vm2, %v1435_v41 }
 0x5c9   :  { %2513 = vmatprep.mubr.msk.bf16.mxu0 %vm2814_vm1, %v2813_v36 }
 0x64a   :  { %v3163_v42 = vpop.f32.mrb[32].mxu1 }
 0x64b   :  { %v2461_v43 = vpop.f32.mrb[33].mxu1 }
 0x64c   :  { %v1119_v44 = vpop.f32.mrb[34].mxu1 }
 0x64d   :  { %v2462_v45 = vpop.f32.mrb[35].mxu1 }
 0x64e   :  { %v3165_v46 = vpop.f32.mrb[36].mxu0 }
 0x64f   :  { %v2467_v47 = vpop.f32.mrb[37].mxu0 }
 0x650   :  { %v1166_v48 = vpop.f32.mrb[38].mxu0 }
 0x651   :  { %v2468_v49 = vpop.f32.mrb[39].mxu0 }
 0x67f   :  { %v3167_v50 = vpop.f32.mrb[36].mxu1 }
 0x680   :  { %v2473_v51 = vpop.f32.mrb[37].mxu1 }
 0x681   :  { %v1213_v52 = vpop.f32.mrb[38].mxu1 }
 0x682   :  { %v2474_v53 = vpop.f32.mrb[39].mxu1 }
 0x687   :  { %v1328_v54 = vpop.f32.mrb[40].mxu1 }
 0x688   :  { %v2485_v55 = vpop.f32.mrb[41].mxu1  ;;  %v1484_v57 = vsel %vm594_vm3, %v1328_v54, -inf }
 0x689   :  { %1485 = vmax.xlane.f32.xlu0 %v1484_v57  ;;  %v1331_v59 = vpop.f32.mrb[42].mxu1 }
 0x68a   :  { %v2486_v60 = vpop.f32.mrb[43].mxu1 }
 0x68b   :  { %v3170_v61 = vpop.f32.mrb[40].mxu0 }
 0x68c   :  { %v2479_v62 = vpop.f32.mrb[41].mxu0 }
 0x68d   :  { %v1260_v63 = vpop.f32.mrb[42].mxu0 }
 0x68e   :  { %v2480_v0 = vpop.f32.mrb[43].mxu0 }
 0x68f   :  { %v1428_v1 = vpop.f32.mrb[44].mxu1 }
 0x690   :  { %v2497_v2 = vpop.f32.mrb[45].mxu1  ;;  %v1490_v3 = vsel %vm594_vm3, %v1428_v1, -inf }
 0x691   :  { %1491 = vmax.xlane.f32.xlu0 %v1490_v3  ;;  %v1431_v4 = vpop.f32.mrb[46].mxu1 }
 0x692   :  { %v2498_v6 = vpop.f32.mrb[47].mxu1 }
 0x693   :  { %v1378_v7 = vpop.f32.mrb[44].mxu0 }
 0x694   :  { %v2491_v8 = vpop.f32.mrb[45].mxu0  ;;  %v1487_v9 = vsel %vm594_vm3, %v1378_v7, -inf }
 0x695   :  { %1488 = vmax.xlane.f32.xlu1 %v1487_v9  ;;  %v1381_v11 = vpop.f32.mrb[46].mxu0 }
 0x696   :  { %v2492_v12 = vpop.f32.mrb[47].mxu0 }
 0x69b   :  { %v1478_v13 = vpop.f32.mrb[48].mxu0 }
 0x69c   :  { %v2503_v14 = vpop.f32.mrb[49].mxu0  ;;  %v1493_v16 = vsel %vm594_vm3, %v1478_v13, -inf }
 0x69d   :  { %v1481_v17 = vpop.f32.mrb[50].mxu0  ;;  %1494 = vmax.xlane.f32.xlu0 %v1493_v16 }
 0x69e   :  { %v2504_v19 = vpop.f32.mrb[51].mxu0 }
 0x716   :  { %v1486_v20 = vpop.xlane.xlu0 %1485 }
 0x717   :  { %v1496_v22 = vsub.f32 %v1328_v54, %v1486_v20 }
 0x719   :  { %v1500_v24 = vmul.f32 1.442695, %v1496_v22 }
 0x71b   :  { %2632 = vpow2.f32 %v1500_v24 }
 0x71e   :  { %v1492_v34 = vpop.xlane.xlu0 %1491 }
 0x71f   :  { %v1498_v35 = vsub.f32 %v1428_v1, %v1492_v34 }
 0x721   :  { %v1504_v39 = vmul.f32 1.442695, %v1498_v35 }
 0x722   :  { %v1489_v25 = vpop.xlane.xlu1 %1488 }
 0x723   :  { %v1497_v28 = vsub.f32 %v1378_v7, %v1489_v25 }
 0x725   :  { %v2633_v29 = vpop.eup %2632  ;;  %v1502_v30 = vmul.f32 1.442695, %v1497_v28 }
 0x726   :  { %v1508_v31 = vsel %vm594_vm3, %v2633_v29, 0.0 }
 0x727   :  { %2634 = vpow2.f32 %v1502_v30  ;;  %1509 = vadd.xlane.f32.xlu0 %v1508_v31 }
 0x728   :  { %2636 = vpow2.f32 %v1504_v39 }
 0x72a   :  { %v1495_v40 = vpop.xlane.xlu0 %1494 }
 0x72b   :  { %v1499_v43 = vsub.f32 %v1478_v13, %v1495_v40 }
 0x72d   :  { %v1506_v45 = vmul.f32 1.442695, %v1499_v43 }
 0x72f   :  { %2638 = vpow2.f32 %v1506_v45 }
 0x731   :  { %v2635_v32 = vpop.eup %2634 }
 0x732   :  { %v1511_v33 = vsel %vm594_vm3, %v2635_v32, 0.0  ;;  %v2637_v41 = vpop.eup %2636 }
 0x733   :  { %1512 = vadd.xlane.f32.xlu1 %v1511_v33  ;;  %v1514_v44 = vsel %vm594_vm3, %v2637_v41, 0.0 }
 0x739   :  { %v2639_v47 = vpop.eup %2638 }
 0x73a   :  { %v1517_v48 = vsel %vm594_vm3, %v2639_v47, 0.0 }
 0x73d   :  { %1532 = vrot.lane.b32.xlu0 %v3003_v23, %s2816_s21 }
 0x744   :  { %1578 = vrot.lane.b32.xlu1 %v2997_v21, %s2816_s21 }
 0x748   :  { %1624 = vrot.lane.b32.xlu1 %v3029_v38, %s2816_s21 }
 0x74c   :  { %1670 = vrot.lane.b32.xlu1 %v3027_v37, %s2816_s21 }
 0x75c   :  { %1515 = vadd.xlane.f32.xlu0 %v1514_v44 }
 0x770   :  { %1518 = vadd.xlane.f32.xlu1 %v1517_v48 }
 0x772   :  { %1739 = vrot.lane.b32.xlu0 %v2977_v58, %s2817_s22 }
 0x776   :  { %1737 = vrot.lane.b32.xlu0 %v2987_v10, %s2817_s22 }
 0x77a   :  { %1839 = vrot.lane.b32.xlu0 %v2991_v18, %s2817_s22 }
 0x77e   :  { %1837 = vrot.lane.b32.xlu0 %v3013_v27, %s2817_s22 }
 0x781   :  { %1789 = vrot.lane.b32.xlu1 %v2975_v56, %s2817_s22 }
 0x785   :  { %1787 = vrot.lane.b32.xlu1 %v2985_v5, %s2817_s22 }
 0x789   :  { %1889 = vrot.lane.b32.xlu1 %v2989_v15, %s2817_s22 }
 0x78d   :  { %1887 = vrot.lane.b32.xlu1 %v3011_v26, %s2817_s22 }
 0x7b4   :  { %v1510_v58 = vpop.xlane.xlu0 %1509 }
 0x7b5   :  { %2640 = vrcp.f32 %v1510_v58 }
 0x7b8   :  { %v1533_v10 = vpop.permute.xlu0 %1532 }
 0x7b9   :  { %2506 = vmatpush3.bf16.msra.mxu1 %v1533_v10 }
 0x7ba   :  { %2517 = vmatprep.subr.bf16.mxu1 %v2813_v36 }
 0x7bf   :  { %v2641_v18 = vpop.eup %2640 }
 0x7c0   :  { %v1524_v27 = vmul.f32 %v2641_v18, %v2633_v29  ;;  %v1513_v49 = vpop.xlane.xlu1 %1512 }
 0x7c1   :  { %2642 = vrcp.f32 %v1513_v49 }
 0x7c2   :  { %v1528_v56 = vpack.c.bf16 %v1524_v27, %v1524_v27 }
 0x7c4   :  { %v1579_v51 = vpop.permute.xlu1 %1578  ;;  %2508 = vmatmul.mubr.msk.bf16.vlgmr.msra.gmra.mrb[48].mxu1 %vm594_vm3, %v1528_v56 }
 0x7c5   :  { %2512 = vmatpush3.bf16.msra.mxu0 %v1579_v51  ;;  %2519 = vmatprep.mubr.msk.bf16.mxu1 %vm2814_vm1, %v2813_v36 }
 0x7c6   :  { %2523 = vmatprep.subr.bf16.mxu0 %v2813_v36 }
 0x7c8   :  { %v1625_v5 = vpop.permute.xlu1 %1624 }
 0x7c9   :  { %2518 = vmatpush3.bf16.msra.mxu1 %v1625_v5 }
 0x7ca   :  { %2529 = vmatprep.subr.bf16.mxu1 %v2813_v36 }
 0x7cb   :  { %v2643_v15 = vpop.eup %2642 }
 0x7cc   :  { %v1525_v26 = vmul.f32 %v2643_v15, %v2635_v32  ;;  %v1671_v53 = vpop.permute.xlu1 %1670 }
 0x7ce   :  { %v1529_v52 = vpack.c.bf16 %v1525_v26, %v1525_v26 }
 0x7d0   :  { %2514 = vmatmul.mubr.msk.bf16.vlgmr.msra.gmra.mrb[52].mxu0 %vm594_vm3, %v1529_v52 }
 0x7d1   :  { %2524 = vmatpush3.bf16.msra.mxu0 %v1671_v53  ;;  %2525 = vmatprep.mubr.msk.bf16.mxu0 %vm2814_vm1, %v2813_v36 }
 0x7d2   :  { %2535 = vmatprep.subr.bf16.mxu0 %v2813_v36 }
 0x7e9   :  { %v1516_v54 = vpop.xlane.xlu0 %1515 }
 0x7ea   :  { %2644 = vrcp.f32 %v1516_v54 }
 0x7ed   :  { %v1740_v55 = vpop.permute.xlu0 %1739 }
 0x7ee   :  { %v1745_v63 = vsel %vm409_vm2, %v1740_v55, 0 }
 0x7f1   :  { %v1738_v62 = vpop.permute.xlu0 %1737 }
 0x7f4   :  { %v2645_v57 = vpop.eup %2644 }
 0x7f5   :  { %v1526_v59 = vmul.f32 %v2645_v57, %v2637_v41  ;;  %v1840_v1 = vpop.permute.xlu0 %1839 }
 0x7f6   :  { %v1845_v2 = vsel %vm409_vm2, %v1840_v1, 0 }
 0x7f7   :  { %v1530_v60 = vpack.c.bf16 %v1526_v59, %v1526_v59 }
 0x7f9   :  { %2520 = vmatmul.mubr.msk.bf16.vlgmr.msra.gmra.mrb[52].mxu1 %vm594_vm3, %v1530_v60  ;;  %v1838_v6 = vpop.permute.xlu0 %1837 }
 0x7fa   :  { %2530 = vmatpush3.bf16.xpose.msra.mxu1 %v1745_v63  ;;  %2531 = vmatprep.mubr.msk.bf16.mxu1 %vm2814_vm1, %v2813_v36 }
 0x7fb   :  { %2541 = vmatprep.subr.bf16.mxu1 %v2813_v36 }
 0x7fd   :  { %v1519_v0 = vpop.xlane.xlu1 %1518 }
 0x7fe   :  { %2646 = vrcp.f32 %v1519_v0 }
 0x801   :  { %2532 = vmatmul.mubr.msk.bf16.vlgmr.msra.gmra.mrb[56].mxu1 %vm409_vm2, %v1738_v62  ;;  %v1790_v3 = vpop.permute.xlu1 %1789 }
 0x802   :  { %2542 = vmatpush3.bf16.xpose.msra.mxu1 %v1845_v2  ;;  %2543 = vmatprep.mubr.msk.bf16.mxu1 %vm2814_vm1, %v2813_v36  ;;  %v1795_v11 = vsel %vm409_vm2, %v1790_v3, 0 }
 0x803   :  { %2553 = vmatprep.subr.bf16.mxu1 %v2813_v36 }
 0x805   :  { %v1788_v9 = vpop.permute.xlu1 %1787 }
 0x808   :  { %v2647_v4 = vpop.eup %2646 }
 0x809   :  { %v1527_v7 = vmul.f32 %v2647_v4, %v2639_v47  ;;  %2544 = vmatmul.mubr.msk.bf16.vlgmr.msra.gmra.mrb[60].mxu1 %vm409_vm2, %v1838_v6  ;;  %v1890_v12 = vpop.permute.xlu1 %1889 }
 0x80a   :  { %2555 = vmatprep.mubr.msk.bf16.mxu1 %vm2814_vm1, %v2813_v36  ;;  %v1895_v13 = vsel %vm409_vm2, %v1890_v12, 0 }
 0x80b   :  { %v1531_v8 = vpack.c.bf16 %v1527_v7, %v1527_v7 }
 0x80d   :  { %2526 = vmatmul.mubr.msk.bf16.vlgmr.msra.gmra.mrb[56].mxu0 %vm594_vm3, %v1531_v8  ;;  %v1888_v14 = vpop.permute.xlu1 %1887 }
 0x80e   :  { %2536 = vmatpush3.bf16.xpose.msra.mxu0 %v1795_v11  ;;  %2537 = vmatprep.mubr.msk.bf16.mxu0 %vm2814_vm1, %v2813_v36 }
 0x80f   :  { %2547 = vmatprep.subr.bf16.mxu0 %v2813_v36 }
 0x815   :  { %2538 = vmatmul.mubr.msk.bf16.vlgmr.msra.gmra.mrb[60].mxu0 %vm409_vm2, %v1788_v9 }
 0x816   :  { %2548 = vmatpush3.bf16.xpose.msra.mxu0 %v1895_v13  ;;  %2549 = vmatprep.mubr.msk.bf16.mxu0 %vm2814_vm1, %v2813_v36 }
 0x817   :  { %2559 = vmatprep.subr.bf16.mxu0 %v2813_v36 }
 0x81d   :  { %2550 = vmatmul.mubr.msk.bf16.vlgmr.msra.gmra.mrb[64].mxu0 %vm409_vm2, %v1888_v14 }
 0x81e   :  { %2561 = vmatprep.mubr.msk.bf16.mxu0 %vm2814_vm1, %v2813_v36 }
 0x897   :  { %v3239_v16 = vpop.f32.mrb[48].mxu1 }
 0x898   :  { %v2509_v17 = vpop.f32.mrb[49].mxu1 }
 0x899   :  { %v1575_v19 = vpop.f32.mrb[50].mxu1 }
 0x89a   :  { %v2510_v20 = vpop.f32.mrb[51].mxu1 }
 0x8a3   :  { %v3241_v22 = vpop.f32.mrb[52].mxu0 }
 0x8a4   :  { %v2515_v24 = vpop.f32.mrb[53].mxu0 }
 0x8a5   :  { %v1621_v25 = vpop.f32.mrb[54].mxu0 }
 0x8a6   :  { %v2516_v28 = vpop.f32.mrb[55].mxu0 }
 0x8cc   :  { %v3243_v29 = vpop.f32.mrb[52].mxu1 }
 0x8cd   :  { %v2521_v30 = vpop.f32.mrb[53].mxu1 }
 0x8ce   :  { %v1667_v31 = vpop.f32.mrb[54].mxu1 }
 0x8cf   :  { %v2522_v32 = vpop.f32.mrb[55].mxu1 }
 0x8d4   :  { %v1781_v33 = vpop.f32.mrb[56].mxu1 }
 0x8d5   :  { %v2533_v34 = vpop.f32.mrb[57].mxu1  ;;  %v1937_v35 = vsel %vm594_vm3, %v1781_v33, -inf }
 0x8d6   :  { %1938 = vmax.xlane.f32.xlu0 %v1937_v35  ;;  %v1784_v39 = vpop.f32.mrb[58].mxu1 }
 0x8d7   :  { %v2534_v40 = vpop.f32.mrb[59].mxu1 }
 0x8dc   :  { %v1881_v41 = vpop.f32.mrb[60].mxu1 }
 0x8dd   :  { %v2545_v43 = vpop.f32.mrb[61].mxu1  ;;  %v1943_v44 = vsel %vm594_vm3, %v1881_v41, -inf }
 0x8de   :  { %1944 = vmax.xlane.f32.xlu0 %v1943_v44  ;;  %v1884_v45 = vpop.f32.mrb[62].mxu1 }
 0x8df   :  { %v2546_v47 = vpop.f32.mrb[63].mxu1 }
 0x8e0   :  { %v1710_v48 = vpop.f32.mrb[56].mxu0 }
 0x8e1   :  { %v2527_v58 = vpop.f32.mrb[57].mxu0 }
 0x8e2   :  { %v1713_v10 = vpop.f32.mrb[58].mxu0 }
 0x8e3   :  { %v2528_v18 = vpop.f32.mrb[59].mxu0 }
 0x8e8   :  { %v1831_v27 = vpop.f32.mrb[60].mxu0 }
 0x8e9   :  { %v2539_v49 = vpop.f32.mrb[61].mxu0  ;;  %v1940_v56 = vsel %vm594_vm3, %v1831_v27, -inf }
 0x8ea   :  { %1941 = vmax.xlane.f32.xlu1 %v1940_v56  ;;  %v1834_v51 = vpop.f32.mrb[62].mxu0 }
 0x8eb   :  { %v2540_v5 = vpop.f32.mrb[63].mxu0 }
 0x8f0   :  { %v1931_v15 = vpop.f32.mrb[64].mxu0 }
 0x8f1   :  { %v2551_v26 = vpop.f32.mrb[65].mxu0  ;;  %v1946_v52 = vsel %vm594_vm3, %v1931_v15, -inf }
 0x8f2   :  { %v1934_v53 = vpop.f32.mrb[66].mxu0  ;;  %1947 = vmax.xlane.f32.xlu0 %v1946_v52 }
 0x8f3   :  { %v2552_v54 = vpop.f32.mrb[67].mxu0 }
 0x963   :  { %v1939_v55 = vpop.xlane.xlu0 %1938 }
 0x964   :  { %v1949_v57 = vsub.f32 %v1781_v33, %v1939_v55 }
 0x966   :  { %v1953_v59 = vmul.f32 1.442695, %v1949_v57  ;;  %v2190_v57 = vld [vmem:[#allocation3] sm:$0xff] }
 0x968   :  { %2648 = vpow2.f32 %v1953_v59 }
 0x96b   :  { %v1945_v60 = vpop.xlane.xlu0 %1944 }
 0x96c   :  { %v1951_v62 = vsub.f32 %v1881_v41, %v1945_v60 }
 0x96e   :  { %v1957_v63 = vmul.f32 1.442695, %v1951_v62 }
 0x970   :  { %2650 = vpow2.f32 %v1957_v63 }
 0x972   :  { %v2649_v0 = vpop.eup %2648 }
 0x973   :  { %v1961_v1 = vsel %vm594_vm3, %v2649_v0, 0.0 }
 0x974   :  { %1962 = vadd.xlane.f32.xlu0 %v1961_v1 }
 0x977   :  { %v1942_v2 = vpop.xlane.xlu1 %1941 }
 0x978   :  { %v1950_v3 = vsub.f32 %v1831_v27, %v1942_v2 }
 0x97a   :  { %v2651_v4 = vpop.eup %2650  ;;  %v1955_v6 = vmul.f32 1.442695, %v1950_v3 }
 0x97b   :  { %v1967_v7 = vsel %vm594_vm3, %v2651_v4, 0.0 }
 0x97c   :  { %2652 = vpow2.f32 %v1955_v6  ;;  %1968 = vadd.xlane.f32.xlu0 %v1967_v7 }
 0x97f   :  { %v1948_v8 = vpop.xlane.xlu0 %1947 }
 0x980   :  { %v1952_v9 = vsub.f32 %v1931_v15, %v1948_v8  ;;  %v2193_v8 = vld [vmem:[#allocation3 + $0x18] sm:$0xff] }
 0x982   :  { %v1959_v11 = vmul.f32 1.442695, %v1952_v9 }
 0x984   :  { %2654 = vpow2.f32 %v1959_v11 }
 0x986   :  { %v2653_v12 = vpop.eup %2652 }
 0x987   :  { %v1964_v13 = vsel %vm594_vm3, %v2653_v12, 0.0 }
 0x988   :  { %1965 = vadd.xlane.f32.xlu1 %v1964_v13 }
 0x98e   :  { %v2655_v14 = vpop.eup %2654 }
 0x98f   :  { %v1970_v17 = vsel %vm594_vm3, %v2655_v14, 0.0 }
 0x990   :  { %1971 = vadd.xlane.f32.xlu1 %v1970_v17 }
 0x992   :  { %1985 = vrot.lane.b32.xlu0 %v3003_v23, %s2817_s22 }
 0x996   :  { %1267 = vrot.lane.b32.xlu0 %v3163_v42, %s2807_s14 }
 0x99a   :  { %1271 = vrot.lane.b32.xlu0 %v3167_v50, %s2807_s14 }
 0x99e   :  { %1720 = vrot.lane.b32.xlu0 %v3239_v16, %s2818_s23 }
 0x9a1   :  { %2031 = vrot.lane.b32.xlu1 %v2997_v21, %s2817_s22 }
 0x9a2   :  { %1724 = vrot.lane.b32.xlu0 %v3243_v29, %s2818_s23 }
 0x9a5   :  { %2077 = vrot.lane.b32.xlu1 %v3029_v38, %s2817_s22 }
 0x9a9   :  { %2123 = vrot.lane.b32.xlu1 %v3027_v37, %s2817_s22 }
 0x9ad   :  { %1269 = vrot.lane.b32.xlu1 %v3165_v46, %s2807_s14 }
 0x9b1   :  { %1273 = vrot.lane.b32.xlu1 %v3170_v61, %s2807_s14 }
 0x9b5   :  { %1722 = vrot.lane.b32.xlu1 %v3241_v22, %s2818_s23 }
 0x9b9   :  { %1726 = vrot.lane.b32.xlu1 %v1710_v48, %s2818_s23 }
 0xa01   :  { %v1963_v23 = vpop.xlane.xlu0 %1962 }
 0xa02   :  { %2656 = vrcp.f32 %v1963_v23 }
 0xa09   :  { %v1969_v21 = vpop.xlane.xlu0 %1968 }
 0xa0a   :  { %2658 = vrcp.f32 %v1969_v21 }
 0xa0c   :  { %v2657_v42 = vpop.eup %2656 }
 0xa0d   :  { %v1977_v50 = vmul.f32 %v2657_v42, %v2649_v0  ;;  %v1986_v16 = vpop.permute.xlu0 %1985  ;;  %v2191_v0 = vld [vmem:[#allocation3 + $0x8] sm:$0xff] }
 0xa0e   :  { %2554 = vmatpush3.bf16.msra.mxu1 %v1986_v16 }
 0xa0f   :  { %v1981_v38 = vpack.c.bf16 %v1977_v50, %v1977_v50  ;;  %2565 = vmatprep.subr.bf16.mxu1 %v2813_v36 }
 0xa11   :  { %2556 = vmatmul.mubr.msk.bf16.vlgmr.msra.gmra.mrb[64].mxu1 %vm594_vm3, %v1981_v38  ;;  %v1268_v37 = vpop.permute.xlu0 %1267 }
 0xa12   :  { %1280 = vst.msk [vmem:[#allocation2] sm:$0xff] %vm1279_vm4, %v1268_v37  ;;  %2567 = vmatprep.mubr.msk.bf16.mxu1 %vm2814_vm1, %v2813_v36 }
 0xa14   :  { %v2659_v24 = vpop.eup %2658 }
 0xa15   :  { %v1966_v46 = vpop.xlane.xlu1 %1965  ;;  %v1272_v61 = vpop.permute.xlu0 %1271  ;;  %v1979_v30 = vmul.f32 %v2659_v24, %v2651_v4  ;;  %v2192_v4 = vld [vmem:[#allocation3 + $0x10] sm:$0xff] }
 0xa16   :  { %2660 = vrcp.f32 %v1966_v46  ;;  %1282 = vst.msk [vmem:[#allocation2 + $0x10] sm:$0xff] %vm1279_vm4, %v1272_v61 }
 0xa17   :  { %v1983_v33 = vpack.c.bf16 %v1979_v30, %v1979_v30 }
 0xa19   :  { %v1721_v19 = vpop.permute.xlu0 %1720 }
 0xa1a   :  { %1733 = vst.msk [vmem:[#allocation2] sm:$0xff] %vm1732_vm5, %v1721_v19 }
 0xa1d   :  { %v1972_v20 = vpop.xlane.xlu1 %1971  ;;  %v1725_v22 = vpop.permute.xlu0 %1724 }
 0xa1e   :  { %2662 = vrcp.f32 %v1972_v20  ;;  %1735 = vst.msk [vmem:[#allocation2 + $0x10] sm:$0xff] %vm1732_vm5, %v1725_v22 }
 0xa20   :  { %v2661_v25 = vpop.eup %2660 }
 0xa21   :  { %v1978_v28 = vmul.f32 %v2661_v25, %v2653_v12  ;;  %v2032_v29 = vpop.permute.xlu1 %2031 }
 0xa22   :  { %2560 = vmatpush3.bf16.msra.mxu0 %v2032_v29 }
 0xa23   :  { %v1982_v31 = vpack.c.bf16 %v1978_v28, %v1978_v28  ;;  %2571 = vmatprep.subr.bf16.mxu0 %v2813_v36 }
 0xa25   :  { %2562 = vmatmul.mubr.msk.bf16.vlgmr.msra.gmra.mrb[68].mxu0 %vm594_vm3, %v1982_v31  ;;  %v2078_v32 = vpop.permute.xlu1 %2077 }
 0xa26   :  { %2566 = vmatpush3.bf16.msra.mxu1 %v2078_v32  ;;  %2573 = vmatprep.mubr.msk.bf16.mxu0 %vm2814_vm1, %v2813_v36 }
 0xa28   :  { %v2663_v34 = vpop.eup %2662 }
 0xa29   :  { %v1980_v35 = vmul.f32 %v2663_v34, %v2655_v14  ;;  %v2124_v39 = vpop.permute.xlu1 %2123  ;;  %2568 = vmatmul.mubr.msk.bf16.vlgmr.msra.gmra.mrb[68].mxu1 %vm594_vm3, %v1983_v33 }
 0xa2a   :  { %2572 = vmatpush3.bf16.msra.mxu0 %v2124_v39 }
 0xa2b   :  { %v1984_v40 = vpack.c.bf16 %v1980_v35, %v1980_v35 }
 0xa2d   :  { %2574 = vmatmul.mubr.msk.bf16.vlgmr.msra.gmra.mrb[72].mxu0 %vm594_vm3, %v1984_v40  ;;  %v1270_v41 = vpop.permute.xlu1 %1269 }
 0xa2e   :  { %1281 = vst.msk [vmem:[#allocation2 + $0x8] sm:$0xff] %vm1279_vm4, %v1270_v41 }
 0xa31   :  { %v1274_v43 = vpop.permute.xlu1 %1273 }
 0xa32   :  { %1283 = vst.msk [vmem:[#allocation2 + $0x18] sm:$0xff] %vm1279_vm4, %v1274_v43 }
 0xa35   :  { %v1723_v44 = vpop.permute.xlu1 %1722 }
 0xa36   :  { %1734 = vst.msk [vmem:[#allocation2 + $0x8] sm:$0xff] %vm1732_vm5, %v1723_v44 }
 0xa39   :  { %v1727_v36 = vpop.permute.xlu1 %1726 }
 0xa3a   :  { %1736 = vst.msk [vmem:[#allocation2 + $0x18] sm:$0xff] %vm1732_vm5, %v1727_v36 }
 0xae4   :  { %v2025_v45 = vpop.f32.mrb[64].mxu1 }
 0xae5   :  { %2173 = vrot.lane.b32.xlu0 %v2025_v45, %s2819_s24  ;;  %v2557_v47 = vpop.f32.mrb[65].mxu1 }
 0xae6   :  { %v2028_v48 = vpop.f32.mrb[66].mxu1 }
 0xae7   :  { %v2558_v58 = vpop.f32.mrb[67].mxu1 }
 0xaf8   :  { %v2071_v10 = vpop.f32.mrb[68].mxu0 }
 0xaf9   :  { %2175 = vrot.lane.b32.xlu1 %v2071_v10, %s2819_s24  ;;  %v2563_v18 = vpop.f32.mrb[69].mxu0 }
 0xafa   :  { %v2074_v27 = vpop.f32.mrb[70].mxu0 }
 0xafb   :  { %v2564_v49 = vpop.f32.mrb[71].mxu0 }
 0xafc   :  { %v2117_v56 = vpop.f32.mrb[68].mxu1 }
 0xafd   :  { %2177 = vrot.lane.b32.xlu0 %v2117_v56, %s2819_s24  ;;  %v2569_v51 = vpop.f32.mrb[69].mxu1 }
 0xafe   :  { %v2120_v5 = vpop.f32.mrb[70].mxu1 }
 0xaff   :  { %v2570_v15 = vpop.f32.mrb[71].mxu1 }
 0xb00   :  { %v2163_v26 = vpop.f32.mrb[72].mxu0 }
 0xb01   :  { %2179 = vrot.lane.b32.xlu1 %v2163_v26, %s2819_s24  ;;  %v2575_v52 = vpop.f32.mrb[73].mxu0 }
 0xb02   :  { %v2166_v53 = vpop.f32.mrb[74].mxu0 }
 0xb03   :  { %v2576_v54 = vpop.f32.mrb[75].mxu0 }
 0xb57   :  { %v2174_v55 = vpop.permute.xlu0 %2173 }
 0xb58   :  { %2186 = vst.msk [vmem:[#allocation2] sm:$0xff] %vm2185_vm6, %v2174_v55 }
 0xb5f   :  { %v2194_v59 = vld [vmem:[#allocation2] sm:$0xff] }
 0xb60   :  { %v2198_v60 = vadd.f32 %v2194_v59, %v2190_v57 }
 0xb62   :  { %2202 = vst.msk [vmem:[#allocation12] sm:$0xff] %vm147_vm0, %v2198_v60 }
 0xb6b   :  { %v2176_v62 = vpop.permute.xlu1 %2175 }
 0xb6c   :  { %2187 = vst.msk [vmem:[#allocation2 + $0x8] sm:$0xff] %vm2185_vm6, %v2176_v62 }
 0xb6f   :  { %v2178_v63 = vpop.permute.xlu0 %2177 }
 0xb70   :  { %2188 = vst.msk [vmem:[#allocation2 + $0x10] sm:$0xff] %vm2185_vm6, %v2178_v63 }
 0xb73   :  { %v2180_v1 = vpop.permute.xlu1 %2179  ;;  %v2195_v2 = vld [vmem:[#allocation2 + $0x8] sm:$0xff] }
 0xb74   :  { %2189 = vst.msk [vmem:[#allocation2 + $0x18] sm:$0xff] %vm2185_vm6, %v2180_v1  ;;  %v2199_v3 = vadd.f32 %v2195_v2, %v2191_v0 }
 0xb76   :  { %2203 = vst.msk [vmem:[#allocation12 + $0x8] sm:$0xff] %vm147_vm0, %v2199_v3 }
 0xb77   :  { %v2196_v6 = vld [vmem:[#allocation2 + $0x10] sm:$0xff] }
 0xb78   :  { %v2200_v7 = vadd.f32 %v2196_v6, %v2192_v4 }
 0xb7a   :  { %2204 = vst.msk [vmem:[#allocation12 + $0x10] sm:$0xff] %vm147_vm0, %v2200_v7 }
 0xb7b   :  { %v2197_v9 = vld [vmem:[#allocation2 + $0x18] sm:$0xff] }
 0xb7c   :  { %v2201_v11 = vadd.f32 %v2197_v9, %v2193_v8 }
 0xb7e   :  { %2205 = vst.msk [vmem:[#allocation12 + $0x18] sm:$0xff] %vm147_vm0, %v2201_v11 }
 0xb7f   :  { %2785 = shalt.err (!%p2782_p2)
}
 0xb80   :  { %s2786_s8 = scalar_lea.hbm %s3316_s7, 512 }
 0xb81   :  { %p2787_p3 = scmp.ne.s32.totalorder %s3316_s7, %s2786_s8  ;;  %p2790_p4 = scmp.lt.u32.totalorder %s2786_s8, %s3316_s7 }
 0xb83   :  { %p2792_p5 = pnand %p2790_p4, %p2787_p3 }
 0xb85   :  { %2795 = shalt.err (!%p2792_p5)
}
 0xb86   :  { %2217 = dma.vmem_to_hbm [thread:$0]  %s2212_s28, 512, %s3316_s7, [#allocation5], %s2806_s13, %s2806_s13, %s2807_s14  }
 0xb87   :  { %2802 = dma.done.wait [#allocation5], 512  }
 0xb88   :  { %2803 = vsyncadd [#allocation5], 4294966784 }
 0xb89   :  { %2221 = vsyncpa [#allocation4], 1 }
 0xb8a   :  { %2222 = vsyncpa [#allocation7], 1 }
 0xb8b   :  { %2223 = vsyncpa [#allocation10], 1 }
 0xb8c   :  { %2224 = vsyncpa [#allocation5], 1 }

// kernel: tpu_custom_call.1
= control target key start
LH: loop header
LB: loop body
LE: loop exit
PB: predicated region body
PF: predicated region fallthrough
CT: control target
= control target key end

     0   :  { %12 = vsyncpa [#allocation4], 0  ;;  %s3309_s0 = inlined_call_operand.hbm [shape: f32[4,8,32], index: 0, kind: input, shape index: {}]   ;;  %s3310_s1 = inlined_call_operand.hbm [shape: f32[4,16,32], index: 1, kind: input, shape index: {}]   ;;  %s3311_s2 = inlined_call_operand.hbm [shape: f32[4,16,32], index: 2, kind: input, shape index: {}]   ;;  %s3312_s3 = inlined_call_operand.hbm [shape: bf16[32,32], index: 3, kind: input, shape index: {}]   ;;  %s3313_s4 = inlined_call_operand.hbm [shape: bf16[32,32], index: 4, kind: input, shape index: {}]   ;;  %s3314_s5 = inlined_call_operand.vmem [shape: bf16[32,32], index: 5, kind: input, shape index: {}]   ;;  %s3315_s6 = inlined_call_operand.vmem [shape: f32[3,32], index: 6, kind: input, shape index: {}]   ;;  %s3316_s7 = inlined_call_operand.hbm [shape: f32[4,8,32], index: 7, kind: output, shape index: {}]  }
   0x1   :  { %13 = vsyncpa [#allocation7], 0 }
   0x2   :  { %14 = vsyncpa [#allocation10], 0 }
   0x3   :  { %15 = vsyncpa [#allocation5], 0  ;;  %s2804_s24 = smov [#allocation6]   ;;  %s2805_s26 = smov [#allocation9]  }
   0x4   :  { %s33_s25 = sshll.u32 %s2804_s24, 4  ;;  %s57_s27 = sshll.u32 %s2805_s26, 4  ;;  %s34_s25 = int_to_ptr.vmem [resolvable:$true] %s33_s25  ;;  %s2861_s27 = int_to_ptr.vmem [resolvable:$true] %s57_s27 }
   0x5   :  { %s2664_s30 = scalar_lea.hbm %s3310_s1, 1024 }
   0x6   :  { %p2665_p0 = scmp.ne.s32.totalorder %s3310_s1, %s2664_s30  ;;  %p2668_p1 = scmp.lt.u32.totalorder %s2664_s30, %s3310_s1 }
   0x8   :  { %p2670_p2 = pnand %p2668_p1, %p2665_p0 }
   0xa   :  { %2673 = shalt.err (!%p2670_p2)
}
   0xb   :  { %s2674_s12 = scalar_lea.vmem %s34_s25, 1024  ;;  %p2679_p4 = scmp.lt.s32.totalorder %s34_s25, %s34_s25 }
   0xc   :  { %p2675_p3 = scmp.ne.s32.totalorder %s34_s25, %s2674_s12  ;;  %p2680_p5 = scmp.lt.s32.totalorder %s2674_s12, %s2674_s12 }
   0xe   :  { %p2681_p6 = por %p2680_p5, %p2679_p4 }
  0x10   :  { %p2682_p7 = pnand %p2681_p6, %p2675_p3 }
  0x12   :  { %2685 = shalt.err (!%p2682_p7)
}
  0x13   :  { %s2806_s13 = smov 128   ;;  %s2807_s14 = smov 8  }
  0x14   :  { %39 = dma.hbm_to_vmem [thread:$0]  %s3310_s1, 1024, %s34_s25, [#allocation7], %s2806_s13, %s2806_s13, %s2807_s14  }
  0x15   :  { %s2686_s19 = scalar_lea.hbm %s3312_s3, 256 }
  0x16   :  { %p2687_p8 = scmp.ne.s32.totalorder %s3312_s3, %s2686_s19  ;;  %p2690_p9 = scmp.lt.u32.totalorder %s2686_s19, %s3312_s3 }
  0x18   :  { %p2692_p10 = pnand %p2690_p9, %p2687_p8 }
  0x1a   :  { %2695 = shalt.err (!%p2692_p10)
}
  0x1b   :  { %s2696_s24 = scalar_lea.vmem %s2861_s27, 256  ;;  %p2701_p12 = scmp.lt.s32.totalorder %s2861_s27, %s2861_s27 }
  0x1c   :  { %p2697_p11 = scmp.ne.s32.totalorder %s2861_s27, %s2696_s24  ;;  %p2702_p13 = scmp.lt.s32.totalorder %s2696_s24, %s2696_s24 }
  0x1e   :  { %p2703_p0 = por %p2702_p13, %p2701_p12 }
  0x20   :  { %p2704_p1 = pnand %p2703_p0, %p2697_p11 }
  0x22   :  { %2707 = shalt.err (!%p2704_p1)
}
  0x23   :  { %s2808_s1 = smov 64   ;;  %s2809_s25 = smov 4  }
  0x24   :  { %63 = dma.hbm_to_vmem [thread:$0]  %s3312_s3, 256, %s2861_s27, [#allocation10], %s2808_s1, %s2808_s1, %s2809_s25  }
  0x25   :  { %s2810_s29 = smov [#allocation3]   ;;  %s2811_s8 = smov [#allocation8]  }
  0x26   :  { %s21_s30 = sshll.u32 %s2810_s29, 4  ;;  %s45_s9 = sshll.u32 %s2811_s8, 4  ;;  %s22_s30 = int_to_ptr.vmem [resolvable:$true] %s21_s30  ;;  %s2898_s9 = int_to_ptr.vmem [resolvable:$true] %s45_s9 }
  0x27   :  { %s2708_s12 = scalar_lea.hbm %s3309_s0, 512 }
  0x28   :  { %p2709_p2 = scmp.ne.s32.totalorder %s3309_s0, %s2708_s12  ;;  %p2712_p3 = scmp.lt.u32.totalorder %s2708_s12, %s3309_s0 }
  0x2a   :  { %p2714_p4 = pnand %p2712_p3, %p2709_p2 }
  0x2c   :  { %2717 = shalt.err (!%p2714_p4)
}
  0x2d   :  { %s2718_s3 = scalar_lea.vmem %s22_s30, 512  ;;  %p2723_p6 = scmp.lt.s32.totalorder %s22_s30, %s22_s30 }
  0x2e   :  { %p2719_p5 = scmp.ne.s32.totalorder %s22_s30, %s2718_s3  ;;  %p2724_p7 = scmp.lt.s32.totalorder %s2718_s3, %s2718_s3 }
  0x30   :  { %p2725_p8 = por %p2724_p7, %p2723_p6 }
  0x32   :  { %p2726_p9 = pnand %p2725_p8, %p2719_p5 }
  0x34   :  { %2729 = shalt.err (!%p2726_p9)
}
  0x35   :  { %27 = dma.hbm_to_vmem [thread:$0]  %s3309_s0, 512, %s22_s30, [#allocation4], %s2806_s13, %s2806_s13, %s2807_s14  }
  0x36   :  { %s2730_s22 = scalar_lea.hbm %s3311_s2, 1024 }
  0x37   :  { %p2731_p10 = scmp.ne.s32.totalorder %s3311_s2, %s2730_s22  ;;  %p2734_p11 = scmp.lt.u32.totalorder %s2730_s22, %s3311_s2 }
  0x39   :  { %p2736_p12 = pnand %p2734_p11, %p2731_p10 }
  0x3b   :  { %2739 = shalt.err (!%p2736_p12)
}
  0x3c   :  { %s2740_s29 = scalar_lea.vmem %s2898_s9, 1024  ;;  %p2745_p0 = scmp.lt.s32.totalorder %s2898_s9, %s2898_s9 }
  0x3d   :  { %p2741_p13 = scmp.ne.s32.totalorder %s2898_s9, %s2740_s29  ;;  %p2746_p1 = scmp.lt.s32.totalorder %s2740_s29, %s2740_s29 }
  0x3f   :  { %p2747_p2 = por %p2746_p1, %p2745_p0 }
  0x41   :  { %p2748_p3 = pnand %p2747_p2, %p2741_p13 }
  0x43   :  { %2751 = shalt.err (!%p2748_p3)
}
  0x44   :  { %51 = dma.hbm_to_vmem [thread:$0]  %s3311_s2, 1024, %s2898_s9, [#allocation7], %s2806_s13, %s2806_s13, %s2807_s14  }
  0x45   :  { %s2812_s8 = smov [#allocation11]   ;;  %s2752_s15 = scalar_lea.hbm %s3313_s4, 256 }
  0x46   :  { %s69_s10 = sshll.u32 %s2812_s8, 4  ;;  %p2753_p4 = scmp.ne.s32.totalorder %s3313_s4, %s2752_s15  ;;  %s70_s10 = int_to_ptr.vmem [resolvable:$true] %s69_s10 }
  0x47   :  { %p2756_p5 = scmp.lt.u32.totalorder %s2752_s15, %s3313_s4 }
  0x49   :  { %p2758_p6 = pnand %p2756_p5, %p2753_p4 }
  0x4b   :  { %2761 = shalt.err (!%p2758_p6)
}
  0x4c   :  { %s2762_s27 = scalar_lea.vmem %s70_s10, 256  ;;  %p2767_p8 = scmp.lt.s32.totalorder %s70_s10, %s70_s10 }
  0x4d   :  { %p2763_p7 = scmp.ne.s32.totalorder %s70_s10, %s2762_s27  ;;  %p2768_p9 = scmp.lt.s32.totalorder %s2762_s27, %s2762_s27 }
  0x4f   :  { %p2769_p10 = por %p2768_p9, %p2767_p8 }
  0x51   :  { %p2770_p11 = pnand %p2769_p10, %p2763_p7 }
  0x53   :  { %2773 = shalt.err (!%p2770_p11)
}
  0x54   :  { %75 = dma.hbm_to_vmem [thread:$0]  %s3313_s4, 256, %s70_s10, [#allocation10], %s2808_s1, %s2808_s1, %s2809_s25  }
  0x55   :  { %2796 = dma.done.wait [#allocation4], 512  }
  0x56   :  { %2797 = vsyncadd [#allocation4], 4294966784 }
  0x57   :  { %2798 = dma.done.wait [#allocation7], 2048  }
  0x58   :  { %2799 = vsyncadd [#allocation7], 4294965248 }
  0x59   :  { %2800 = dma.done.wait [#allocation10], 512  }
  0x5a   :  { %2801 = vsyncadd [#allocation10], 4294966784  ;;  %v2594_v0 = vld [vmem:[#allocation11] sm:$0xff]   ;;  %v2595_v1 = vld [vmem:[#allocation11 + $0x8] sm:$0xff]   ;;  %vm147_vm0 = vcmask 261120   ;;  %v2813_v36 = vmov 0.0   ;;  %v131_v37 = vlaneseq }
  0x5b   :  { %2361 = vmatprep.subr.bf16.mxu1 %v2594_v0  ;;  %v2596_v2 = vld [vmem:[#allocation9] sm:$0xff]   ;;  %v103_v4 = vld [vmem:[#allocation6 + $0x8] sm:$0xff]  ;;  %v104_v5 = vld [vmem:[#allocation6 + $0x10] sm:$0xff]  ;;  %vm2814_vm1 = vmmov 0   ;;  %vm409_vm2 = vcmask 64512   ;;  %vm594_vm3 = vcmask 130048  }
  0x5c   :  { %2362 = vmatpush3.bf16.msra.mxu1 %v2594_v0  ;;  %v102_v3 = vld [vmem:[#allocation6] sm:$0xff]  ;;  %2353 = vmatprep.subr.bf16.mxu0 %v2596_v2  ;;  %v105_v7 = vld [vmem:[#allocation6 + $0x18] sm:$0xff]  ;;  %v2597_v8 = vld [vmem:[#allocation9 + $0x8] sm:$0xff]   ;;  %v132_v38 = vshrl.u32 %v131_v37, 7  ;;  %s2816_s21 = smov 112   ;;  %s2817_s22 = smov 104  }
  0x5d   :  { %2363 = vmatprep.subr.bf16.mxu1 %v2595_v1  ;;  %v110_v6 = vpack.c.bf16 %v103_v4, %v102_v3  ;;  %2354 = vmatpush3.bf16.msra.mxu0 %v2596_v2  ;;  %v96_v9 = vld [vmem:[#allocation3] sm:$0xff]  ;;  %v97_v10 = vld [vmem:[#allocation3 + $0x8] sm:$0xff]  ;;  %v111_v11 = vpack.c.bf16 %v105_v7, %v104_v5  ;;  %v98_v13 = vld [vmem:[#allocation3 + $0x10] sm:$0xff]  ;;  %s2818_s23 = smov 16   ;;  %vm1279_vm4 = vcmask 130112   ;;  %vm1732_vm5 = vcmask 195712  }
  0x5e   :  { %v100_v12 = vpack.c.bf16 %v97_v10, %v96_v9  ;;  %v99_v14 = vld [vmem:[#allocation3 + $0x18] sm:$0xff]  ;;  %v106_v15 = vld [vmem:[#allocation6 + $0x20] sm:$0xff]  ;;  %2355 = vmatprep.subr.bf16.mxu0 %v2597_v8  ;;  %v107_v16 = vld [vmem:[#allocation6 + $0x28] sm:$0xff]  ;;  %v209_v39 = vsub.s32 1, %v132_v38  ;;  %v133_v42 = vsub.s32 0, %v132_v38  ;;  %v306_v52 = vsub.s32 2, %v132_v38 }
  0x5f   :  { %2365 = vmatprep.mubr.msk.bf16.mxu1 %vm147_vm0, %v110_v6  ;;  %v101_v17 = vpack.c.bf16 %v99_v14, %v98_v13  ;;  %v112_v18 = vpack.c.bf16 %v107_v16, %v106_v15  ;;  %v2598_v19 = vld [vmem:[%s3314_s5] sm:$0xff]   ;;  %v2599_v20 = vld [vmem:[%s3314_s5 + $0x8] sm:$0xff]   ;;  %v108_v23 = vld [vmem:[#allocation6 + $0x30] sm:$0xff]  ;;  %s2819_s24 = smov 24   ;;  %vm2185_vm6 = vcmask 261312   ;;  %s2820_s26 = smov [#allocation12]  }
  0x60   :  { %2364 = vmatpush3.bf16.msra.mxu1 %v2595_v1  ;;  %2357 = vmatprep.mubr.msk.bf16.mxu0 %vm147_vm0, %v100_v12  ;;  %v114_v21 = vld [vmem:[#allocation8] sm:$0xff]  ;;  %v115_v22 = vld [vmem:[#allocation8 + $0x8] sm:$0xff]  ;;  %v109_v24 = vld [vmem:[#allocation6 + $0x38] sm:$0xff]  ;;  %s2211_s28 = sshll.u32 %s2820_s26, 4  ;;  %s2212_s28 = int_to_ptr.vmem [resolvable:$true] %s2211_s28 }
  0x61   :  { %2356 = vmatpush3.bf16.msra.mxu0 %v2597_v8  ;;  %v122_v25 = vpack.c.bf16 %v115_v22, %v114_v21  ;;  %v116_v26 = vld [vmem:[#allocation8 + $0x10] sm:$0xff]  ;;  %v117_v27 = vld [vmem:[#allocation8 + $0x18] sm:$0xff]  ;;  %v113_v28 = vpack.c.bf16 %v109_v24, %v108_v23  ;;  %v118_v30 = vld [vmem:[#allocation8 + $0x20] sm:$0xff]  ;;  %2385 = vmatprep.subr.bf16.mxu1 %v2813_v36  ;;  %s2774_s29 = scalar_lea.vmem %s2212_s28, 512  ;;  %p2779_p13 = scmp.lt.s32.totalorder %s2212_s28, %s2212_s28 }
  0x62   :  { %2373 = vmatprep.subr.bf16.mxu0 %v2598_v19  ;;  %v123_v29 = vpack.c.bf16 %v117_v27, %v116_v26  ;;  %v119_v31 = vld [vmem:[#allocation8 + $0x28] sm:$0xff]  ;;  %v120_v33 = vld [vmem:[#allocation8 + $0x30] sm:$0xff]  ;;  %v121_v34 = vld [vmem:[#allocation8 + $0x38] sm:$0xff]  ;;  %p2775_p12 = scmp.ne.s32.totalorder %s2212_s28, %s2774_s29  ;;  %p2780_p0 = scmp.lt.s32.totalorder %s2774_s29, %s2774_s29 }
  0x63   :  { %2366 = vmatmul.mubr.msk.bf16.vlgmr.msra.gmra.mrb[0].mxu1 %vm147_vm0, %v111_v11  ;;  %v124_v32 = vpack.c.bf16 %v119_v31, %v118_v30  ;;  %v125_v35 = vpack.c.bf16 %v121_v34, %v120_v33  ;;  %v126_v40 = vld [vmem:[%s3315_s6] sm:$0x7]  ;;  %s2815_s6 = smov 120  }
  0x64   :  { %2369 = vmatprep.mubr.msk.bf16.mxu1 %vm147_vm0, %v112_v18  ;;  %2358 = vmatmul.mubr.msk.bf16.vlgmr.msra.gmra.mrb[0].mxu0 %vm147_vm0, %v101_v17  ;;  %v210_v41 = vrot.slane %v126_v40, %v209_v39  ;;  %v134_v50 = vrot.slane %v126_v40, %v133_v42  ;;  %v307_v61 = vrot.slane %v126_v40, %v306_v52  ;;  %p2781_p1 = por %p2780_p0, %p2779_p13 }
  0x65   :  { %2374 = vmatpush3.bf16.msra.mxu0 %v2598_v19  ;;  %2377 = vmatprep.mubr.msk.bf16.mxu0 %vm147_vm0, %v122_v25 }
  0x66   :  { %2375 = vmatprep.subr.bf16.mxu0 %v2599_v20  ;;  %p2782_p2 = pnand %p2781_p1, %p2775_p12 }
  0x69   :  { %2376 = vmatpush3.bf16.msra.mxu0 %v2599_v20 }
  0x6a   :  { %2391 = vmatprep.subr.bf16.mxu0 %v2813_v36 }
  0x6b   :  { %2370 = vmatmul.mubr.msk.bf16.gmra.mrb[4].mxu1 %vm147_vm0, %v113_v28 }
  0x6c   :  { %2378 = vmatmul.mubr.msk.bf16.vlgmr.msra.gmra.mrb[4].mxu0 %vm147_vm0, %v123_v29  ;;  %2387 = vmatprep.mubr.msk.bf16.mxu1 %vm2814_vm1, %v2813_v36 }
  0x6d   :  { %2381 = vmatprep.mubr.msk.bf16.mxu0 %vm147_vm0, %v124_v32 }
  0x74   :  { %2382 = vmatmul.mubr.msk.bf16.gmra.mrb[8].mxu0 %vm147_vm0, %v125_v35 }
  0x75   :  { %2393 = vmatprep.mubr.msk.bf16.mxu0 %vm2814_vm1, %v2813_v36 }
 0x136   :  { %v2367_v43 = vpop.f32.mrb[0].mxu1 }
 0x137   :  { %v269_v44 = vpop.f32.mrb[1].mxu1  ;;  %v2359_v46 = vpop.f32.mrb[0].mxu0  ;;  %v278_v47 = vadd.f32 %v2367_v43, %v210_v41 }
 0x138   :  { %v2368_v45 = vpop.f32.mrb[2].mxu1  ;;  %v188_v51 = vpop.f32.mrb[1].mxu0  ;;  %v270_v53 = vadd.f32 %v269_v44, %v210_v41  ;;  %v197_v25 = vadd.f32 %v2359_v46, %v134_v50 }
 0x139   :  { %v281_v48 = vadd.f32 %v2368_v45, %v210_v41  ;;  %v272_v49 = vpop.f32.mrb[3].mxu1  ;;  %v2360_v55 = vpop.f32.mrb[2].mxu0  ;;  %v189_v62 = vadd.f32 %v188_v51, %v134_v50 }
 0x13a   :  { %v273_v54 = vadd.f32 %v272_v49, %v210_v41  ;;  %v191_v57 = vpop.f32.mrb[3].mxu0  ;;  %v200_v24 = vadd.f32 %v2360_v55, %v134_v50  ;;  %v3013_v27 = vpack.c.bf16 %v197_v25, %v197_v25 }
 0x13b   :  { %v2975_v56 = vpack.c.bf16 %v281_v48, %v278_v47  ;;  %v192_v60 = vadd.f32 %v191_v57, %v134_v50  ;;  %v2987_v10 = vpack.c.bf16 %v189_v62, %v189_v62 }
 0x13c   :  { %v2977_v58 = vpack.c.bf16 %v273_v54, %v270_v53  ;;  %v3011_v26 = vpack.c.bf16 %v200_v24, %v200_v24 }
 0x13d   :  { %v460_v59 = vsel %vm409_vm2, %v2975_v56, 0  ;;  %v2985_v5 = vpack.c.bf16 %v192_v60, %v192_v60 }
 0x13e   :  { %v2371_v63 = vpop.f32.mrb[4].mxu1  ;;  %2392 = vmatpush3.bf16.xpose.msra.mxu0 %v460_v59  ;;  %v414_v0 = vsel %vm409_vm2, %v2977_v58, 0 }
 0x13f   :  { %v285_v1 = vpop.f32.mrb[5].mxu1  ;;  %2386 = vmatpush3.bf16.xpose.msra.mxu1 %v414_v0  ;;  %2403 = vmatprep.subr.bf16.mxu0 %v2813_v36  ;;  %v2379_v3 = vpop.f32.mrb[4].mxu0  ;;  %v294_v4 = vadd.f32 %v2371_v63, %v210_v41 }
 0x140   :  { %v2372_v2 = vpop.f32.mrb[6].mxu1  ;;  %2397 = vmatprep.subr.bf16.mxu1 %v2813_v36  ;;  %v375_v8 = vadd.f32 %v2379_v3, %v307_v61  ;;  %v366_v9 = vpop.f32.mrb[5].mxu0  ;;  %v286_v11 = vadd.f32 %v285_v1, %v210_v41 }
 0x141   :  { %v297_v6 = vadd.f32 %v2372_v2, %v210_v41  ;;  %v288_v7 = vpop.f32.mrb[7].mxu1  ;;  %v367_v13 = vadd.f32 %v366_v9, %v307_v61  ;;  %v2380_v14 = vpop.f32.mrb[6].mxu0 }
 0x142   :  { %v289_v12 = vadd.f32 %v288_v7, %v210_v41  ;;  %v378_v16 = vadd.f32 %v2380_v14, %v307_v61  ;;  %v369_v17 = vpop.f32.mrb[7].mxu0 }
 0x143   :  { %v2989_v15 = vpack.c.bf16 %v297_v6, %v294_v4  ;;  %v370_v19 = vadd.f32 %v369_v17, %v307_v61 }
 0x144   :  { %v2991_v18 = vpack.c.bf16 %v289_v12, %v286_v11  ;;  %v2997_v21 = vpack.c.bf16 %v378_v16, %v375_v8 }
 0x145   :  { %2394 = vmatmul.mubr.msk.bf16.vlgmr.msra.gmra.mrb[12].mxu0 %vm409_vm2, %v2985_v5  ;;  %v552_v20 = vsel %vm409_vm2, %v2989_v15, 0  ;;  %v3003_v23 = vpack.c.bf16 %v370_v19, %v367_v13 }
 0x146   :  { %2388 = vmatmul.mubr.msk.bf16.vlgmr.msra.gmra.mrb[8].mxu1 %vm409_vm2, %v2987_v10  ;;  %2404 = vmatpush3.bf16.xpose.msra.mxu0 %v552_v20  ;;  %v506_v22 = vsel %vm409_vm2, %v2991_v18, 0 }
 0x147   :  { %2398 = vmatpush3.bf16.xpose.msra.mxu1 %v506_v22  ;;  %2405 = vmatprep.mubr.msk.bf16.mxu0 %vm2814_vm1, %v2813_v36  ;;  %v2383_v28 = vpop.f32.mrb[8].mxu0 }
 0x148   :  { %2399 = vmatprep.mubr.msk.bf16.mxu1 %vm2814_vm1, %v2813_v36  ;;  %2409 = vmatprep.subr.bf16.mxu1 %v2813_v36  ;;  %v391_v29 = vadd.f32 %v2383_v28, %v307_v61  ;;  %v382_v30 = vpop.f32.mrb[9].mxu0 }
 0x149   :  { %2415 = vmatprep.subr.bf16.mxu0 %v2813_v36  ;;  %v383_v31 = vadd.f32 %v382_v30, %v307_v61  ;;  %v2384_v32 = vpop.f32.mrb[10].mxu0 }
 0x14a   :  { %v394_v33 = vadd.f32 %v2384_v32, %v307_v61  ;;  %v385_v34 = vpop.f32.mrb[11].mxu0 }
 0x14b   :  { %v386_v35 = vadd.f32 %v385_v34, %v307_v61 }
 0x14c   :  { %v3027_v37 = vpack.c.bf16 %v394_v33, %v391_v29 }
 0x14d   :  { %2406 = vmatmul.mubr.msk.bf16.vlgmr.msra.gmra.mrb[16].mxu0 %vm409_vm2, %v3011_v26  ;;  %v3029_v38 = vpack.c.bf16 %v386_v35, %v383_v31 }
 0x14e   :  { %2400 = vmatmul.mubr.msk.bf16.vlgmr.msra.gmra.mrb[12].mxu1 %vm409_vm2, %v3013_v27  ;;  %2416 = vmatpush3.bf16.msra.mxu0 %v2997_v21 }
 0x14f   :  { %2410 = vmatpush3.bf16.msra.mxu1 %v3003_v23  ;;  %2411 = vmatprep.mubr.msk.bf16.mxu1 %vm2814_vm1, %v2813_v36 }
 0x150   :  { %2421 = vmatprep.subr.bf16.mxu1 %v2813_v36  ;;  %2417 = vmatprep.mubr.msk.bf16.mxu0 %vm2814_vm1, %v2813_v36 }
 0x151   :  { %2427 = vmatprep.subr.bf16.mxu0 %v2813_v36 }
 0x218   :  { %v496_v39 = vpop.f32.mrb[12].mxu0 }
 0x219   :  { %v450_v40 = vpop.f32.mrb[8].mxu1  ;;  %v2395_v41 = vpop.f32.mrb[13].mxu0  ;;  %v598_v48 = vsel %vm594_vm3, %v496_v39, -inf }
 0x21a   :  { %v2389_v42 = vpop.f32.mrb[9].mxu1  ;;  %v499_v43 = vpop.f32.mrb[14].mxu0  ;;  %v595_v44 = vsel %vm594_vm3, %v450_v40, -inf }
 0x21b   :  { %596 = vmax.xlane.f32.xlu0 %v595_v44  ;;  %v453_v45 = vpop.f32.mrb[10].mxu1  ;;  %v2396_v46 = vpop.f32.mrb[15].mxu0 }
 0x21c   :  { %v2390_v47 = vpop.f32.mrb[11].mxu1 }
 0x21f   :  { %599 = vmax.xlane.f32.xlu0 %v598_v48 }
 0x220   :  { %v588_v49 = vpop.f32.mrb[16].mxu0 }
 0x221   :  { %v542_v50 = vpop.f32.mrb[12].mxu1  ;;  %v2407_v51 = vpop.f32.mrb[17].mxu0  ;;  %v604_v60 = vsel %vm594_vm3, %v588_v49, -inf }
 0x222   :  { %v2401_v52 = vpop.f32.mrb[13].mxu1  ;;  %v591_v53 = vpop.f32.mrb[18].mxu0  ;;  %v601_v54 = vsel %vm594_vm3, %v542_v50, -inf }
 0x223   :  { %v2408_v55 = vpop.f32.mrb[19].mxu0  ;;  %602 = vmax.xlane.f32.xlu1 %v601_v54  ;;  %v545_v57 = vpop.f32.mrb[14].mxu1 }
 0x224   :  { %v2402_v59 = vpop.f32.mrb[15].mxu1 }
 0x227   :  { %605 = vmax.xlane.f32.xlu1 %v604_v60 }
 0x2a8   :  { %v597_v61 = vpop.xlane.xlu0 %596 }
 0x2a9   :  { %v607_v62 = vsub.f32 %v450_v40, %v597_v61 }
 0x2ab   :  { %v611_v63 = vmul.f32 1.442695, %v607_v62 }
 0x2ac   :  { %v600_v0 = vpop.xlane.xlu0 %599 }
 0x2ad   :  { %2600 = vpow2.f32 %v611_v63  ;;  %v608_v1 = vsub.f32 %v496_v39, %v600_v0 }
 0x2af   :  { %v613_v2 = vmul.f32 1.442695, %v608_v1 }
 0x2b0   :  { %v603_v3 = vpop.xlane.xlu1 %602 }
 0x2b1   :  { %2602 = vpow2.f32 %v613_v2  ;;  %v609_v4 = vsub.f32 %v542_v50, %v603_v3 }
 0x2b3   :  { %v615_v6 = vmul.f32 1.442695, %v609_v4 }
 0x2b4   :  { %v606_v7 = vpop.xlane.xlu1 %605 }
 0x2b5   :  { %2604 = vpow2.f32 %v615_v6  ;;  %v610_v8 = vsub.f32 %v588_v49, %v606_v7 }
 0x2b7   :  { %v2601_v9 = vpop.eup %2600  ;;  %v617_v11 = vmul.f32 1.442695, %v610_v8 }
 0x2b8   :  { %v619_v12 = vsel %vm594_vm3, %v2601_v9, 0.0 }
 0x2b9   :  { %2606 = vpow2.f32 %v617_v11  ;;  %620 = vadd.xlane.f32.xlu0 %v619_v12 }
 0x2bb   :  { %v2603_v13 = vpop.eup %2602 }
 0x2bc   :  { %v622_v14 = vsel %vm594_vm3, %v2603_v13, 0.0 }
 0x2bd   :  { %623 = vadd.xlane.f32.xlu1 %v622_v14 }
 0x2bf   :  { %v2605_v16 = vpop.eup %2604 }
 0x2c0   :  { %v625_v17 = vsel %vm594_vm3, %v2605_v16, 0.0 }
 0x2c1   :  { %626 = vadd.xlane.f32.xlu0 %v625_v17 }
 0x2c3   :  { %v2607_v19 = vpop.eup %2606 }
 0x2c4   :  { %v628_v20 = vsel %vm594_vm3, %v2607_v19, 0.0 }
 0x2c5   :  { %629 = vadd.xlane.f32.xlu1 %v628_v20 }
 0x2d6   :  { %875 = vrot.lane.b32.xlu1 %v2975_v56, %s2815_s6 }
 0x2d7   :  { %823 = vrot.lane.b32.xlu0 %v2977_v58, %s2815_s6 }
 0x2da   :  { %820 = vrot.lane.b32.xlu1 %v2987_v10, %s2815_s6 }
 0x2db   :  { %927 = vrot.lane.b32.xlu0 %v2991_v18, %s2815_s6 }
 0x2de   :  { %872 = vrot.lane.b32.xlu1 %v2985_v5, %s2815_s6 }
 0x2df   :  { %924 = vrot.lane.b32.xlu0 %v3013_v27, %s2815_s6 }
 0x2e2   :  { %979 = vrot.lane.b32.xlu1 %v2989_v15, %s2815_s6 }
 0x2e6   :  { %976 = vrot.lane.b32.xlu1 %v3011_v26, %s2815_s6 }
 0x346   :  { %v621_v22 = vpop.xlane.xlu0 %620 }
 0x347   :  { %2608 = vrcp.f32 %v621_v22 }
 0x34a   :  { %v624_v24 = vpop.xlane.xlu1 %623 }
 0x34b   :  { %2610 = vrcp.f32 %v624_v24 }
 0x34e   :  { %v627_v25 = vpop.xlane.xlu0 %626 }
 0x34f   :  { %2612 = vrcp.f32 %v627_v25 }
 0x351   :  { %v2609_v28 = vpop.eup %2608 }
 0x352   :  { %v635_v29 = vmul.f32 %v2609_v28, %v2601_v9  ;;  %v630_v30 = vpop.xlane.xlu1 %629  ;;  %v824_v41 = vpop.permute.xlu0 %823 }
 0x353   :  { %2614 = vrcp.f32 %v630_v30  ;;  %v829_v46 = vsel %vm409_vm2, %v824_v41, 0 }
 0x354   :  { %v639_v31 = vpack.c.bf16 %v635_v29, %v635_v29 }
 0x355   :  { %v2611_v32 = vpop.eup %2610 }
 0x356   :  { %v636_v33 = vmul.f32 %v2611_v32, %v2603_v13  ;;  %2412 = vmatmul.mubr.msk.bf16.vlgmr.msra.gmra.mrb[16].mxu1 %vm594_vm3, %v639_v31  ;;  %v876_v34 = vpop.permute.xlu1 %875  ;;  %v928_v50 = vpop.permute.xlu0 %927 }
 0x357   :  { %2422 = vmatpush3.bf16.msra.mxu1 %v3029_v38  ;;  %2423 = vmatprep.mubr.msk.bf16.mxu1 %vm2814_vm1, %v2813_v36  ;;  %v881_v49 = vsel %vm409_vm2, %v876_v34, 0  ;;  %v933_v51 = vsel %vm409_vm2, %v928_v50, 0 }
 0x358   :  { %v640_v35 = vpack.c.bf16 %v636_v33, %v636_v33  ;;  %2433 = vmatprep.subr.bf16.mxu1 %v2813_v36 }
 0x359   :  { %v2613_v39 = vpop.eup %2612 }
 0x35a   :  { %v637_v40 = vmul.f32 %v2613_v39, %v2605_v16  ;;  %2418 = vmatmul.mubr.msk.bf16.vlgmr.msra.gmra.mrb[20].mxu0 %vm594_vm3, %v640_v35  ;;  %v821_v42 = vpop.permute.xlu1 %820  ;;  %v925_v54 = vpop.permute.xlu0 %924 }
 0x35b   :  { %2428 = vmatpush3.bf16.msra.mxu0 %v3027_v37  ;;  %2429 = vmatprep.mubr.msk.bf16.mxu0 %vm2814_vm1, %v2813_v36 }
 0x35c   :  { %v641_v43 = vpack.c.bf16 %v637_v40, %v637_v40  ;;  %2439 = vmatprep.subr.bf16.mxu0 %v2813_v36 }
 0x35d   :  { %v2615_v44 = vpop.eup %2614 }
 0x35e   :  { %v638_v45 = vmul.f32 %v2615_v44, %v2607_v19  ;;  %2424 = vmatmul.mubr.msk.bf16.vlgmr.msra.gmra.mrb[20].mxu1 %vm594_vm3, %v641_v43  ;;  %v873_v48 = vpop.permute.xlu1 %872 }
 0x35f   :  { %2435 = vmatprep.mubr.msk.bf16.mxu1 %vm2814_vm1, %v2813_v36 }
 0x360   :  { %2434 = vmatpush3.bf16.xpose.msra.mxu1 %v829_v46  ;;  %v642_v47 = vpack.c.bf16 %v638_v45, %v638_v45 }
 0x361   :  { %2445 = vmatprep.subr.bf16.mxu1 %v2813_v36 }
 0x362   :  { %2430 = vmatmul.mubr.msk.bf16.vlgmr.msra.gmra.mrb[24].mxu0 %vm594_vm3, %v642_v47  ;;  %v980_v52 = vpop.permute.xlu1 %979 }
 0x363   :  { %2441 = vmatprep.mubr.msk.bf16.mxu0 %vm2814_vm1, %v2813_v36  ;;  %v985_v53 = vsel %vm409_vm2, %v980_v52, 0 }
 0x364   :  { %2440 = vmatpush3.bf16.xpose.msra.mxu0 %v881_v49 }
 0x365   :  { %2451 = vmatprep.subr.bf16.mxu0 %v2813_v36 }
 0x366   :  { %v977_v55 = vpop.permute.xlu1 %976 }
 0x367   :  { %2436 = vmatmul.mubr.msk.bf16.vlgmr.msra.gmra.mrb[24].mxu1 %vm409_vm2, %v821_v42 }
 0x368   :  { %2446 = vmatpush3.bf16.xpose.msra.mxu1 %v933_v51  ;;  %2447 = vmatprep.mubr.msk.bf16.mxu1 %vm2814_vm1, %v2813_v36 }
 0x369   :  { %2457 = vmatprep.subr.bf16.mxu1 %v2813_v36 }
 0x36b   :  { %2442 = vmatmul.mubr.msk.bf16.vlgmr.msra.gmra.mrb[28].mxu0 %vm409_vm2, %v873_v48 }
 0x36c   :  { %2452 = vmatpush3.bf16.xpose.msra.mxu0 %v985_v53  ;;  %2453 = vmatprep.mubr.msk.bf16.mxu0 %vm2814_vm1, %v2813_v36 }
 0x36d   :  { %2463 = vmatprep.subr.bf16.mxu0 %v2813_v36 }
 0x36f   :  { %2448 = vmatmul.mubr.msk.bf16.vlgmr.msra.gmra.mrb[28].mxu1 %vm409_vm2, %v925_v54 }
 0x370   :  { %2459 = vmatprep.mubr.msk.bf16.mxu1 %vm2814_vm1, %v2813_v36 }
 0x373   :  { %2454 = vmatmul.mubr.msk.bf16.vlgmr.msra.gmra.mrb[32].mxu0 %vm409_vm2, %v977_v55 }
 0x374   :  { %2465 = vmatprep.mubr.msk.bf16.mxu0 %vm2814_vm1, %v2813_v36 }
 0x429   :  { %v680_v57 = vpop.f32.mrb[16].mxu1 }
 0x42a   :  { %815 = vst.msk [vmem:[#allocation2] sm:$0xff] %vm409_vm2, %v680_v57  ;;  %v2413_v59 = vpop.f32.mrb[17].mxu1 }
 0x42b   :  { %v683_v60 = vpop.f32.mrb[18].mxu1 }
 0x42c   :  { %v2414_v61 = vpop.f32.mrb[19].mxu1 }
 0x42d   :  { %v723_v62 = vpop.f32.mrb[20].mxu0 }
 0x42e   :  { %816 = vst.msk [vmem:[#allocation2 + $0x8] sm:$0xff] %vm409_vm2, %v723_v62  ;;  %v2419_v63 = vpop.f32.mrb[21].mxu0 }
 0x42f   :  { %v726_v0 = vpop.f32.mrb[22].mxu0 }
 0x430   :  { %v2420_v1 = vpop.f32.mrb[23].mxu0 }
 0x431   :  { %v766_v2 = vpop.f32.mrb[20].mxu1 }
 0x432   :  { %817 = vst.msk [vmem:[#allocation2 + $0x10] sm:$0xff] %vm409_vm2, %v766_v2  ;;  %v2425_v3 = vpop.f32.mrb[21].mxu1 }
 0x433   :  { %v769_v4 = vpop.f32.mrb[22].mxu1 }
 0x434   :  { %v2426_v6 = vpop.f32.mrb[23].mxu1 }
 0x435   :  { %v809_v7 = vpop.f32.mrb[24].mxu0 }
 0x436   :  { %818 = vst.msk [vmem:[#allocation2 + $0x18] sm:$0xff] %vm409_vm2, %v809_v7  ;;  %v2431_v8 = vpop.f32.mrb[25].mxu0 }
 0x437   :  { %v812_v9 = vpop.f32.mrb[26].mxu0 }
 0x438   :  { %v2432_v11 = vpop.f32.mrb[27].mxu0 }
 0x43a   :  { %v865_v12 = vpop.f32.mrb[24].mxu1 }
 0x43b   :  { %v2437_v13 = vpop.f32.mrb[25].mxu1  ;;  %v1027_v14 = vsel %vm594_vm3, %v865_v12, -inf }
 0x43c   :  { %1028 = vmax.xlane.f32.xlu0 %v1027_v14  ;;  %v868_v16 = vpop.f32.mrb[26].mxu1 }
 0x43d   :  { %v2438_v17 = vpop.f32.mrb[27].mxu1 }
 0x43e   :  { %v917_v19 = vpop.f32.mrb[28].mxu0 }
 0x43f   :  { %v2443_v20 = vpop.f32.mrb[29].mxu0  ;;  %v1030_v22 = vsel %vm594_vm3, %v917_v19, -inf }
 0x440   :  { %1031 = vmax.xlane.f32.xlu1 %v1030_v22  ;;  %v920_v24 = vpop.f32.mrb[30].mxu0 }
 0x441   :  { %v2444_v25 = vpop.f32.mrb[31].mxu0 }
 0x442   :  { %v969_v28 = vpop.f32.mrb[28].mxu1 }
 0x443   :  { %v2449_v29 = vpop.f32.mrb[29].mxu1  ;;  %v1033_v30 = vsel %vm594_vm3, %v969_v28, -inf }
 0x444   :  { %1034 = vmax.xlane.f32.xlu0 %v1033_v30  ;;  %v972_v31 = vpop.f32.mrb[30].mxu1 }
 0x445   :  { %v2450_v32 = vpop.f32.mrb[31].mxu1 }
 0x446   :  { %v1021_v33 = vpop.f32.mrb[32].mxu0 }
 0x447   :  { %v2455_v34 = vpop.f32.mrb[33].mxu0  ;;  %v1036_v35 = vsel %vm594_vm3, %v1021_v33, -inf }
 0x448   :  { %v1024_v39 = vpop.f32.mrb[34].mxu0  ;;  %1037 = vmax.xlane.f32.xlu0 %v1036_v35 }
 0x449   :  { %v2456_v40 = vpop.f32.mrb[35].mxu0 }
 0x4c9   :  { %v1029_v41 = vpop.xlane.xlu0 %1028 }
 0x4ca   :  { %v1039_v42 = vsub.f32 %v865_v12, %v1029_v41 }
 0x4cc   :  { %v1043_v43 = vmul.f32 1.442695, %v1039_v42 }
 0x4cd   :  { %v1032_v44 = vpop.xlane.xlu1 %1031 }
 0x4ce   :  { %2616 = vpow2.f32 %v1043_v43  ;;  %v1040_v45 = vsub.f32 %v917_v19, %v1032_v44 }
 0x4d0   :  { %v1045_v46 = vmul.f32 1.442695, %v1040_v45 }
 0x4d1   :  { %v1035_v51 = vpop.xlane.xlu0 %1034 }
 0x4d2   :  { %2618 = vpow2.f32 %v1045_v46  ;;  %v1041_v52 = vsub.f32 %v969_v28, %v1035_v51 }
 0x4d4   :  { %v1047_v53 = vmul.f32 1.442695, %v1041_v52 }
 0x4d5   :  { %v1038_v54 = vpop.xlane.xlu0 %1037 }
 0x4d6   :  { %2620 = vpow2.f32 %v1047_v53  ;;  %v1042_v55 = vsub.f32 %v1021_v33, %v1038_v54 }
 0x4d8   :  { %v2617_v47 = vpop.eup %2616  ;;  %v1049_v57 = vmul.f32 1.442695, %v1042_v55 }
 0x4d9   :  { %v1051_v48 = vsel %vm594_vm3, %v2617_v47, 0.0 }
 0x4da   :  { %1052 = vadd.xlane.f32.xlu0 %v1051_v48  ;;  %2622 = vpow2.f32 %v1049_v57 }
 0x4dc   :  { %v2619_v49 = vpop.eup %2618 }
 0x4dd   :  { %v1054_v50 = vsel %vm594_vm3, %v2619_v49, 0.0 }
 0x4de   :  { %1055 = vadd.xlane.f32.xlu1 %v1054_v50 }
 0x4e0   :  { %v2621_v59 = vpop.eup %2620 }
 0x4e1   :  { %v1057_v60 = vsel %vm594_vm3, %v2621_v59, 0.0 }
 0x4e4   :  { %v2623_v61 = vpop.eup %2622 }
 0x4e5   :  { %v1060_v62 = vsel %vm594_vm3, %v2623_v61, 0.0 }
 0x4ef   :  { %1123 = vrot.lane.b32.xlu1 %v2997_v21, %s2815_s6 }
 0x4f0   :  { %1076 = vrot.lane.b32.xlu0 %v3003_v23, %s2815_s6 }
 0x4f3   :  { %1170 = vrot.lane.b32.xlu1 %v3029_v38, %s2815_s6 }
 0x4f7   :  { %1217 = vrot.lane.b32.xlu1 %v3027_v37, %s2815_s6 }
 0x50f   :  { %1058 = vadd.xlane.f32.xlu0 %v1057_v60 }
 0x51b   :  { %1061 = vadd.xlane.f32.xlu1 %v1060_v62 }
 0x525   :  { %1286 = vrot.lane.b32.xlu0 %v2977_v58, %s2816_s21 }
 0x529   :  { %1284 = vrot.lane.b32.xlu0 %v2987_v10, %s2816_s21 }
 0x52c   :  { %1336 = vrot.lane.b32.xlu1 %v2975_v56, %s2816_s21 }
 0x52d   :  { %1386 = vrot.lane.b32.xlu0 %v2991_v18, %s2816_s21 }
 0x530   :  { %1334 = vrot.lane.b32.xlu1 %v2985_v5, %s2816_s21 }
 0x531   :  { %1384 = vrot.lane.b32.xlu0 %v3013_v27, %s2816_s21 }
 0x534   :  { %1436 = vrot.lane.b32.xlu1 %v2989_v15, %s2816_s21 }
 0x538   :  { %1434 = vrot.lane.b32.xlu1 %v3011_v26, %s2816_s21 }
 0x567   :  { %v1053_v63 = vpop.xlane.xlu0 %1052 }
 0x568   :  { %2624 = vrcp.f32 %v1053_v63 }
 0x56b   :  { %v1056_v0 = vpop.xlane.xlu1 %1055  ;;  %v1077_v1 = vpop.permute.xlu0 %1076 }
 0x56c   :  { %2626 = vrcp.f32 %v1056_v0  ;;  %2458 = vmatpush3.bf16.msra.mxu1 %v1077_v1 }
 0x56d   :  { %2469 = vmatprep.subr.bf16.mxu1 %v2813_v36 }
 0x56f   :  { %v1124_v2 = vpop.permute.xlu1 %1123 }
 0x570   :  { %2464 = vmatpush3.bf16.msra.mxu0 %v1124_v2 }
 0x571   :  { %2475 = vmatprep.subr.bf16.mxu0 %v2813_v36 }
 0x572   :  { %v2625_v3 = vpop.eup %2624 }
 0x573   :  { %v1067_v4 = vmul.f32 %v2625_v3, %v2617_v47  ;;  %v1171_v6 = vpop.permute.xlu1 %1170 }
 0x575   :  { %v1071_v7 = vpack.c.bf16 %v1067_v4, %v1067_v4 }
 0x576   :  { %v2627_v8 = vpop.eup %2626 }
 0x577   :  { %v1068_v9 = vmul.f32 %v2627_v8, %v2619_v49  ;;  %2460 = vmatmul.mubr.msk.bf16.vlgmr.msra.gmra.mrb[32].mxu1 %vm594_vm3, %v1071_v7  ;;  %v1218_v12 = vpop.permute.xlu1 %1217 }
 0x578   :  { %2470 = vmatpush3.bf16.msra.mxu1 %v1171_v6  ;;  %2471 = vmatprep.mubr.msk.bf16.mxu1 %vm2814_vm1, %v2813_v36 }
 0x579   :  { %v1072_v11 = vpack.c.bf16 %v1068_v9, %v1068_v9  ;;  %2481 = vmatprep.subr.bf16.mxu1 %v2813_v36 }
 0x57b   :  { %2466 = vmatmul.mubr.msk.bf16.vlgmr.msra.gmra.mrb[36].mxu0 %vm594_vm3, %v1072_v11 }
 0x57c   :  { %2476 = vmatpush3.bf16.msra.mxu0 %v1218_v12  ;;  %2477 = vmatprep.mubr.msk.bf16.mxu0 %vm2814_vm1, %v2813_v36 }
 0x57d   :  { %2487 = vmatprep.subr.bf16.mxu0 %v2813_v36 }
 0x59c   :  { %v1059_v13 = vpop.xlane.xlu0 %1058 }
 0x59d   :  { %2628 = vrcp.f32 %v1059_v13 }
 0x5a0   :  { %v1287_v14 = vpop.permute.xlu0 %1286 }
 0x5a1   :  { %v1292_v24 = vsel %vm409_vm2, %v1287_v14, 0 }
 0x5a4   :  { %v1285_v22 = vpop.permute.xlu0 %1284 }
 0x5a7   :  { %v2629_v16 = vpop.eup %2628 }
 0x5a8   :  { %v1069_v17 = vmul.f32 %v2629_v16, %v2621_v59  ;;  %v1062_v19 = vpop.xlane.xlu1 %1061  ;;  %v1387_v25 = vpop.permute.xlu0 %1386 }
 0x5a9   :  { %2630 = vrcp.f32 %v1062_v19  ;;  %v1392_v31 = vsel %vm409_vm2, %v1387_v25, 0 }
 0x5aa   :  { %v1073_v20 = vpack.c.bf16 %v1069_v17, %v1069_v17 }
 0x5ac   :  { %2472 = vmatmul.mubr.msk.bf16.vlgmr.msra.gmra.mrb[36].mxu1 %vm594_vm3, %v1073_v20  ;;  %v1337_v28 = vpop.permute.xlu1 %1336  ;;  %v1385_v35 = vpop.permute.xlu0 %1384 }
 0x5ad   :  { %2482 = vmatpush3.bf16.xpose.msra.mxu1 %v1292_v24  ;;  %2483 = vmatprep.mubr.msk.bf16.mxu1 %vm2814_vm1, %v2813_v36  ;;  %v1342_v34 = vsel %vm409_vm2, %v1337_v28, 0 }
 0x5ae   :  { %2493 = vmatprep.subr.bf16.mxu1 %v2813_v36 }
 0x5b0   :  { %v1335_v33 = vpop.permute.xlu1 %1334 }
 0x5b3   :  { %v2631_v29 = vpop.eup %2630 }
 0x5b4   :  { %v1070_v30 = vmul.f32 %v2631_v29, %v2623_v61  ;;  %2484 = vmatmul.mubr.msk.bf16.vlgmr.msra.gmra.mrb[40].mxu1 %vm409_vm2, %v1285_v22  ;;  %v1437_v39 = vpop.permute.xlu1 %1436 }
 0x5b5   :  { %2494 = vmatpush3.bf16.xpose.msra.mxu1 %v1392_v31  ;;  %2495 = vmatprep.mubr.msk.bf16.mxu1 %vm2814_vm1, %v2813_v36  ;;  %v1442_v40 = vsel %vm409_vm2, %v1437_v39, 0 }
 0x5b6   :  { %v1074_v32 = vpack.c.bf16 %v1070_v30, %v1070_v30  ;;  %2505 = vmatprep.subr.bf16.mxu1 %v2813_v36 }
 0x5b8   :  { %2478 = vmatmul.mubr.msk.bf16.vlgmr.msra.gmra.mrb[40].mxu0 %vm594_vm3, %v1074_v32  ;;  %v1435_v41 = vpop.permute.xlu1 %1434 }
 0x5b9   :  { %2488 = vmatpush3.bf16.xpose.msra.mxu0 %v1342_v34  ;;  %2489 = vmatprep.mubr.msk.bf16.mxu0 %vm2814_vm1, %v2813_v36 }
 0x5ba   :  { %2499 = vmatprep.subr.bf16.mxu0 %v2813_v36 }
 0x5bc   :  { %2496 = vmatmul.mubr.msk.bf16.vlgmr.msra.gmra.mrb[44].mxu1 %vm409_vm2, %v1385_v35 }
 0x5bd   :  { %2507 = vmatprep.mubr.msk.bf16.mxu1 %vm2814_vm1, %v2813_v36 }
 0x5c0   :  { %2490 = vmatmul.mubr.msk.bf16.vlgmr.msra.gmra.mrb[44].mxu0 %vm409_vm2, %v1335_v33 }
 0x5c1   :  { %2500 = vmatpush3.bf16.xpose.msra.mxu0 %v1442_v40  ;;  %2501 = vmatprep.mubr.msk.bf16.mxu0 %vm2814_vm1, %v2813_v36 }
 0x5c2   :  { %2511 = vmatprep.subr.bf16.mxu0 %v2813_v36 }
 0x5c8   :  { %2502 = vmatmul.mubr.msk.bf16.vlgmr.msra.gmra.mrb[48].mxu0 %vm409_vm2, %v1435_v41 }
 0x5c9   :  { %2513 = vmatprep.mubr.msk.bf16.mxu0 %vm2814_vm1, %v2813_v36 }
 0x64a   :  { %v3163_v42 = vpop.f32.mrb[32].mxu1 }
 0x64b   :  { %v2461_v43 = vpop.f32.mrb[33].mxu1 }
 0x64c   :  { %v1119_v44 = vpop.f32.mrb[34].mxu1 }
 0x64d   :  { %v2462_v45 = vpop.f32.mrb[35].mxu1 }
 0x64e   :  { %v3165_v46 = vpop.f32.mrb[36].mxu0 }
 0x64f   :  { %v2467_v47 = vpop.f32.mrb[37].mxu0 }
 0x650   :  { %v1166_v48 = vpop.f32.mrb[38].mxu0 }
 0x651   :  { %v2468_v49 = vpop.f32.mrb[39].mxu0 }
 0x67f   :  { %v3167_v50 = vpop.f32.mrb[36].mxu1 }
 0x680   :  { %v2473_v51 = vpop.f32.mrb[37].mxu1 }
 0x681   :  { %v1213_v52 = vpop.f32.mrb[38].mxu1 }
 0x682   :  { %v2474_v53 = vpop.f32.mrb[39].mxu1 }
 0x687   :  { %v1328_v54 = vpop.f32.mrb[40].mxu1 }
 0x688   :  { %v2485_v55 = vpop.f32.mrb[41].mxu1  ;;  %v1484_v57 = vsel %vm594_vm3, %v1328_v54, -inf }
 0x689   :  { %1485 = vmax.xlane.f32.xlu0 %v1484_v57  ;;  %v1331_v59 = vpop.f32.mrb[42].mxu1 }
 0x68a   :  { %v2486_v60 = vpop.f32.mrb[43].mxu1 }
 0x68b   :  { %v3170_v61 = vpop.f32.mrb[40].mxu0 }
 0x68c   :  { %v2479_v62 = vpop.f32.mrb[41].mxu0 }
 0x68d   :  { %v1260_v63 = vpop.f32.mrb[42].mxu0 }
 0x68e   :  { %v2480_v0 = vpop.f32.mrb[43].mxu0 }
 0x68f   :  { %v1428_v1 = vpop.f32.mrb[44].mxu1 }
 0x690   :  { %v2497_v2 = vpop.f32.mrb[45].mxu1  ;;  %v1490_v3 = vsel %vm594_vm3, %v1428_v1, -inf }
 0x691   :  { %1491 = vmax.xlane.f32.xlu0 %v1490_v3  ;;  %v1431_v4 = vpop.f32.mrb[46].mxu1 }
 0x692   :  { %v2498_v6 = vpop.f32.mrb[47].mxu1 }
 0x693   :  { %v1378_v7 = vpop.f32.mrb[44].mxu0 }
 0x694   :  { %v2491_v8 = vpop.f32.mrb[45].mxu0  ;;  %v1487_v9 = vsel %vm594_vm3, %v1378_v7, -inf }
 0x695   :  { %1488 = vmax.xlane.f32.xlu1 %v1487_v9  ;;  %v1381_v11 = vpop.f32.mrb[46].mxu0 }
 0x696   :  { %v2492_v12 = vpop.f32.mrb[47].mxu0 }
 0x69b   :  { %v1478_v13 = vpop.f32.mrb[48].mxu0 }
 0x69c   :  { %v2503_v14 = vpop.f32.mrb[49].mxu0  ;;  %v1493_v16 = vsel %vm594_vm3, %v1478_v13, -inf }
 0x69d   :  { %v1481_v17 = vpop.f32.mrb[50].mxu0  ;;  %1494 = vmax.xlane.f32.xlu0 %v1493_v16 }
 0x69e   :  { %v2504_v19 = vpop.f32.mrb[51].mxu0 }
 0x716   :  { %v1486_v20 = vpop.xlane.xlu0 %1485 }
 0x717   :  { %v1496_v22 = vsub.f32 %v1328_v54, %v1486_v20 }
 0x719   :  { %v1500_v24 = vmul.f32 1.442695, %v1496_v22 }
 0x71b   :  { %2632 = vpow2.f32 %v1500_v24 }
 0x71e   :  { %v1492_v34 = vpop.xlane.xlu0 %1491 }
 0x71f   :  { %v1498_v35 = vsub.f32 %v1428_v1, %v1492_v34 }
 0x721   :  { %v1504_v39 = vmul.f32 1.442695, %v1498_v35 }
 0x722   :  { %v1489_v25 = vpop.xlane.xlu1 %1488 }
 0x723   :  { %v1497_v28 = vsub.f32 %v1378_v7, %v1489_v25 }
 0x725   :  { %v2633_v29 = vpop.eup %2632  ;;  %v1502_v30 = vmul.f32 1.442695, %v1497_v28 }
 0x726   :  { %v1508_v31 = vsel %vm594_vm3, %v2633_v29, 0.0 }
 0x727   :  { %2634 = vpow2.f32 %v1502_v30  ;;  %1509 = vadd.xlane.f32.xlu0 %v1508_v31 }
 0x728   :  { %2636 = vpow2.f32 %v1504_v39 }
 0x72a   :  { %v1495_v40 = vpop.xlane.xlu0 %1494 }
 0x72b   :  { %v1499_v43 = vsub.f32 %v1478_v13, %v1495_v40 }
 0x72d   :  { %v1506_v45 = vmul.f32 1.442695, %v1499_v43 }
 0x72f   :  { %2638 = vpow2.f32 %v1506_v45 }
 0x731   :  { %v2635_v32 = vpop.eup %2634 }
 0x732   :  { %v1511_v33 = vsel %vm594_vm3, %v2635_v32, 0.0  ;;  %v2637_v41 = vpop.eup %2636 }
 0x733   :  { %1512 = vadd.xlane.f32.xlu1 %v1511_v33  ;;  %v1514_v44 = vsel %vm594_vm3, %v2637_v41, 0.0 }
 0x739   :  { %v2639_v47 = vpop.eup %2638 }
 0x73a   :  { %v1517_v48 = vsel %vm594_vm3, %v2639_v47, 0.0 }
 0x73d   :  { %1532 = vrot.lane.b32.xlu0 %v3003_v23, %s2816_s21 }
 0x744   :  { %1578 = vrot.lane.b32.xlu1 %v2997_v21, %s2816_s21 }
 0x748   :  { %1624 = vrot.lane.b32.xlu1 %v3029_v38, %s2816_s21 }
 0x74c   :  { %1670 = vrot.lane.b32.xlu1 %v3027_v37, %s2816_s21 }
 0x75c   :  { %1515 = vadd.xlane.f32.xlu0 %v1514_v44 }
 0x770   :  { %1518 = vadd.xlane.f32.xlu1 %v1517_v48 }
 0x772   :  { %1739 = vrot.lane.b32.xlu0 %v2977_v58, %s2817_s22 }
 0x776   :  { %1737 = vrot.lane.b32.xlu0 %v2987_v10, %s2817_s22 }
 0x77a   :  { %1839 = vrot.lane.b32.xlu0 %v2991_v18, %s2817_s22 }
 0x77e   :  { %1837 = vrot.lane.b32.xlu0 %v3013_v27, %s2817_s22 }
 0x781   :  { %1789 = vrot.lane.b32.xlu1 %v2975_v56, %s2817_s22 }
 0x785   :  { %1787 = vrot.lane.b32.xlu1 %v2985_v5, %s2817_s22 }
 0x789   :  { %1889 = vrot.lane.b32.xlu1 %v2989_v15, %s2817_s22 }
 0x78d   :  { %1887 = vrot.lane.b32.xlu1 %v3011_v26, %s2817_s22 }
 0x7b4   :  { %v1510_v58 = vpop.xlane.xlu0 %1509 }
 0x7b5   :  { %2640 = vrcp.f32 %v1510_v58 }
 0x7b8   :  { %v1533_v10 = vpop.permute.xlu0 %1532 }
 0x7b9   :  { %2506 = vmatpush3.bf16.msra.mxu1 %v1533_v10 }
 0x7ba   :  { %2517 = vmatprep.subr.bf16.mxu1 %v2813_v36 }
 0x7bf   :  { %v2641_v18 = vpop.eup %2640 }
 0x7c0   :  { %v1524_v27 = vmul.f32 %v2641_v18, %v2633_v29  ;;  %v1513_v49 = vpop.xlane.xlu1 %1512 }
 0x7c1   :  { %2642 = vrcp.f32 %v1513_v49 }
 0x7c2   :  { %v1528_v56 = vpack.c.bf16 %v1524_v27, %v1524_v27 }
 0x7c4   :  { %v1579_v51 = vpop.permute.xlu1 %1578  ;;  %2508 = vmatmul.mubr.msk.bf16.vlgmr.msra.gmra.mrb[48].mxu1 %vm594_vm3, %v1528_v56 }
 0x7c5   :  { %2512 = vmatpush3.bf16.msra.mxu0 %v1579_v51  ;;  %2519 = vmatprep.mubr.msk.bf16.mxu1 %vm2814_vm1, %v2813_v36 }
 0x7c6   :  { %2523 = vmatprep.subr.bf16.mxu0 %v2813_v36 }
 0x7c8   :  { %v1625_v5 = vpop.permute.xlu1 %1624 }
 0x7c9   :  { %2518 = vmatpush3.bf16.msra.mxu1 %v1625_v5 }
 0x7ca   :  { %2529 = vmatprep.subr.bf16.mxu1 %v2813_v36 }
 0x7cb   :  { %v2643_v15 = vpop.eup %2642 }
 0x7cc   :  { %v1525_v26 = vmul.f32 %v2643_v15, %v2635_v32  ;;  %v1671_v53 = vpop.permute.xlu1 %1670 }
 0x7ce   :  { %v1529_v52 = vpack.c.bf16 %v1525_v26, %v1525_v26 }
 0x7d0   :  { %2514 = vmatmul.mubr.msk.bf16.vlgmr.msra.gmra.mrb[52].mxu0 %vm594_vm3, %v1529_v52 }
 0x7d1   :  { %2524 = vmatpush3.bf16.msra.mxu0 %v1671_v53  ;;  %2525 = vmatprep.mubr.msk.bf16.mxu0 %vm2814_vm1, %v2813_v36 }
 0x7d2   :  { %2535 = vmatprep.subr.bf16.mxu0 %v2813_v36 }
 0x7e9   :  { %v1516_v54 = vpop.xlane.xlu0 %1515 }
 0x7ea   :  { %2644 = vrcp.f32 %v1516_v54 }
 0x7ed   :  { %v1740_v55 = vpop.permute.xlu0 %1739 }
 0x7ee   :  { %v1745_v63 = vsel %vm409_vm2, %v1740_v55, 0 }
 0x7f1   :  { %v1738_v62 = vpop.permute.xlu0 %1737 }
 0x7f4   :  { %v2645_v57 = vpop.eup %2644 }
 0x7f5   :  { %v1526_v59 = vmul.f32 %v2645_v57, %v2637_v41  ;;  %v1840_v1 = vpop.permute.xlu0 %1839 }
 0x7f6   :  { %v1845_v2 = vsel %vm409_vm2, %v1840_v1, 0 }
 0x7f7   :  { %v1530_v60 = vpack.c.bf16 %v1526_v59, %v1526_v59 }
 0x7f9   :  { %2520 = vmatmul.mubr.msk.bf16.vlgmr.msra.gmra.mrb[52].mxu1 %vm594_vm3, %v1530_v60  ;;  %v1838_v6 = vpop.permute.xlu0 %1837 }
 0x7fa   :  { %2530 = vmatpush3.bf16.xpose.msra.mxu1 %v1745_v63  ;;  %2531 = vmatprep.mubr.msk.bf16.mxu1 %vm2814_vm1, %v2813_v36 }
 0x7fb   :  { %2541 = vmatprep.subr.bf16.mxu1 %v2813_v36 }
 0x7fd   :  { %v1519_v0 = vpop.xlane.xlu1 %1518 }
 0x7fe   :  { %2646 = vrcp.f32 %v1519_v0 }
 0x801   :  { %2532 = vmatmul.mubr.msk.bf16.vlgmr.msra.gmra.mrb[56].mxu1 %vm409_vm2, %v1738_v62  ;;  %v1790_v3 = vpop.permute.xlu1 %1789 }
 0x802   :  { %2542 = vmatpush3.bf16.xpose.msra.mxu1 %v1845_v2  ;;  %2543 = vmatprep.mubr.msk.bf16.mxu1 %vm2814_vm1, %v2813_v36  ;;  %v1795_v11 = vsel %vm409_vm2, %v1790_v3, 0 }
 0x803   :  { %2553 = vmatprep.subr.bf16.mxu1 %v2813_v36 }
 0x805   :  { %v1788_v9 = vpop.permute.xlu1 %1787 }
 0x808   :  { %v2647_v4 = vpop.eup %2646 }
 0x809   :  { %v1527_v7 = vmul.f32 %v2647_v4, %v2639_v47  ;;  %2544 = vmatmul.mubr.msk.bf16.vlgmr.msra.gmra.mrb[60].mxu1 %vm409_vm2, %v1838_v6  ;;  %v1890_v12 = vpop.permute.xlu1 %1889 }
 0x80a   :  { %2555 = vmatprep.mubr.msk.bf16.mxu1 %vm2814_vm1, %v2813_v36  ;;  %v1895_v13 = vsel %vm409_vm2, %v1890_v12, 0 }
 0x80b   :  { %v1531_v8 = vpack.c.bf16 %v1527_v7, %v1527_v7 }
 0x80d   :  { %2526 = vmatmul.mubr.msk.bf16.vlgmr.msra.gmra.mrb[56].mxu0 %vm594_vm3, %v1531_v8  ;;  %v1888_v14 = vpop.permute.xlu1 %1887 }
 0x80e   :  { %2536 = vmatpush3.bf16.xpose.msra.mxu0 %v1795_v11  ;;  %2537 = vmatprep.mubr.msk.bf16.mxu0 %vm2814_vm1, %v2813_v36 }
 0x80f   :  { %2547 = vmatprep.subr.bf16.mxu0 %v2813_v36 }
 0x815   :  { %2538 = vmatmul.mubr.msk.bf16.vlgmr.msra.gmra.mrb[60].mxu0 %vm409_vm2, %v1788_v9 }
 0x816   :  { %2548 = vmatpush3.bf16.xpose.msra.mxu0 %v1895_v13  ;;  %2549 = vmatprep.mubr.msk.bf16.mxu0 %vm2814_vm1, %v2813_v36 }
 0x817   :  { %2559 = vmatprep.subr.bf16.mxu0 %v2813_v36 }
 0x81d   :  { %2550 = vmatmul.mubr.msk.bf16.vlgmr.msra.gmra.mrb[64].mxu0 %vm409_vm2, %v1888_v14 }
 0x81e   :  { %2561 = vmatprep.mubr.msk.bf16.mxu0 %vm2814_vm1, %v2813_v36 }
 0x897   :  { %v3239_v16 = vpop.f32.mrb[48].mxu1 }
 0x898   :  { %v2509_v17 = vpop.f32.mrb[49].mxu1 }
 0x899   :  { %v1575_v19 = vpop.f32.mrb[50].mxu1 }
 0x89a   :  { %v2510_v20 = vpop.f32.mrb[51].mxu1 }
 0x8a3   :  { %v3241_v22 = vpop.f32.mrb[52].mxu0 }
 0x8a4   :  { %v2515_v24 = vpop.f32.mrb[53].mxu0 }
 0x8a5   :  { %v1621_v25 = vpop.f32.mrb[54].mxu0 }
 0x8a6   :  { %v2516_v28 = vpop.f32.mrb[55].mxu0 }
 0x8cc   :  { %v3243_v29 = vpop.f32.mrb[52].mxu1 }
 0x8cd   :  { %v2521_v30 = vpop.f32.mrb[53].mxu1 }
 0x8ce   :  { %v1667_v31 = vpop.f32.mrb[54].mxu1 }
 0x8cf   :  { %v2522_v32 = vpop.f32.mrb[55].mxu1 }
 0x8d4   :  { %v1781_v33 = vpop.f32.mrb[56].mxu1 }
 0x8d5   :  { %v2533_v34 = vpop.f32.mrb[57].mxu1  ;;  %v1937_v35 = vsel %vm594_vm3, %v1781_v33, -inf }
 0x8d6   :  { %1938 = vmax.xlane.f32.xlu0 %v1937_v35  ;;  %v1784_v39 = vpop.f32.mrb[58].mxu1 }
 0x8d7   :  { %v2534_v40 = vpop.f32.mrb[59].mxu1 }
 0x8dc   :  { %v1881_v41 = vpop.f32.mrb[60].mxu1 }
 0x8dd   :  { %v2545_v43 = vpop.f32.mrb[61].mxu1  ;;  %v1943_v44 = vsel %vm594_vm3, %v1881_v41, -inf }
 0x8de   :  { %1944 = vmax.xlane.f32.xlu0 %v1943_v44  ;;  %v1884_v45 = vpop.f32.mrb[62].mxu1 }
 0x8df   :  { %v2546_v47 = vpop.f32.mrb[63].mxu1 }
 0x8e0   :  { %v1710_v48 = vpop.f32.mrb[56].mxu0 }
 0x8e1   :  { %v2527_v58 = vpop.f32.mrb[57].mxu0 }
 0x8e2   :  { %v1713_v10 = vpop.f32.mrb[58].mxu0 }
 0x8e3   :  { %v2528_v18 = vpop.f32.mrb[59].mxu0 }
 0x8e8   :  { %v1831_v27 = vpop.f32.mrb[60].mxu0 }
 0x8e9   :  { %v2539_v49 = vpop.f32.mrb[61].mxu0  ;;  %v1940_v56 = vsel %vm594_vm3, %v1831_v27, -inf }
 0x8ea   :  { %1941 = vmax.xlane.f32.xlu1 %v1940_v56  ;;  %v1834_v51 = vpop.f32.mrb[62].mxu0 }
 0x8eb   :  { %v2540_v5 = vpop.f32.mrb[63].mxu0 }
 0x8f0   :  { %v1931_v15 = vpop.f32.mrb[64].mxu0 }
 0x8f1   :  { %v2551_v26 = vpop.f32.mrb[65].mxu0  ;;  %v1946_v52 = vsel %vm594_vm3, %v1931_v15, -inf }
 0x8f2   :  { %v1934_v53 = vpop.f32.mrb[66].mxu0  ;;  %1947 = vmax.xlane.f32.xlu0 %v1946_v52 }
 0x8f3   :  { %v2552_v54 = vpop.f32.mrb[67].mxu0 }
 0x963   :  { %v1939_v55 = vpop.xlane.xlu0 %1938 }
 0x964   :  { %v1949_v57 = vsub.f32 %v1781_v33, %v1939_v55 }
 0x966   :  { %v1953_v59 = vmul.f32 1.442695, %v1949_v57  ;;  %v2190_v57 = vld [vmem:[#allocation3] sm:$0xff] }
 0x968   :  { %2648 = vpow2.f32 %v1953_v59 }
 0x96b   :  { %v1945_v60 = vpop.xlane.xlu0 %1944 }
 0x96c   :  { %v1951_v62 = vsub.f32 %v1881_v41, %v1945_v60 }
 0x96e   :  { %v1957_v63 = vmul.f32 1.442695, %v1951_v62 }
 0x970   :  { %2650 = vpow2.f32 %v1957_v63 }
 0x972   :  { %v2649_v0 = vpop.eup %2648 }
 0x973   :  { %v1961_v1 = vsel %vm594_vm3, %v2649_v0, 0.0 }
 0x974   :  { %1962 = vadd.xlane.f32.xlu0 %v1961_v1 }
 0x977   :  { %v1942_v2 = vpop.xlane.xlu1 %1941 }
 0x978   :  { %v1950_v3 = vsub.f32 %v1831_v27, %v1942_v2 }
 0x97a   :  { %v2651_v4 = vpop.eup %2650  ;;  %v1955_v6 = vmul.f32 1.442695, %v1950_v3 }
 0x97b   :  { %v1967_v7 = vsel %vm594_vm3, %v2651_v4, 0.0 }
 0x97c   :  { %2652 = vpow2.f32 %v1955_v6  ;;  %1968 = vadd.xlane.f32.xlu0 %v1967_v7 }
 0x97f   :  { %v1948_v8 = vpop.xlane.xlu0 %1947 }
 0x980   :  { %v1952_v9 = vsub.f32 %v1931_v15, %v1948_v8  ;;  %v2193_v8 = vld [vmem:[#allocation3 + $0x18] sm:$0xff] }
 0x982   :  { %v1959_v11 = vmul.f32 1.442695, %v1952_v9 }
 0x984   :  { %2654 = vpow2.f32 %v1959_v11 }
 0x986   :  { %v2653_v12 = vpop.eup %2652 }
 0x987   :  { %v1964_v13 = vsel %vm594_vm3, %v2653_v12, 0.0 }
 0x988   :  { %1965 = vadd.xlane.f32.xlu1 %v1964_v13 }
 0x98e   :  { %v2655_v14 = vpop.eup %2654 }
 0x98f   :  { %v1970_v17 = vsel %vm594_vm3, %v2655_v14, 0.0 }
 0x990   :  { %1971 = vadd.xlane.f32.xlu1 %v1970_v17 }
 0x992   :  { %1985 = vrot.lane.b32.xlu0 %v3003_v23, %s2817_s22 }
 0x996   :  { %1267 = vrot.lane.b32.xlu0 %v3163_v42, %s2807_s14 }
 0x99a   :  { %1271 = vrot.lane.b32.xlu0 %v3167_v50, %s2807_s14 }
 0x99e   :  { %1720 = vrot.lane.b32.xlu0 %v3239_v16, %s2818_s23 }
 0x9a1   :  { %2031 = vrot.lane.b32.xlu1 %v2997_v21, %s2817_s22 }
 0x9a2   :  { %1724 = vrot.lane.b32.xlu0 %v3243_v29, %s2818_s23 }
 0x9a5   :  { %2077 = vrot.lane.b32.xlu1 %v3029_v38, %s2817_s22 }
 0x9a9   :  { %2123 = vrot.lane.b32.xlu1 %v3027_v37, %s2817_s22 }
 0x9ad   :  { %1269 = vrot.lane.b32.xlu1 %v3165_v46, %s2807_s14 }
 0x9b1   :  { %1273 = vrot.lane.b32.xlu1 %v3170_v61, %s2807_s14 }
 0x9b5   :  { %1722 = vrot.lane.b32.xlu1 %v3241_v22, %s2818_s23 }
 0x9b9   :  { %1726 = vrot.lane.b32.xlu1 %v1710_v48, %s2818_s23 }
 0xa01   :  { %v1963_v23 = vpop.xlane.xlu0 %1962 }
 0xa02   :  { %2656 = vrcp.f32 %v1963_v23 }
 0xa09   :  { %v1969_v21 = vpop.xlane.xlu0 %1968 }
 0xa0a   :  { %2658 = vrcp.f32 %v1969_v21 }
 0xa0c   :  { %v2657_v42 = vpop.eup %2656 }
 0xa0d   :  { %v1977_v50 = vmul.f32 %v2657_v42, %v2649_v0  ;;  %v1986_v16 = vpop.permute.xlu0 %1985  ;;  %v2191_v0 = vld [vmem:[#allocation3 + $0x8] sm:$0xff] }
 0xa0e   :  { %2554 = vmatpush3.bf16.msra.mxu1 %v1986_v16 }
 0xa0f   :  { %v1981_v38 = vpack.c.bf16 %v1977_v50, %v1977_v50  ;;  %2565 = vmatprep.subr.bf16.mxu1 %v2813_v36 }
 0xa11   :  { %2556 = vmatmul.mubr.msk.bf16.vlgmr.msra.gmra.mrb[64].mxu1 %vm594_vm3, %v1981_v38  ;;  %v1268_v37 = vpop.permute.xlu0 %1267 }
 0xa12   :  { %1280 = vst.msk [vmem:[#allocation2] sm:$0xff] %vm1279_vm4, %v1268_v37  ;;  %2567 = vmatprep.mubr.msk.bf16.mxu1 %vm2814_vm1, %v2813_v36 }
 0xa14   :  { %v2659_v24 = vpop.eup %2658 }
 0xa15   :  { %v1966_v46 = vpop.xlane.xlu1 %1965  ;;  %v1272_v61 = vpop.permute.xlu0 %1271  ;;  %v1979_v30 = vmul.f32 %v2659_v24, %v2651_v4  ;;  %v2192_v4 = vld [vmem:[#allocation3 + $0x10] sm:$0xff] }
 0xa16   :  { %2660 = vrcp.f32 %v1966_v46  ;;  %1282 = vst.msk [vmem:[#allocation2 + $0x10] sm:$0xff] %vm1279_vm4, %v1272_v61 }
 0xa17   :  { %v1983_v33 = vpack.c.bf16 %v1979_v30, %v1979_v30 }
 0xa19   :  { %v1721_v19 = vpop.permute.xlu0 %1720 }
 0xa1a   :  { %1733 = vst.msk [vmem:[#allocation2] sm:$0xff] %vm1732_vm5, %v1721_v19 }
 0xa1d   :  { %v1972_v20 = vpop.xlane.xlu1 %1971  ;;  %v1725_v22 = vpop.permute.xlu0 %1724 }
 0xa1e   :  { %2662 = vrcp.f32 %v1972_v20  ;;  %1735 = vst.msk [vmem:[#allocation2 + $0x10] sm:$0xff] %vm1732_vm5, %v1725_v22 }
 0xa20   :  { %v2661_v25 = vpop.eup %2660 }
 0xa21   :  { %v1978_v28 = vmul.f32 %v2661_v25, %v2653_v12  ;;  %v2032_v29 = vpop.permute.xlu1 %2031 }
 0xa22   :  { %2560 = vmatpush3.bf16.msra.mxu0 %v2032_v29 }
 0xa23   :  { %v1982_v31 = vpack.c.bf16 %v1978_v28, %v1978_v28  ;;  %2571 = vmatprep.subr.bf16.mxu0 %v2813_v36 }
 0xa25   :  { %2562 = vmatmul.mubr.msk.bf16.vlgmr.msra.gmra.mrb[68].mxu0 %vm594_vm3, %v1982_v31  ;;  %v2078_v32 = vpop.permute.xlu1 %2077 }
 0xa26   :  { %2566 = vmatpush3.bf16.msra.mxu1 %v2078_v32  ;;  %2573 = vmatprep.mubr.msk.bf16.mxu0 %vm2814_vm1, %v2813_v36 }
 0xa28   :  { %v2663_v34 = vpop.eup %2662 }
 0xa29   :  { %v1980_v35 = vmul.f32 %v2663_v34, %v2655_v14  ;;  %v2124_v39 = vpop.permute.xlu1 %2123  ;;  %2568 = vmatmul.mubr.msk.bf16.vlgmr.msra.gmra.mrb[68].mxu1 %vm594_vm3, %v1983_v33 }
 0xa2a   :  { %2572 = vmatpush3.bf16.msra.mxu0 %v2124_v39 }
 0xa2b   :  { %v1984_v40 = vpack.c.bf16 %v1980_v35, %v1980_v35 }
 0xa2d   :  { %2574 = vmatmul.mubr.msk.bf16.vlgmr.msra.gmra.mrb[72].mxu0 %vm594_vm3, %v1984_v40  ;;  %v1270_v41 = vpop.permute.xlu1 %1269 }
 0xa2e   :  { %1281 = vst.msk [vmem:[#allocation2 + $0x8] sm:$0xff] %vm1279_vm4, %v1270_v41 }
 0xa31   :  { %v1274_v43 = vpop.permute.xlu1 %1273 }
 0xa32   :  { %1283 = vst.msk [vmem:[#allocation2 + $0x18] sm:$0xff] %vm1279_vm4, %v1274_v43 }
 0xa35   :  { %v1723_v44 = vpop.permute.xlu1 %1722 }
 0xa36   :  { %1734 = vst.msk [vmem:[#allocation2 + $0x8] sm:$0xff] %vm1732_vm5, %v1723_v44 }
 0xa39   :  { %v1727_v36 = vpop.permute.xlu1 %1726 }
 0xa3a   :  { %1736 = vst.msk [vmem:[#allocation2 + $0x18] sm:$0xff] %vm1732_vm5, %v1727_v36 }
 0xae4   :  { %v2025_v45 = vpop.f32.mrb[64].mxu1 }
 0xae5   :  { %2173 = vrot.lane.b32.xlu0 %v2025_v45, %s2819_s24  ;;  %v2557_v47 = vpop.f32.mrb[65].mxu1 }
 0xae6   :  { %v2028_v48 = vpop.f32.mrb[66].mxu1 }
 0xae7   :  { %v2558_v58 = vpop.f32.mrb[67].mxu1 }
 0xaf8   :  { %v2071_v10 = vpop.f32.mrb[68].mxu0 }
 0xaf9   :  { %2175 = vrot.lane.b32.xlu1 %v2071_v10, %s2819_s24  ;;  %v2563_v18 = vpop.f32.mrb[69].mxu0 }
 0xafa   :  { %v2074_v27 = vpop.f32.mrb[70].mxu0 }
 0xafb   :  { %v2564_v49 = vpop.f32.mrb[71].mxu0 }
 0xafc   :  { %v2117_v56 = vpop.f32.mrb[68].mxu1 }
 0xafd   :  { %2177 = vrot.lane.b32.xlu0 %v2117_v56, %s2819_s24  ;;  %v2569_v51 = vpop.f32.mrb[69].mxu1 }
 0xafe   :  { %v2120_v5 = vpop.f32.mrb[70].mxu1 }
 0xaff   :  { %v2570_v15 = vpop.f32.mrb[71].mxu1 }
 0xb00   :  { %v2163_v26 = vpop.f32.mrb[72].mxu0 }
 0xb01   :  { %2179 = vrot.lane.b32.xlu1 %v2163_v26, %s2819_s24  ;;  %v2575_v52 = vpop.f32.mrb[73].mxu0 }
 0xb02   :  { %v2166_v53 = vpop.f32.mrb[74].mxu0 }
 0xb03   :  { %v2576_v54 = vpop.f32.mrb[75].mxu0 }
 0xb57   :  { %v2174_v55 = vpop.permute.xlu0 %2173 }
 0xb58   :  { %2186 = vst.msk [vmem:[#allocation2] sm:$0xff] %vm2185_vm6, %v2174_v55 }
 0xb5f   :  { %v2194_v59 = vld [vmem:[#allocation2] sm:$0xff] }
 0xb60   :  { %v2198_v60 = vadd.f32 %v2194_v59, %v2190_v57 }
 0xb62   :  { %2202 = vst.msk [vmem:[#allocation12] sm:$0xff] %vm147_vm0, %v2198_v60 }
 0xb6b   :  { %v2176_v62 = vpop.permute.xlu1 %2175 }
 0xb6c   :  { %2187 = vst.msk [vmem:[#allocation2 + $0x8] sm:$0xff] %vm2185_vm6, %v2176_v62 }
 0xb6f   :  { %v2178_v63 = vpop.permute.xlu0 %2177 }
 0xb70   :  { %2188 = vst.msk [vmem:[#allocation2 + $0x10] sm:$0xff] %vm2185_vm6, %v2178_v63 }
 0xb73   :  { %v2180_v1 = vpop.permute.xlu1 %2179  ;;  %v2195_v2 = vld [vmem:[#allocation2 + $0x8] sm:$0xff] }
 0xb74   :  { %2189 = vst.msk [vmem:[#allocation2 + $0x18] sm:$0xff] %vm2185_vm6, %v2180_v1  ;;  %v2199_v3 = vadd.f32 %v2195_v2, %v2191_v0 }
 0xb76   :  { %2203 = vst.msk [vmem:[#allocation12 + $0x8] sm:$0xff] %vm147_vm0, %v2199_v3 }
 0xb77   :  { %v2196_v6 = vld [vmem:[#allocation2 + $0x10] sm:$0xff] }
 0xb78   :  { %v2200_v7 = vadd.f32 %v2196_v6, %v2192_v4 }
 0xb7a   :  { %2204 = vst.msk [vmem:[#allocation12 + $0x10] sm:$0xff] %vm147_vm0, %v2200_v7 }
 0xb7b   :  { %v2197_v9 = vld [vmem:[#allocation2 + $0x18] sm:$0xff] }
 0xb7c   :  { %v2201_v11 = vadd.f32 %v2197_v9, %v2193_v8 }
 0xb7e   :  { %2205 = vst.msk [vmem:[#allocation12 + $0x18] sm:$0xff] %vm147_vm0, %v2201_v11 }
 0xb7f   :  { %2785 = shalt.err (!%p2782_p2)
}
 0xb80   :  { %s2786_s8 = scalar_lea.hbm %s3316_s7, 512 }
 0xb81   :  { %p2787_p3 = scmp.ne.s32.totalorder %s3316_s7, %s2786_s8  ;;  %p2790_p4 = scmp.lt.u32.totalorder %s2786_s8, %s3316_s7 }
 0xb83   :  { %p2792_p5 = pnand %p2790_p4, %p2787_p3 }
 0xb85   :  { %2795 = shalt.err (!%p2792_p5)
}
 0xb86   :  { %2217 = dma.vmem_to_hbm [thread:$0]  %s2212_s28, 512, %s3316_s7, [#allocation5], %s2806_s13, %s2806_s13, %s2807_s14  }
 0xb87   :  { %2802 = dma.done.wait [#allocation5], 512  }
 0xb88   :  { %2803 = vsyncadd [#allocation5], 4294966784 }
 0xb89   :  { %2221 = vsyncpa [#allocation4], 1 }
 0xb8a   :  { %2222 = vsyncpa [#allocation7], 1 }
 0xb8b   :  { %2223 = vsyncpa [#allocation10], 1 }
 0xb8c   :  { %2224 = vsyncpa [#allocation5], 1 }

</bundles_post_ra>
